<compile_context>
chip_gen: v7x
topology: tpu7x:2x2x1
jax: 0.10.0
libtpu: 0.0.40
codegen_flags: <defaults>
</compile_context>

<pallas_src>
import functools

import jax
import jax.numpy as jnp
from jax.experimental import pallas as pl
from jax.experimental.pallas import tpu as pltpu


# ----------------------------------------------------------------------------
# Pallas kernel (one batch block per grid point)
# ----------------------------------------------------------------------------
def m5net_kernel(ise_ref, cal_ref,                     # (T*Bb, 3E) bf16, (T*Bb, 5) bf16
                 wise_ref, w4_ref, wc_ref, bc_ref,     # (3E,E) (E,E) (5,E) bf16, (1,E) f32
                 benc_ref,                             # (1,E) f32
                 wih_ref, whh_ref, blstm_ref,          # (L,H,4H) bf16 x2, (L,1,4H) f32
                 wcls_ref, bcls_ref,                   # (H,OUTP) bf16, (1,OUTP) f32
                 out_ref,                              # (T*Bb, OUTP) f32
                 buf_ref, xw_ref,                      # scratch (T*Bb,H) bf16, (T*Bb,4H) f32
                 *, seq_len, batch_blk):
    T = seq_len
    B = batch_blk                                      # rows per timestep (mult of 16)
    H = buf_ref.shape[1]
    L = wih_ref.shape[0]
    f32 = jnp.float32
    bf16 = jnp.bfloat16

    # ---- encode (fused, batched over all T*Bb rows; bf16 feeds, f32 accumulate) --
    # c = cal @ Wc + bc ;  x = [i|s|e] @ W_ise + c @ W4 + b_enc
    c2d = (jnp.dot(cal_ref[...], wc_ref[...], preferred_element_type=f32)
           + bc_ref[...])
    x = (jnp.dot(ise_ref[...], wise_ref[...], preferred_element_type=f32)
         + jnp.dot(c2d.astype(bf16), w4_ref[...], preferred_element_type=f32)
         + benc_ref[...])
    buf_ref[...] = x.astype(bf16)                      # layer input, bf16 MXU feed

    # ---- stacked LSTM (PyTorch gate order i, f, g, o; h0 = c0 = 0) --------------
    # buf_ref holds the layer input; each layer overwrites it with its hidden
    # states.  The x @ W_ih + b projection is hoisted into xw_ref BEFORE the time
    # loop (one bulk GEMM, off the serial path), so the in-place rewrite is safe.
    for l in range(L):                                 # L static & small -> unrolled
        xw_ref[...] = (jnp.dot(buf_ref[...], wih_ref[l], preferred_element_type=f32)
                       + blstm_ref[l])
        whh_l = whh_ref[l]                             # (H, 4H) bf16, loaded once

        def step(t, carry):
            h_b, c = carry                             # h_b bf16 (MXU feed), c f32
            lo = pl.multiple_of(t * B, B)              # tile-aligned dynamic slice
            gates = (xw_ref[pl.ds(lo, B), :]
                     + jnp.dot(h_b, whh_l, preferred_element_type=f32))
            i_g = jax.nn.sigmoid(gates[:, 0 * H:1 * H])
            f_g = jax.nn.sigmoid(gates[:, 1 * H:2 * H])
            g_g = jnp.tanh(gates[:, 2 * H:3 * H])
            o_g = jax.nn.sigmoid(gates[:, 3 * H:4 * H])
            c = f_g * c + i_g * g_g                    # f32 cell state
            h_b = (o_g * jnp.tanh(c)).astype(bf16)
            buf_ref[pl.ds(lo, B), :] = h_b
            return h_b, c

        jax.lax.fori_loop(
            0, T, step,
            (jnp.zeros((B, H), bf16), jnp.zeros((B, H), f32)),
            unroll=True if T <= 8 else 8)

    # ---- classifier: one bulk GEMM into a lane-dense (128-wide) output slab -----
    out_ref[...] = (jnp.dot(buf_ref[...], wcls_ref[...], preferred_element_type=f32)
                    + bcls_ref[...]).astype(out_ref.dtype)


# ----------------------------------------------------------------------------
# Parameter construction (deterministic, synthetic, all f32 master copies)
# ----------------------------------------------------------------------------
def init_params(key, emb_dim, hidden_dim, n_layer, output_dim=1):
    assert emb_dim == hidden_dim, "kernel reuses one VMEM buffer; needs E == H"
    ks = jax.random.split(key, 20)
    sc = 0.1
    p = {}
    p["item_emb"] = sc * jax.random.normal(ks[0], (3049, emb_dim), jnp.float32)
    p["dept_emb"] = sc * jax.random.normal(ks[1], (7, emb_dim), jnp.float32)
    p["cat_emb"] = sc * jax.random.normal(ks[2], (3, emb_dim), jnp.float32)
    p["store_emb"] = sc * jax.random.normal(ks[3], (10, emb_dim), jnp.float32)
    p["state_emb"] = sc * jax.random.normal(ks[4], (3, emb_dim), jnp.float32)
    p["en_emb"] = sc * jax.random.normal(ks[5], (31, emb_dim), jnp.float32)
    p["et_emb"] = sc * jax.random.normal(ks[6], (5, emb_dim), jnp.float32)
    # calendar_prices_embedding: Linear(5, E) stored transposed (in, out)
    p["wc"] = sc * jax.random.normal(ks[7], (5, emb_dim), jnp.float32)
    p["bc"] = sc * jax.random.normal(ks[8], (1, emb_dim), jnp.float32)
    # encode: Linear(4E, E) -> W^T is (4E, E).  Split into the [i|s|e] block (3E,E)
    # and the calendar block (E,E) so the kernel runs one fused K=3E GEMM.
    w_enc_t = sc * jax.random.normal(ks[9], (4 * emb_dim, emb_dim), jnp.float32)
    p["w_ise"] = w_enc_t[:3 * emb_dim]
    p["w4"] = w_enc_t[3 * emb_dim:]
    p["benc"] = sc * jax.random.normal(ks[10], (1, emb_dim), jnp.float32)
    # LSTM: per layer W_ih^T (H,4H), W_hh^T (H,4H), combined bias (1,4H)
    wih, whh, bl = [], [], []
    for l in range(n_layer):
        kl = jax.random.fold_in(ks[11], l)
        k1, k2, k3, k4 = jax.random.split(kl, 4)
        wih.append(sc * jax.random.normal(k1, (hidden_dim, 4 * hidden_dim), jnp.float32))
        whh.append(sc * jax.random.normal(k2, (hidden_dim, 4 * hidden_dim), jnp.float32))
        b_ih = sc * jax.random.normal(k3, (4 * hidden_dim,), jnp.float32)
        b_hh = sc * jax.random.normal(k4, (4 * hidden_dim,), jnp.float32)
        bl.append((b_ih + b_hh)[None, :])
    p["wih"] = jnp.stack(wih)      # (L, H, 4H)
    p["whh"] = jnp.stack(whh)      # (L, H, 4H)
    p["blstm"] = jnp.stack(bl)     # (L, 1, 4H)
    # classifier Linear(H, output_dim)
    p["wcls"] = sc * jax.random.normal(ks[12], (hidden_dim, output_dim), jnp.float32)
    p["bcls"] = sc * jax.random.normal(ks[13], (1, output_dim), jnp.float32)
    return p


# ----------------------------------------------------------------------------
# Forward wrapper: JAX glue (embedding gathers, layout, bf16 casts) + Pallas kernel
# ----------------------------------------------------------------------------
@functools.partial(jax.jit, static_argnames=("b_blk",))
def m5net_forward(params, products, events, calendar_prices, b_blk=16):
    # Embedding lookups (gather glue) + the elementwise sums from the module.
    item = params["item_emb"][products[:, :, 0]]
    dept = params["dept_emb"][products[:, :, 1]]
    cat = params["cat_emb"][products[:, :, 2]]
    store = params["store_emb"][products[:, :, 3]]
    state = params["state_emb"][products[:, :, 4]]
    en1 = params["en_emb"][events[:, :, 0]]
    et1 = params["et_emb"][events[:, :, 1]]
    en2 = params["en_emb"][events[:, :, 2]]
    et2 = params["et_emb"][events[:, :, 3]]

    i_sum = item + dept + cat                          # (B, T, E)
    s_sum = store + state                              # (B, T, E)
    e_sum = en1 + en2 + et1 + et2                      # (B, T, E)

    B, T, E = i_sum.shape
    H = params["whh"].shape[1]
    L = params["wih"].shape[0]
    OUT = params["wcls"].shape[1]
    OUTP = 128 * pl.cdiv(OUT, 128)                     # lane-dense output width

    # Batch block size: multiple of 16 (bf16 sublane packing).  Production sizing
    # should push this toward >=128 rows per TensorCore to amortize MXU latency.
    B_BLK = max(16, 16 * ((b_blk + 15) // 16))
    Bp = B_BLK * pl.cdiv(B, B_BLK)
    pad = Bp - B
    G = Bp // B_BLK
    rows_blk = T * B_BLK
    rows = G * rows_blk

    # bf16 MXU feeds (inputs + weights); biases stay f32.
    ise = jnp.concatenate([i_sum, s_sum, e_sum], axis=-1).astype(jnp.bfloat16)
    cal = calendar_prices.astype(jnp.bfloat16)
    if pad:
        ise = jnp.pad(ise, ((0, pad), (0, 0), (0, 0)))
        cal = jnp.pad(cal, ((0, pad), (0, 0), (0, 0)))

    # Per-block, time-major layout: row index = (g*T + t) * B_BLK + b_in_block.
    def to_blocked(a):
        D = a.shape[-1]
        return a.reshape(G, B_BLK, T, D).transpose(0, 2, 1, 3).reshape(rows, D)

    ise2d = to_blocked(ise)                            # (rows, 3E) bf16
    cal2d = to_blocked(cal)                            # (rows, 5)  bf16
    CALD = cal2d.shape[1]

    w_ise = params["w_ise"].astype(jnp.bfloat16)
    w4 = params["w4"].astype(jnp.bfloat16)
    wc = params["wc"].astype(jnp.bfloat16)
    wih = params["wih"].astype(jnp.bfloat16)
    whh = params["whh"].astype(jnp.bfloat16)
    wcls = jnp.zeros((H, OUTP), jnp.bfloat16).at[:, :OUT].set(
        params["wcls"].astype(jnp.bfloat16))
    bcls = jnp.zeros((1, OUTP), jnp.float32).at[:, :OUT].set(params["bcls"])
    bc, benc, blstm = params["bc"], params["benc"], params["blstm"]

    # ---- VMEM budget (resident bytes + double-buffer factor + headroom) ----------
    blk_bytes = rows_blk * (3 * E * 2 + CALD * 2 + OUTP * 4)
    weight_bytes = sum(int(a.size) * a.dtype.itemsize
                       for a in (w_ise, w4, wc, bc, benc, wih, whh, blstm, wcls, bcls))
    scratch_bytes = rows_blk * H * 2 + rows_blk * 4 * H * 4
    vmem_need = 2 * blk_bytes + 2 * weight_bytes + scratch_bytes
    vmem_limit = min(100 * 1024 * 1024,
                     max(16 * 1024 * 1024, int(vmem_need * 1.25) + (4 << 20)))

    # ---- cost estimate (documents the roofline, helps XLA schedule the glue) -----
    flops = (2 * rows * 5 * E                 # calendar Linear
             + 2 * rows * 3 * E * E           # [i|s|e] @ W_ise
             + 2 * rows * E * E               # c @ W4
             + L * 2 * rows * H * 4 * H       # x @ W_ih
             + L * 2 * rows * H * 4 * H       # h @ W_hh (summed over timesteps)
             + 2 * rows * H * OUTP)           # classifier
    transcendentals = L * rows * 5 * H        # 4 gate activations + tanh(c)
    bytes_accessed = (int(ise2d.size) * 2 + int(cal2d.size) * 2
                      + weight_bytes + rows * OUTP * 4)
    cost = pl.CostEstimate(flops=flops, transcendentals=transcendentals,
                           bytes_accessed=bytes_accessed)

    kernel = functools.partial(m5net_kernel, seq_len=T, batch_blk=B_BLK)

    grid_spec = pltpu.PrefetchScalarGridSpec(
        num_scalar_prefetch=0,
        grid=(G,),
        in_specs=[
            pl.BlockSpec((rows_blk, 3 * E), lambda g: (g, 0)),   # ise (per batch block)
            pl.BlockSpec((rows_blk, CALD), lambda g: (g, 0)),    # cal (per batch block)
            pl.BlockSpec(w_ise.shape, lambda g: (0, 0)),
            pl.BlockSpec(w4.shape, lambda g: (0, 0)),
            pl.BlockSpec(wc.shape, lambda g: (0, 0)),
            pl.BlockSpec(bc.shape, lambda g: (0, 0)),
            pl.BlockSpec(benc.shape, lambda g: (0, 0)),
            pl.BlockSpec(wih.shape, lambda g: (0, 0, 0)),
            pl.BlockSpec(whh.shape, lambda g: (0, 0, 0)),
            pl.BlockSpec(blstm.shape, lambda g: (0, 0, 0)),
            pl.BlockSpec(wcls.shape, lambda g: (0, 0)),
            pl.BlockSpec(bcls.shape, lambda g: (0, 0)),
        ],
        out_specs=pl.BlockSpec((rows_blk, OUTP), lambda g: (g, 0)),
        scratch_shapes=[
            pltpu.VMEM((rows_blk, H), jnp.bfloat16),     # layer input / hidden buffer
            pltpu.VMEM((rows_blk, 4 * H), jnp.float32),  # hoisted x @ W_ih + b
        ],
    )

    out2d = pl.pallas_call(
        kernel,
        out_shape=jax.ShapeDtypeStruct((rows, OUTP), jnp.float32),
        grid_spec=grid_spec,
        compiler_params=pltpu.CompilerParams(
            dimension_semantics=("parallel",),           # batch blocks -> TensorCores
            vmem_limit_bytes=vmem_limit),
        cost_estimate=cost,
    )(ise2d, cal2d, w_ise, w4, wc, bc, benc, wih, whh, blstm, wcls, bcls)

    out = out2d.reshape(G, T, B_BLK, OUTP).transpose(0, 2, 1, 3).reshape(Bp, T, OUTP)
    return out[:B, :, :OUT]


# ----------------------------------------------------------------------------
# Pure-JAX f32 reference (mirrors the PyTorch forward) for a correctness check
# ----------------------------------------------------------------------------
def m5net_reference(params, products, events, calendar_prices):
    item = params["item_emb"][products[:, :, 0]]
    dept = params["dept_emb"][products[:, :, 1]]
    cat = params["cat_emb"][products[:, :, 2]]
    store = params["store_emb"][products[:, :, 3]]
    state = params["state_emb"][products[:, :, 4]]
    en1 = params["en_emb"][events[:, :, 0]]
    et1 = params["et_emb"][events[:, :, 1]]
    en2 = params["en_emb"][events[:, :, 2]]
    et2 = params["et_emb"][events[:, :, 3]]
    i_s = item + dept + cat
    s_s = store + state
    e_s = en1 + en2 + et1 + et2
    c = calendar_prices @ params["wc"] + params["bc"]
    w_enc = jnp.concatenate([params["w_ise"], params["w4"]], axis=0)       # (4E, E)
    x = jnp.concatenate([i_s, s_s, e_s, c], axis=-1) @ w_enc + params["benc"]
    B, T, _ = x.shape
    H = params["whh"].shape[1]
    L = params["wih"].shape[0]
    for l in range(L):
        h = jnp.zeros((B, H), jnp.float32)
        cst = jnp.zeros((B, H), jnp.float32)
        ys = []
        for t in range(T):
            g = x[:, t] @ params["wih"][l] + h @ params["whh"][l] + params["blstm"][l]
            i_g = jax.nn.sigmoid(g[:, 0 * H:1 * H])
            f_g = jax.nn.sigmoid(g[:, 1 * H:2 * H])
            g_g = jnp.tanh(g[:, 2 * H:3 * H])
            o_g = jax.nn.sigmoid(g[:, 3 * H:4 * H])
            cst = f_g * cst + i_g * g_g
            h = o_g * jnp.tanh(cst)
            ys.append(h)
        x = jnp.stack(ys, axis=1)
    return x @ params["wcls"] + params["bcls"]


# ----------------------------------------------------------------------------
if __name__ == "__main__":
    B, T = 24, 8          # pads to Bp=32 -> grid=(2,) batch blocks of 16 rows
    EMB = 128             # E = H = 128: full 128-lane gate slices on the VPU/EUP
    HID = 128
    NLAYER = 2

    key = jax.random.PRNGKey(0)
    kp, ki1, ki2, kc = jax.random.split(key, 4)

    params = init_params(kp, EMB, HID, NLAYER, output_dim=1)

    # products: [item<3049, dept<7, cat<3, store<10, state<3]
    maxes_p = jnp.array([3049, 7, 3, 10, 3], jnp.int32)
    products = jax.random.randint(ki1, (B, T, 5), 0, 1_000_000, jnp.int32) % maxes_p
    # events: [name<31, type<5, name<31, type<5]
    maxes_e = jnp.array([31, 5, 31, 5], jnp.int32)
    events = jax.random.randint(ki2, (B, T, 4), 0, 1_000_000, jnp.int32) % maxes_e
    calendar_prices = jax.random.normal(kc, (B, T, 5), jnp.float32)

    out = m5net_forward(params, products, events, calendar_prices, b_blk=16)
    out = jax.block_until_ready(out)

    ref = m5net_reference(params, products, events, calendar_prices)
    assert out.shape == (B, T, 1), out.shape
    # bf16 MXU feeds (f32 accumulate / f32 cell state) vs. the pure-f32 reference:
    # loosened tolerance per review.
    err = float(jnp.max(jnp.abs(out - ref)))
    assert err < 5e-2, err

    print("KERNEL_OK")
</pallas_src>

<mosaic_0001>
module attributes {stable_mosaic.version = 11 : i64} {
  func.func @m5net_kernel(%arg0: i32, %arg1: memref<128x384xbf16, #tpu.memory_space<vmem>>, %arg2: memref<128x5xbf16, #tpu.memory_space<vmem>>, %arg3: memref<384x128xbf16, #tpu.memory_space<vmem>>, %arg4: memref<128x128xbf16, #tpu.memory_space<vmem>>, %arg5: memref<5x128xbf16, #tpu.memory_space<vmem>>, %arg6: memref<1x128xf32, #tpu.memory_space<vmem>>, %arg7: memref<1x128xf32, #tpu.memory_space<vmem>>, %arg8: memref<2x128x512xbf16, #tpu.memory_space<vmem>>, %arg9: memref<2x128x512xbf16, #tpu.memory_space<vmem>>, %arg10: memref<2x1x512xf32, #tpu.memory_space<vmem>>, %arg11: memref<128x128xbf16, #tpu.memory_space<vmem>>, %arg12: memref<1x128xf32, #tpu.memory_space<vmem>>, %arg13: memref<128x128xf32, #tpu.memory_space<vmem>>, %arg14: memref<128x128xbf16, #tpu.memory_space<vmem>>, %arg15: memref<128x512xf32, #tpu.memory_space<vmem>>) attributes {dimension_semantics = [#tpu.dimension_semantics<parallel>], iteration_bounds = array<i64: 2>, scalar_prefetch = 0 : i64, scratch_operands = 2 : i64, tpu.core_type = #tpu.core_type<tc>, window_params = [{transform_indices = @transform_0, window_bounds = array<i64: 128, 384>}, {transform_indices = @transform_1, window_bounds = array<i64: 128, 5>}, {pipeline_mode = #tpu.pipeline_mode<synchronous>, transform_indices = @transform_2, window_bounds = array<i64: 384, 128>}, {pipeline_mode = #tpu.pipeline_mode<synchronous>, transform_indices = @transform_3, window_bounds = array<i64: 128, 128>}, {pipeline_mode = #tpu.pipeline_mode<synchronous>, transform_indices = @transform_4, window_bounds = array<i64: 5, 128>}, {pipeline_mode = #tpu.pipeline_mode<synchronous>, transform_indices = @transform_5, window_bounds = array<i64: 1, 128>}, {pipeline_mode = #tpu.pipeline_mode<synchronous>, transform_indices = @transform_6, window_bounds = array<i64: 1, 128>}, {pipeline_mode = #tpu.pipeline_mode<synchronous>, transform_indices = @transform_7, window_bounds = array<i64: 2, 128, 512>}, {pipeline_mode = #tpu.pipeline_mode<synchronous>, transform_indices = @transform_8, window_bounds = array<i64: 2, 128, 512>}, {pipeline_mode = #tpu.pipeline_mode<synchronous>, transform_indices = @transform_9, window_bounds = array<i64: 2, 1, 512>}, {pipeline_mode = #tpu.pipeline_mode<synchronous>, transform_indices = @transform_10, window_bounds = array<i64: 128, 128>}, {pipeline_mode = #tpu.pipeline_mode<synchronous>, transform_indices = @transform_11, window_bounds = array<i64: 1, 128>}, {transform_indices = @transform_12, window_bounds = array<i64: 128, 128>}]} {
    %c0 = arith.constant 0 : index
    %c0_0 = arith.constant 0 : index
    %0 = vector.load %arg2[%c0, %c0_0] : memref<128x5xbf16, #tpu.memory_space<vmem>>, vector<128x5xbf16>
    %c0_1 = arith.constant 0 : index
    %c0_2 = arith.constant 0 : index
    %1 = vector.load %arg5[%c0_1, %c0_2] : memref<5x128xbf16, #tpu.memory_space<vmem>>, vector<5x128xbf16>
    %cst = arith.constant dense<0.000000e+00> : vector<128x128xf32>
    %2 = tpu.matmul %0, %1, %cst {dimension_numbers = #tpu.dot_dimension_numbers<[1], [0], [0], [1], [0, 0, 1, 1], [], []>} : vector<128x5xbf16>, vector<5x128xbf16>, vector<128x128xf32> -> vector<128x128xf32>
    %c0_3 = arith.constant 0 : index
    %c0_4 = arith.constant 0 : index
    %3 = vector.load %arg6[%c0_3, %c0_4] : memref<1x128xf32, #tpu.memory_space<vmem>>, vector<1x128xf32>
    %4 = vector.broadcast %3 : vector<1x128xf32> to vector<128x128xf32>
    %5 = arith.addf %2, %4 : vector<128x128xf32>
    %c0_5 = arith.constant 0 : index
    %c0_6 = arith.constant 0 : index
    %6 = vector.load %arg1[%c0_5, %c0_6] : memref<128x384xbf16, #tpu.memory_space<vmem>>, vector<128x384xbf16>
    %c0_7 = arith.constant 0 : index
    %c0_8 = arith.constant 0 : index
    %7 = vector.load %arg3[%c0_7, %c0_8] : memref<384x128xbf16, #tpu.memory_space<vmem>>, vector<384x128xbf16>
    %cst_9 = arith.constant dense<0.000000e+00> : vector<128x128xf32>
    %8 = tpu.matmul %6, %7, %cst_9 {dimension_numbers = #tpu.dot_dimension_numbers<[1], [0], [0], [1], [0, 0, 1, 1], [], []>} : vector<128x384xbf16>, vector<384x128xbf16>, vector<128x128xf32> -> vector<128x128xf32>
    %9 = arith.truncf %5 : vector<128x128xf32> to vector<128x128xbf16>
    %c0_10 = arith.constant 0 : index
    %c0_11 = arith.constant 0 : index
    %10 = vector.load %arg4[%c0_10, %c0_11] : memref<128x128xbf16, #tpu.memory_space<vmem>>, vector<128x128xbf16>
    %cst_12 = arith.constant dense<0.000000e+00> : vector<128x128xf32>
    %11 = tpu.matmul %9, %10, %cst_12 {dimension_numbers = #tpu.dot_dimension_numbers<[1], [0], [0], [1], [0, 0, 1, 1], [], []>} : vector<128x128xbf16>, vector<128x128xbf16>, vector<128x128xf32> -> vector<128x128xf32>
    %12 = arith.addf %8, %11 : vector<128x128xf32>
    %c0_13 = arith.constant 0 : index
    %c0_14 = arith.constant 0 : index
    %13 = vector.load %arg7[%c0_13, %c0_14] : memref<1x128xf32, #tpu.memory_space<vmem>>, vector<1x128xf32>
    %14 = vector.broadcast %13 : vector<1x128xf32> to vector<128x128xf32>
    %15 = arith.addf %12, %14 : vector<128x128xf32>
    %16 = arith.truncf %15 : vector<128x128xf32> to vector<128x128xbf16>
    %c0_15 = arith.constant 0 : index
    %c0_16 = arith.constant 0 : index
    %17 = vector.load %arg14[%c0_15, %c0_16] : memref<128x128xbf16, #tpu.memory_space<vmem>>, vector<128x128xbf16>
    tpu.vector_store %arg14[%c0_15, %c0_16], %16 {strides = array<i32>} : memref<128x128xbf16, #tpu.memory_space<vmem>>, vector<128x128xbf16>,
    %c0_17 = arith.constant 0 : index
    %c0_18 = arith.constant 0 : index
    %18 = vector.load %arg14[%c0_17, %c0_18] : memref<128x128xbf16, #tpu.memory_space<vmem>>, vector<128x128xbf16>
    %c0_19 = arith.constant 0 : index
    %c0_20 = arith.constant 0 : index
    %c0_21 = arith.constant 0 : index
    %19 = vector.load %arg8[%c0_19, %c0_20, %c0_21] : memref<2x128x512xbf16, #tpu.memory_space<vmem>>, vector<1x128x512xbf16>
    %20 = vector.shape_cast %19 : vector<1x128x512xbf16> to vector<128x512xbf16>
    %cst_22 = arith.constant dense<0.000000e+00> : vector<128x512xf32>
    %21 = tpu.matmul %18, %20, %cst_22 {dimension_numbers = #tpu.dot_dimension_numbers<[1], [0], [0], [1], [0, 0, 1, 1], [], []>} : vector<128x128xbf16>, vector<128x512xbf16>, vector<128x512xf32> -> vector<128x512xf32>
    %c0_23 = arith.constant 0 : index
    %c0_24 = arith.constant 0 : index
    %c0_25 = arith.constant 0 : index
    %22 = vector.load %arg10[%c0_23, %c0_24, %c0_25] : memref<2x1x512xf32, #tpu.memory_space<vmem>>, vector<1x1x512xf32>
    %23 = vector.shape_cast %22 : vector<1x1x512xf32> to vector<1x512xf32>
    %24 = vector.broadcast %23 : vector<1x512xf32> to vector<128x512xf32>
    %25 = arith.addf %21, %24 : vector<128x512xf32>
    %c0_26 = arith.constant 0 : index
    %c0_27 = arith.constant 0 : index
    %26 = vector.load %arg15[%c0_26, %c0_27] : memref<128x512xf32, #tpu.memory_space<vmem>>, vector<128x512xf32>
    tpu.vector_store %arg15[%c0_26, %c0_27], %25 {strides = array<i32>} : memref<128x512xf32, #tpu.memory_space<vmem>>, vector<128x512xf32>,
    %c0_28 = arith.constant 0 : index
    %c0_29 = arith.constant 0 : index
    %c0_30 = arith.constant 0 : index
    %27 = vector.load %arg9[%c0_28, %c0_29, %c0_30] : memref<2x128x512xbf16, #tpu.memory_space<vmem>>, vector<1x128x512xbf16>
    %28 = vector.shape_cast %27 : vector<1x128x512xbf16> to vector<128x512xbf16>
    %cst_31 = arith.constant 0.000000e+00 : bf16
    %29 = vector.broadcast %cst_31 : bf16 to vector<16x128xbf16>
    %cst_32 = arith.constant 0.000000e+00 : f32
    %30 = vector.broadcast %cst_32 : f32 to vector<16x128xf32>
    %c0_i32 = arith.constant 0 : i32
    %c16_i32 = arith.constant 16 : i32
    %31 = arith.muli %c0_i32, %c16_i32 : i32
    %32 = tpu.assume_multiple %31, 16 : i32
    %33 = arith.index_cast %32 : i32 to index
    %c0_33 = arith.constant 0 : index
    %34 = vector.load %arg15[%33, %c0_33] : memref<128x512xf32, #tpu.memory_space<vmem>>, vector<16x512xf32>
    %cst_34 = arith.constant dense<0.000000e+00> : vector<16x512xf32>
    %35 = tpu.matmul %29, %28, %cst_34 {dimension_numbers = #tpu.dot_dimension_numbers<[1], [0], [0], [1], [0, 0, 1, 1], [], []>} : vector<16x128xbf16>, vector<128x512xbf16>, vector<16x512xf32> -> vector<16x512xf32>
    %36 = arith.addf %34, %35 : vector<16x512xf32>
    %37 = vector.extract_strided_slice %36 {offsets = [0, 0], sizes = [16, 128], strides = [1, 1]} : vector<16x512xf32> to vector<16x128xf32>
    %38 = arith.negf %37 : vector<16x128xf32>
    %39 = math.exp %38 : vector<16x128xf32>
    %cst_35 = arith.constant 1.000000e+00 : f32
    %40 = vector.broadcast %cst_35 : f32 to vector<16x128xf32>
    %41 = arith.addf %40, %39 : vector<16x128xf32>
    %42 = arith.divf %40, %41 : vector<16x128xf32>
    %43 = vector.extract_strided_slice %36 {offsets = [0, 128], sizes = [16, 128], strides = [1, 1]} : vector<16x512xf32> to vector<16x128xf32>
    %44 = arith.negf %43 : vector<16x128xf32>
    %45 = math.exp %44 : vector<16x128xf32>
    %cst_36 = arith.constant 1.000000e+00 : f32
    %46 = vector.broadcast %cst_36 : f32 to vector<16x128xf32>
    %47 = arith.addf %46, %45 : vector<16x128xf32>
    %48 = arith.divf %46, %47 : vector<16x128xf32>
    %49 = vector.extract_strided_slice %36 {offsets = [0, 256], sizes = [16, 128], strides = [1, 1]} : vector<16x512xf32> to vector<16x128xf32>
    %50 = math.tanh %49 : vector<16x128xf32>
    %51 = vector.extract_strided_slice %36 {offsets = [0, 384], sizes = [16, 128], strides = [1, 1]} : vector<16x512xf32> to vector<16x128xf32>
    %52 = arith.negf %51 : vector<16x128xf32>
    %53 = math.exp %52 : vector<16x128xf32>
    %cst_37 = arith.constant 1.000000e+00 : f32
    %54 = vector.broadcast %cst_37 : f32 to vector<16x128xf32>
    %55 = arith.addf %54, %53 : vector<16x128xf32>
    %56 = arith.divf %54, %55 : vector<16x128xf32>
    %57 = arith.mulf %48, %30 : vector<16x128xf32>
    %58 = arith.mulf %42, %50 : vector<16x128xf32>
    %59 = arith.addf %57, %58 : vector<16x128xf32>
    %60 = math.tanh %59 : vector<16x128xf32>
    %61 = arith.mulf %56, %60 : vector<16x128xf32>
    %62 = arith.truncf %61 : vector<16x128xf32> to vector<16x128xbf16>
    %63 = arith.index_cast %32 : i32 to index
    %c0_38 = arith.constant 0 : index
    %64 = vector.load %arg14[%63, %c0_38] : memref<128x128xbf16, #tpu.memory_space<vmem>>, vector<16x128xbf16>
    tpu.vector_store %arg14[%63, %c0_38], %62 {strides = array<i32>} : memref<128x128xbf16, #tpu.memory_space<vmem>>, vector<16x128xbf16>,
    %c1_i32 = arith.constant 1 : i32
    %c16_i32_39 = arith.constant 16 : i32
    %65 = arith.muli %c1_i32, %c16_i32_39 : i32
    %66 = tpu.assume_multiple %65, 16 : i32
    %67 = arith.index_cast %66 : i32 to index
    %c0_40 = arith.constant 0 : index
    %68 = vector.load %arg15[%67, %c0_40] : memref<128x512xf32, #tpu.memory_space<vmem>>, vector<16x512xf32>
    %cst_41 = arith.constant dense<0.000000e+00> : vector<16x512xf32>
    %69 = tpu.matmul %62, %28, %cst_41 {dimension_numbers = #tpu.dot_dimension_numbers<[1], [0], [0], [1], [0, 0, 1, 1], [], []>} : vector<16x128xbf16>, vector<128x512xbf16>, vector<16x512xf32> -> vector<16x512xf32>
    %70 = arith.addf %68, %69 : vector<16x512xf32>
    %71 = vector.extract_strided_slice %70 {offsets = [0, 0], sizes = [16, 128], strides = [1, 1]} : vector<16x512xf32> to vector<16x128xf32>
    %72 = arith.negf %71 : vector<16x128xf32>
    %73 = math.exp %72 : vector<16x128xf32>
    %cst_42 = arith.constant 1.000000e+00 : f32
    %74 = vector.broadcast %cst_42 : f32 to vector<16x128xf32>
    %75 = arith.addf %74, %73 : vector<16x128xf32>
    %76 = arith.divf %74, %75 : vector<16x128xf32>
    %77 = vector.extract_strided_slice %70 {offsets = [0, 128], sizes = [16, 128], strides = [1, 1]} : vector<16x512xf32> to vector<16x128xf32>
    %78 = arith.negf %77 : vector<16x128xf32>
    %79 = math.exp %78 : vector<16x128xf32>
    %cst_43 = arith.constant 1.000000e+00 : f32
    %80 = vector.broadcast %cst_43 : f32 to vector<16x128xf32>
    %81 = arith.addf %80, %79 : vector<16x128xf32>
    %82 = arith.divf %80, %81 : vector<16x128xf32>
    %83 = vector.extract_strided_slice %70 {offsets = [0, 256], sizes = [16, 128], strides = [1, 1]} : vector<16x512xf32> to vector<16x128xf32>
    %84 = math.tanh %83 : vector<16x128xf32>
    %85 = vector.extract_strided_slice %70 {offsets = [0, 384], sizes = [16, 128], strides = [1, 1]} : vector<16x512xf32> to vector<16x128xf32>
    %86 = arith.negf %85 : vector<16x128xf32>
    %87 = math.exp %86 : vector<16x128xf32>
    %cst_44 = arith.constant 1.000000e+00 : f32
    %88 = vector.broadcast %cst_44 : f32 to vector<16x128xf32>
    %89 = arith.addf %88, %87 : vector<16x128xf32>
    %90 = arith.divf %88, %89 : vector<16x128xf32>
    %91 = arith.mulf %82, %59 : vector<16x128xf32>
    %92 = arith.mulf %76, %84 : vector<16x128xf32>
    %93 = arith.addf %91, %92 : vector<16x128xf32>
    %94 = math.tanh %93 : vector<16x128xf32>
    %95 = arith.mulf %90, %94 : vector<16x128xf32>
    %96 = arith.truncf %95 : vector<16x128xf32> to vector<16x128xbf16>
    %97 = arith.index_cast %66 : i32 to index
    %c0_45 = arith.constant 0 : index
    %98 = vector.load %arg14[%97, %c0_45] : memref<128x128xbf16, #tpu.memory_space<vmem>>, vector<16x128xbf16>
    tpu.vector_store %arg14[%97, %c0_45], %96 {strides = array<i32>} : memref<128x128xbf16, #tpu.memory_space<vmem>>, vector<16x128xbf16>,
    %c2_i32 = arith.constant 2 : i32
    %c16_i32_46 = arith.constant 16 : i32
    %99 = arith.muli %c2_i32, %c16_i32_46 : i32
    %100 = tpu.assume_multiple %99, 16 : i32
    %101 = arith.index_cast %100 : i32 to index
    %c0_47 = arith.constant 0 : index
    %102 = vector.load %arg15[%101, %c0_47] : memref<128x512xf32, #tpu.memory_space<vmem>>, vector<16x512xf32>
    %cst_48 = arith.constant dense<0.000000e+00> : vector<16x512xf32>
    %103 = tpu.matmul %96, %28, %cst_48 {dimension_numbers = #tpu.dot_dimension_numbers<[1], [0], [0], [1], [0, 0, 1, 1], [], []>} : vector<16x128xbf16>, vector<128x512xbf16>, vector<16x512xf32> -> vector<16x512xf32>
    %104 = arith.addf %102, %103 : vector<16x512xf32>
    %105 = vector.extract_strided_slice %104 {offsets = [0, 0], sizes = [16, 128], strides = [1, 1]} : vector<16x512xf32> to vector<16x128xf32>
    %106 = arith.negf %105 : vector<16x128xf32>
    %107 = math.exp %106 : vector<16x128xf32>
    %cst_49 = arith.constant 1.000000e+00 : f32
    %108 = vector.broadcast %cst_49 : f32 to vector<16x128xf32>
    %109 = arith.addf %108, %107 : vector<16x128xf32>
    %110 = arith.divf %108, %109 : vector<16x128xf32>
    %111 = vector.extract_strided_slice %104 {offsets = [0, 128], sizes = [16, 128], strides = [1, 1]} : vector<16x512xf32> to vector<16x128xf32>
    %112 = arith.negf %111 : vector<16x128xf32>
    %113 = math.exp %112 : vector<16x128xf32>
    %cst_50 = arith.constant 1.000000e+00 : f32
    %114 = vector.broadcast %cst_50 : f32 to vector<16x128xf32>
    %115 = arith.addf %114, %113 : vector<16x128xf32>
    %116 = arith.divf %114, %115 : vector<16x128xf32>
    %117 = vector.extract_strided_slice %104 {offsets = [0, 256], sizes = [16, 128], strides = [1, 1]} : vector<16x512xf32> to vector<16x128xf32>
    %118 = math.tanh %117 : vector<16x128xf32>
    %119 = vector.extract_strided_slice %104 {offsets = [0, 384], sizes = [16, 128], strides = [1, 1]} : vector<16x512xf32> to vector<16x128xf32>
    %120 = arith.negf %119 : vector<16x128xf32>
    %121 = math.exp %120 : vector<16x128xf32>
    %cst_51 = arith.constant 1.000000e+00 : f32
    %122 = vector.broadcast %cst_51 : f32 to vector<16x128xf32>
    %123 = arith.addf %122, %121 : vector<16x128xf32>
    %124 = arith.divf %122, %123 : vector<16x128xf32>
    %125 = arith.mulf %116, %93 : vector<16x128xf32>
    %126 = arith.mulf %110, %118 : vector<16x128xf32>
    %127 = arith.addf %125, %126 : vector<16x128xf32>
    %128 = math.tanh %127 : vector<16x128xf32>
    %129 = arith.mulf %124, %128 : vector<16x128xf32>
    %130 = arith.truncf %129 : vector<16x128xf32> to vector<16x128xbf16>
    %131 = arith.index_cast %100 : i32 to index
    %c0_52 = arith.constant 0 : index
    %132 = vector.load %arg14[%131, %c0_52] : memref<128x128xbf16, #tpu.memory_space<vmem>>, vector<16x128xbf16>
    tpu.vector_store %arg14[%131, %c0_52], %130 {strides = array<i32>} : memref<128x128xbf16, #tpu.memory_space<vmem>>, vector<16x128xbf16>,
    %c3_i32 = arith.constant 3 : i32
    %c16_i32_53 = arith.constant 16 : i32
    %133 = arith.muli %c3_i32, %c16_i32_53 : i32
    %134 = tpu.assume_multiple %133, 16 : i32
    %135 = arith.index_cast %134 : i32 to index
    %c0_54 = arith.constant 0 : index
    %136 = vector.load %arg15[%135, %c0_54] : memref<128x512xf32, #tpu.memory_space<vmem>>, vector<16x512xf32>
    %cst_55 = arith.constant dense<0.000000e+00> : vector<16x512xf32>
    %137 = tpu.matmul %130, %28, %cst_55 {dimension_numbers = #tpu.dot_dimension_numbers<[1], [0], [0], [1], [0, 0, 1, 1], [], []>} : vector<16x128xbf16>, vector<128x512xbf16>, vector<16x512xf32> -> vector<16x512xf32>
    %138 = arith.addf %136, %137 : vector<16x512xf32>
    %139 = vector.extract_strided_slice %138 {offsets = [0, 0], sizes = [16, 128], strides = [1, 1]} : vector<16x512xf32> to vector<16x128xf32>
    %140 = arith.negf %139 : vector<16x128xf32>
    %141 = math.exp %140 : vector<16x128xf32>
    %cst_56 = arith.constant 1.000000e+00 : f32
    %142 = vector.broadcast %cst_56 : f32 to vector<16x128xf32>
    %143 = arith.addf %142, %141 : vector<16x128xf32>
    %144 = arith.divf %142, %143 : vector<16x128xf32>
    %145 = vector.extract_strided_slice %138 {offsets = [0, 128], sizes = [16, 128], strides = [1, 1]} : vector<16x512xf32> to vector<16x128xf32>
    %146 = arith.negf %145 : vector<16x128xf32>
    %147 = math.exp %146 : vector<16x128xf32>
    %cst_57 = arith.constant 1.000000e+00 : f32
    %148 = vector.broadcast %cst_57 : f32 to vector<16x128xf32>
    %149 = arith.addf %148, %147 : vector<16x128xf32>
    %150 = arith.divf %148, %149 : vector<16x128xf32>
    %151 = vector.extract_strided_slice %138 {offsets = [0, 256], sizes = [16, 128], strides = [1, 1]} : vector<16x512xf32> to vector<16x128xf32>
    %152 = math.tanh %151 : vector<16x128xf32>
    %153 = vector.extract_strided_slice %138 {offsets = [0, 384], sizes = [16, 128], strides = [1, 1]} : vector<16x512xf32> to vector<16x128xf32>
    %154 = arith.negf %153 : vector<16x128xf32>
    %155 = math.exp %154 : vector<16x128xf32>
    %cst_58 = arith.constant 1.000000e+00 : f32
    %156 = vector.broadcast %cst_58 : f32 to vector<16x128xf32>
    %157 = arith.addf %156, %155 : vector<16x128xf32>
    %158 = arith.divf %156, %157 : vector<16x128xf32>
    %159 = arith.mulf %150, %127 : vector<16x128xf32>
    %160 = arith.mulf %144, %152 : vector<16x128xf32>
    %161 = arith.addf %159, %160 : vector<16x128xf32>
    %162 = math.tanh %161 : vector<16x128xf32>
    %163 = arith.mulf %158, %162 : vector<16x128xf32>
    %164 = arith.truncf %163 : vector<16x128xf32> to vector<16x128xbf16>
    %165 = arith.index_cast %134 : i32 to index
    %c0_59 = arith.constant 0 : index
    %166 = vector.load %arg14[%165, %c0_59] : memref<128x128xbf16, #tpu.memory_space<vmem>>, vector<16x128xbf16>
    tpu.vector_store %arg14[%165, %c0_59], %164 {strides = array<i32>} : memref<128x128xbf16, #tpu.memory_space<vmem>>, vector<16x128xbf16>,
    %c4_i32 = arith.constant 4 : i32
    %c16_i32_60 = arith.constant 16 : i32
    %167 = arith.muli %c4_i32, %c16_i32_60 : i32
    %168 = tpu.assume_multiple %167, 16 : i32
    %169 = arith.index_cast %168 : i32 to index
    %c0_61 = arith.constant 0 : index
    %170 = vector.load %arg15[%169, %c0_61] : memref<128x512xf32, #tpu.memory_space<vmem>>, vector<16x512xf32>
    %cst_62 = arith.constant dense<0.000000e+00> : vector<16x512xf32>
    %171 = tpu.matmul %164, %28, %cst_62 {dimension_numbers = #tpu.dot_dimension_numbers<[1], [0], [0], [1], [0, 0, 1, 1], [], []>} : vector<16x128xbf16>, vector<128x512xbf16>, vector<16x512xf32> -> vector<16x512xf32>
    %172 = arith.addf %170, %171 : vector<16x512xf32>
    %173 = vector.extract_strided_slice %172 {offsets = [0, 0], sizes = [16, 128], strides = [1, 1]} : vector<16x512xf32> to vector<16x128xf32>
    %174 = arith.negf %173 : vector<16x128xf32>
    %175 = math.exp %174 : vector<16x128xf32>
    %cst_63 = arith.constant 1.000000e+00 : f32
    %176 = vector.broadcast %cst_63 : f32 to vector<16x128xf32>
    %177 = arith.addf %176, %175 : vector<16x128xf32>
    %178 = arith.divf %176, %177 : vector<16x128xf32>
    %179 = vector.extract_strided_slice %172 {offsets = [0, 128], sizes = [16, 128], strides = [1, 1]} : vector<16x512xf32> to vector<16x128xf32>
    %180 = arith.negf %179 : vector<16x128xf32>
    %181 = math.exp %180 : vector<16x128xf32>
    %cst_64 = arith.constant 1.000000e+00 : f32
    %182 = vector.broadcast %cst_64 : f32 to vector<16x128xf32>
    %183 = arith.addf %182, %181 : vector<16x128xf32>
    %184 = arith.divf %182, %183 : vector<16x128xf32>
    %185 = vector.extract_strided_slice %172 {offsets = [0, 256], sizes = [16, 128], strides = [1, 1]} : vector<16x512xf32> to vector<16x128xf32>
    %186 = math.tanh %185 : vector<16x128xf32>
    %187 = vector.extract_strided_slice %172 {offsets = [0, 384], sizes = [16, 128], strides = [1, 1]} : vector<16x512xf32> to vector<16x128xf32>
    %188 = arith.negf %187 : vector<16x128xf32>
    %189 = math.exp %188 : vector<16x128xf32>
    %cst_65 = arith.constant 1.000000e+00 : f32
    %190 = vector.broadcast %cst_65 : f32 to vector<16x128xf32>
    %191 = arith.addf %190, %189 : vector<16x128xf32>
    %192 = arith.divf %190, %191 : vector<16x128xf32>
    %193 = arith.mulf %184, %161 : vector<16x128xf32>
    %194 = arith.mulf %178, %186 : vector<16x128xf32>
    %195 = arith.addf %193, %194 : vector<16x128xf32>
    %196 = math.tanh %195 : vector<16x128xf32>
    %197 = arith.mulf %192, %196 : vector<16x128xf32>
    %198 = arith.truncf %197 : vector<16x128xf32> to vector<16x128xbf16>
    %199 = arith.index_cast %168 : i32 to index
    %c0_66 = arith.constant 0 : index
    %200 = vector.load %arg14[%199, %c0_66] : memref<128x128xbf16, #tpu.memory_space<vmem>>, vector<16x128xbf16>
    tpu.vector_store %arg14[%199, %c0_66], %198 {strides = array<i32>} : memref<128x128xbf16, #tpu.memory_space<vmem>>, vector<16x128xbf16>,
    %c5_i32 = arith.constant 5 : i32
    %c16_i32_67 = arith.constant 16 : i32
    %201 = arith.muli %c5_i32, %c16_i32_67 : i32
    %202 = tpu.assume_multiple %201, 16 : i32
    %203 = arith.index_cast %202 : i32 to index
    %c0_68 = arith.constant 0 : index
    %204 = vector.load %arg15[%203, %c0_68] : memref<128x512xf32, #tpu.memory_space<vmem>>, vector<16x512xf32>
    %cst_69 = arith.constant dense<0.000000e+00> : vector<16x512xf32>
    %205 = tpu.matmul %198, %28, %cst_69 {dimension_numbers = #tpu.dot_dimension_numbers<[1], [0], [0], [1], [0, 0, 1, 1], [], []>} : vector<16x128xbf16>, vector<128x512xbf16>, vector<16x512xf32> -> vector<16x512xf32>
    %206 = arith.addf %204, %205 : vector<16x512xf32>
    %207 = vector.extract_strided_slice %206 {offsets = [0, 0], sizes = [16, 128], strides = [1, 1]} : vector<16x512xf32> to vector<16x128xf32>
    %208 = arith.negf %207 : vector<16x128xf32>
    %209 = math.exp %208 : vector<16x128xf32>
    %cst_70 = arith.constant 1.000000e+00 : f32
    %210 = vector.broadcast %cst_70 : f32 to vector<16x128xf32>
    %211 = arith.addf %210, %209 : vector<16x128xf32>
    %212 = arith.divf %210, %211 : vector<16x128xf32>
    %213 = vector.extract_strided_slice %206 {offsets = [0, 128], sizes = [16, 128], strides = [1, 1]} : vector<16x512xf32> to vector<16x128xf32>
    %214 = arith.negf %213 : vector<16x128xf32>
    %215 = math.exp %214 : vector<16x128xf32>
    %cst_71 = arith.constant 1.000000e+00 : f32
    %216 = vector.broadcast %cst_71 : f32 to vector<16x128xf32>
    %217 = arith.addf %216, %215 : vector<16x128xf32>
    %218 = arith.divf %216, %217 : vector<16x128xf32>
    %219 = vector.extract_strided_slice %206 {offsets = [0, 256], sizes = [16, 128], strides = [1, 1]} : vector<16x512xf32> to vector<16x128xf32>
    %220 = math.tanh %219 : vector<16x128xf32>
    %221 = vector.extract_strided_slice %206 {offsets = [0, 384], sizes = [16, 128], strides = [1, 1]} : vector<16x512xf32> to vector<16x128xf32>
    %222 = arith.negf %221 : vector<16x128xf32>
    %223 = math.exp %222 : vector<16x128xf32>
    %cst_72 = arith.constant 1.000000e+00 : f32
    %224 = vector.broadcast %cst_72 : f32 to vector<16x128xf32>
    %225 = arith.addf %224, %223 : vector<16x128xf32>
    %226 = arith.divf %224, %225 : vector<16x128xf32>
    %227 = arith.mulf %218, %195 : vector<16x128xf32>
    %228 = arith.mulf %212, %220 : vector<16x128xf32>
    %229 = arith.addf %227, %228 : vector<16x128xf32>
    %230 = math.tanh %229 : vector<16x128xf32>
    %231 = arith.mulf %226, %230 : vector<16x128xf32>
    %232 = arith.truncf %231 : vector<16x128xf32> to vector<16x128xbf16>
    %233 = arith.index_cast %202 : i32 to index
    %c0_73 = arith.constant 0 : index
    %234 = vector.load %arg14[%233, %c0_73] : memref<128x128xbf16, #tpu.memory_space<vmem>>, vector<16x128xbf16>
    tpu.vector_store %arg14[%233, %c0_73], %232 {strides = array<i32>} : memref<128x128xbf16, #tpu.memory_space<vmem>>, vector<16x128xbf16>,
    %c6_i32 = arith.constant 6 : i32
    %c16_i32_74 = arith.constant 16 : i32
    %235 = arith.muli %c6_i32, %c16_i32_74 : i32
    %236 = tpu.assume_multiple %235, 16 : i32
    %237 = arith.index_cast %236 : i32 to index
    %c0_75 = arith.constant 0 : index
    %238 = vector.load %arg15[%237, %c0_75] : memref<128x512xf32, #tpu.memory_space<vmem>>, vector<16x512xf32>
    %cst_76 = arith.constant dense<0.000000e+00> : vector<16x512xf32>
    %239 = tpu.matmul %232, %28, %cst_76 {dimension_numbers = #tpu.dot_dimension_numbers<[1], [0], [0], [1], [0, 0, 1, 1], [], []>} : vector<16x128xbf16>, vector<128x512xbf16>, vector<16x512xf32> -> vector<16x512xf32>
    %240 = arith.addf %238, %239 : vector<16x512xf32>
    %241 = vector.extract_strided_slice %240 {offsets = [0, 0], sizes = [16, 128], strides = [1, 1]} : vector<16x512xf32> to vector<16x128xf32>
    %242 = arith.negf %241 : vector<16x128xf32>
    %243 = math.exp %242 : vector<16x128xf32>
    %cst_77 = arith.constant 1.000000e+00 : f32
    %244 = vector.broadcast %cst_77 : f32 to vector<16x128xf32>
    %245 = arith.addf %244, %243 : vector<16x128xf32>
    %246 = arith.divf %244, %245 : vector<16x128xf32>
    %247 = vector.extract_strided_slice %240 {offsets = [0, 128], sizes = [16, 128], strides = [1, 1]} : vector<16x512xf32> to vector<16x128xf32>
    %248 = arith.negf %247 : vector<16x128xf32>
    %249 = math.exp %248 : vector<16x128xf32>
    %cst_78 = arith.constant 1.000000e+00 : f32
    %250 = vector.broadcast %cst_78 : f32 to vector<16x128xf32>
    %251 = arith.addf %250, %249 : vector<16x128xf32>
    %252 = arith.divf %250, %251 : vector<16x128xf32>
    %253 = vector.extract_strided_slice %240 {offsets = [0, 256], sizes = [16, 128], strides = [1, 1]} : vector<16x512xf32> to vector<16x128xf32>
    %254 = math.tanh %253 : vector<16x128xf32>
    %255 = vector.extract_strided_slice %240 {offsets = [0, 384], sizes = [16, 128], strides = [1, 1]} : vector<16x512xf32> to vector<16x128xf32>
    %256 = arith.negf %255 : vector<16x128xf32>
    %257 = math.exp %256 : vector<16x128xf32>
    %cst_79 = arith.constant 1.000000e+00 : f32
    %258 = vector.broadcast %cst_79 : f32 to vector<16x128xf32>
    %259 = arith.addf %258, %257 : vector<16x128xf32>
    %260 = arith.divf %258, %259 : vector<16x128xf32>
    %261 = arith.mulf %252, %229 : vector<16x128xf32>
    %262 = arith.mulf %246, %254 : vector<16x128xf32>
    %263 = arith.addf %261, %262 : vector<16x128xf32>
    %264 = math.tanh %263 : vector<16x128xf32>
    %265 = arith.mulf %260, %264 : vector<16x128xf32>
    %266 = arith.truncf %265 : vector<16x128xf32> to vector<16x128xbf16>
    %267 = arith.index_cast %236 : i32 to index
    %c0_80 = arith.constant 0 : index
    %268 = vector.load %arg14[%267, %c0_80] : memref<128x128xbf16, #tpu.memory_space<vmem>>, vector<16x128xbf16>
    tpu.vector_store %arg14[%267, %c0_80], %266 {strides = array<i32>} : memref<128x128xbf16, #tpu.memory_space<vmem>>, vector<16x128xbf16>,
    %c7_i32 = arith.constant 7 : i32
    %c16_i32_81 = arith.constant 16 : i32
    %269 = arith.muli %c7_i32, %c16_i32_81 : i32
    %270 = tpu.assume_multiple %269, 16 : i32
    %271 = arith.index_cast %270 : i32 to index
    %c0_82 = arith.constant 0 : index
    %272 = vector.load %arg15[%271, %c0_82] : memref<128x512xf32, #tpu.memory_space<vmem>>, vector<16x512xf32>
    %cst_83 = arith.constant dense<0.000000e+00> : vector<16x512xf32>
    %273 = tpu.matmul %266, %28, %cst_83 {dimension_numbers = #tpu.dot_dimension_numbers<[1], [0], [0], [1], [0, 0, 1, 1], [], []>} : vector<16x128xbf16>, vector<128x512xbf16>, vector<16x512xf32> -> vector<16x512xf32>
    %274 = arith.addf %272, %273 : vector<16x512xf32>
    %275 = vector.extract_strided_slice %274 {offsets = [0, 0], sizes = [16, 128], strides = [1, 1]} : vector<16x512xf32> to vector<16x128xf32>
    %276 = arith.negf %275 : vector<16x128xf32>
    %277 = math.exp %276 : vector<16x128xf32>
    %cst_84 = arith.constant 1.000000e+00 : f32
    %278 = vector.broadcast %cst_84 : f32 to vector<16x128xf32>
    %279 = arith.addf %278, %277 : vector<16x128xf32>
    %280 = arith.divf %278, %279 : vector<16x128xf32>
    %281 = vector.extract_strided_slice %274 {offsets = [0, 128], sizes = [16, 128], strides = [1, 1]} : vector<16x512xf32> to vector<16x128xf32>
    %282 = arith.negf %281 : vector<16x128xf32>
    %283 = math.exp %282 : vector<16x128xf32>
    %cst_85 = arith.constant 1.000000e+00 : f32
    %284 = vector.broadcast %cst_85 : f32 to vector<16x128xf32>
    %285 = arith.addf %284, %283 : vector<16x128xf32>
    %286 = arith.divf %284, %285 : vector<16x128xf32>
    %287 = vector.extract_strided_slice %274 {offsets = [0, 256], sizes = [16, 128], strides = [1, 1]} : vector<16x512xf32> to vector<16x128xf32>
    %288 = math.tanh %287 : vector<16x128xf32>
    %289 = vector.extract_strided_slice %274 {offsets = [0, 384], sizes = [16, 128], strides = [1, 1]} : vector<16x512xf32> to vector<16x128xf32>
    %290 = arith.negf %289 : vector<16x128xf32>
    %291 = math.exp %290 : vector<16x128xf32>
    %cst_86 = arith.constant 1.000000e+00 : f32
    %292 = vector.broadcast %cst_86 : f32 to vector<16x128xf32>
    %293 = arith.addf %292, %291 : vector<16x128xf32>
    %294 = arith.divf %292, %293 : vector<16x128xf32>
    %295 = arith.mulf %286, %263 : vector<16x128xf32>
    %296 = arith.mulf %280, %288 : vector<16x128xf32>
    %297 = arith.addf %295, %296 : vector<16x128xf32>
    %298 = math.tanh %297 : vector<16x128xf32>
    %299 = arith.mulf %294, %298 : vector<16x128xf32>
    %300 = arith.truncf %299 : vector<16x128xf32> to vector<16x128xbf16>
    %301 = arith.index_cast %270 : i32 to index
    %c0_87 = arith.constant 0 : index
    %302 = vector.load %arg14[%301, %c0_87] : memref<128x128xbf16, #tpu.memory_space<vmem>>, vector<16x128xbf16>
    tpu.vector_store %arg14[%301, %c0_87], %300 {strides = array<i32>} : memref<128x128xbf16, #tpu.memory_space<vmem>>, vector<16x128xbf16>,
    %c8_i32 = arith.constant 8 : i32
    %c0_88 = arith.constant 0 : index
    %c0_89 = arith.constant 0 : index
    %303 = vector.load %arg14[%c0_88, %c0_89] : memref<128x128xbf16, #tpu.memory_space<vmem>>, vector<128x128xbf16>
    %c1 = arith.constant 1 : index
    %c0_90 = arith.constant 0 : index
    %c0_91 = arith.constant 0 : index
    %304 = vector.load %arg8[%c1, %c0_90, %c0_91] : memref<2x128x512xbf16, #tpu.memory_space<vmem>>, vector<1x128x512xbf16>
    %305 = vector.shape_cast %304 : vector<1x128x512xbf16> to vector<128x512xbf16>
    %cst_92 = arith.constant dense<0.000000e+00> : vector<128x512xf32>
    %306 = tpu.matmul %303, %305, %cst_92 {dimension_numbers = #tpu.dot_dimension_numbers<[1], [0], [0], [1], [0, 0, 1, 1], [], []>} : vector<128x128xbf16>, vector<128x512xbf16>, vector<128x512xf32> -> vector<128x512xf32>
    %c1_93 = arith.constant 1 : index
    %c0_94 = arith.constant 0 : index
    %c0_95 = arith.constant 0 : index
    %307 = vector.load %arg10[%c1_93, %c0_94, %c0_95] : memref<2x1x512xf32, #tpu.memory_space<vmem>>, vector<1x1x512xf32>
    %308 = vector.shape_cast %307 : vector<1x1x512xf32> to vector<1x512xf32>
    %309 = vector.broadcast %308 : vector<1x512xf32> to vector<128x512xf32>
    %310 = arith.addf %306, %309 : vector<128x512xf32>
    %c0_96 = arith.constant 0 : index
    %c0_97 = arith.constant 0 : index
    %311 = vector.load %arg15[%c0_96, %c0_97] : memref<128x512xf32, #tpu.memory_space<vmem>>, vector<128x512xf32>
    tpu.vector_store %arg15[%c0_96, %c0_97], %310 {strides = array<i32>} : memref<128x512xf32, #tpu.memory_space<vmem>>, vector<128x512xf32>,
    %c1_98 = arith.constant 1 : index
    %c0_99 = arith.constant 0 : index
    %c0_100 = arith.constant 0 : index
    %312 = vector.load %arg9[%c1_98, %c0_99, %c0_100] : memref<2x128x512xbf16, #tpu.memory_space<vmem>>, vector<1x128x512xbf16>
    %313 = vector.shape_cast %312 : vector<1x128x512xbf16> to vector<128x512xbf16>
    %cst_101 = arith.constant 0.000000e+00 : bf16
    %314 = vector.broadcast %cst_101 : bf16 to vector<16x128xbf16>
    %cst_102 = arith.constant 0.000000e+00 : f32
    %315 = vector.broadcast %cst_102 : f32 to vector<16x128xf32>
    %c0_i32_103 = arith.constant 0 : i32
    %c16_i32_104 = arith.constant 16 : i32
    %316 = arith.muli %c0_i32_103, %c16_i32_104 : i32
    %317 = tpu.assume_multiple %316, 16 : i32
    %318 = arith.index_cast %317 : i32 to index
    %c0_105 = arith.constant 0 : index
    %319 = vector.load %arg15[%318, %c0_105] : memref<128x512xf32, #tpu.memory_space<vmem>>, vector<16x512xf32>
    %cst_106 = arith.constant dense<0.000000e+00> : vector<16x512xf32>
    %320 = tpu.matmul %314, %313, %cst_106 {dimension_numbers = #tpu.dot_dimension_numbers<[1], [0], [0], [1], [0, 0, 1, 1], [], []>} : vector<16x128xbf16>, vector<128x512xbf16>, vector<16x512xf32> -> vector<16x512xf32>
    %321 = arith.addf %319, %320 : vector<16x512xf32>
    %322 = vector.extract_strided_slice %321 {offsets = [0, 0], sizes = [16, 128], strides = [1, 1]} : vector<16x512xf32> to vector<16x128xf32>
    %323 = arith.negf %322 : vector<16x128xf32>
    %324 = math.exp %323 : vector<16x128xf32>
    %cst_107 = arith.constant 1.000000e+00 : f32
    %325 = vector.broadcast %cst_107 : f32 to vector<16x128xf32>
    %326 = arith.addf %325, %324 : vector<16x128xf32>
    %327 = arith.divf %325, %326 : vector<16x128xf32>
    %328 = vector.extract_strided_slice %321 {offsets = [0, 128], sizes = [16, 128], strides = [1, 1]} : vector<16x512xf32> to vector<16x128xf32>
    %329 = arith.negf %328 : vector<16x128xf32>
    %330 = math.exp %329 : vector<16x128xf32>
    %cst_108 = arith.constant 1.000000e+00 : f32
    %331 = vector.broadcast %cst_108 : f32 to vector<16x128xf32>
    %332 = arith.addf %331, %330 : vector<16x128xf32>
    %333 = arith.divf %331, %332 : vector<16x128xf32>
    %334 = vector.extract_strided_slice %321 {offsets = [0, 256], sizes = [16, 128], strides = [1, 1]} : vector<16x512xf32> to vector<16x128xf32>
    %335 = math.tanh %334 : vector<16x128xf32>
    %336 = vector.extract_strided_slice %321 {offsets = [0, 384], sizes = [16, 128], strides = [1, 1]} : vector<16x512xf32> to vector<16x128xf32>
    %337 = arith.negf %336 : vector<16x128xf32>
    %338 = math.exp %337 : vector<16x128xf32>
    %cst_109 = arith.constant 1.000000e+00 : f32
    %339 = vector.broadcast %cst_109 : f32 to vector<16x128xf32>
    %340 = arith.addf %339, %338 : vector<16x128xf32>
    %341 = arith.divf %339, %340 : vector<16x128xf32>
    %342 = arith.mulf %333, %315 : vector<16x128xf32>
    %343 = arith.mulf %327, %335 : vector<16x128xf32>
    %344 = arith.addf %342, %343 : vector<16x128xf32>
    %345 = math.tanh %344 : vector<16x128xf32>
    %346 = arith.mulf %341, %345 : vector<16x128xf32>
    %347 = arith.truncf %346 : vector<16x128xf32> to vector<16x128xbf16>
    %348 = arith.index_cast %317 : i32 to index
    %c0_110 = arith.constant 0 : index
    %349 = vector.load %arg14[%348, %c0_110] : memref<128x128xbf16, #tpu.memory_space<vmem>>, vector<16x128xbf16>
    tpu.vector_store %arg14[%348, %c0_110], %347 {strides = array<i32>} : memref<128x128xbf16, #tpu.memory_space<vmem>>, vector<16x128xbf16>,
    %c1_i32_111 = arith.constant 1 : i32
    %c16_i32_112 = arith.constant 16 : i32
    %350 = arith.muli %c1_i32_111, %c16_i32_112 : i32
    %351 = tpu.assume_multiple %350, 16 : i32
    %352 = arith.index_cast %351 : i32 to index
    %c0_113 = arith.constant 0 : index
    %353 = vector.load %arg15[%352, %c0_113] : memref<128x512xf32, #tpu.memory_space<vmem>>, vector<16x512xf32>
    %cst_114 = arith.constant dense<0.000000e+00> : vector<16x512xf32>
    %354 = tpu.matmul %347, %313, %cst_114 {dimension_numbers = #tpu.dot_dimension_numbers<[1], [0], [0], [1], [0, 0, 1, 1], [], []>} : vector<16x128xbf16>, vector<128x512xbf16>, vector<16x512xf32> -> vector<16x512xf32>
    %355 = arith.addf %353, %354 : vector<16x512xf32>
    %356 = vector.extract_strided_slice %355 {offsets = [0, 0], sizes = [16, 128], strides = [1, 1]} : vector<16x512xf32> to vector<16x128xf32>
    %357 = arith.negf %356 : vector<16x128xf32>
    %358 = math.exp %357 : vector<16x128xf32>
    %cst_115 = arith.constant 1.000000e+00 : f32
    %359 = vector.broadcast %cst_115 : f32 to vector<16x128xf32>
    %360 = arith.addf %359, %358 : vector<16x128xf32>
    %361 = arith.divf %359, %360 : vector<16x128xf32>
    %362 = vector.extract_strided_slice %355 {offsets = [0, 128], sizes = [16, 128], strides = [1, 1]} : vector<16x512xf32> to vector<16x128xf32>
    %363 = arith.negf %362 : vector<16x128xf32>
    %364 = math.exp %363 : vector<16x128xf32>
    %cst_116 = arith.constant 1.000000e+00 : f32
    %365 = vector.broadcast %cst_116 : f32 to vector<16x128xf32>
    %366 = arith.addf %365, %364 : vector<16x128xf32>
    %367 = arith.divf %365, %366 : vector<16x128xf32>
    %368 = vector.extract_strided_slice %355 {offsets = [0, 256], sizes = [16, 128], strides = [1, 1]} : vector<16x512xf32> to vector<16x128xf32>
    %369 = math.tanh %368 : vector<16x128xf32>
    %370 = vector.extract_strided_slice %355 {offsets = [0, 384], sizes = [16, 128], strides = [1, 1]} : vector<16x512xf32> to vector<16x128xf32>
    %371 = arith.negf %370 : vector<16x128xf32>
    %372 = math.exp %371 : vector<16x128xf32>
    %cst_117 = arith.constant 1.000000e+00 : f32
    %373 = vector.broadcast %cst_117 : f32 to vector<16x128xf32>
    %374 = arith.addf %373, %372 : vector<16x128xf32>
    %375 = arith.divf %373, %374 : vector<16x128xf32>
    %376 = arith.mulf %367, %344 : vector<16x128xf32>
    %377 = arith.mulf %361, %369 : vector<16x128xf32>
    %378 = arith.addf %376, %377 : vector<16x128xf32>
    %379 = math.tanh %378 : vector<16x128xf32>
    %380 = arith.mulf %375, %379 : vector<16x128xf32>
    %381 = arith.truncf %380 : vector<16x128xf32> to vector<16x128xbf16>
    %382 = arith.index_cast %351 : i32 to index
    %c0_118 = arith.constant 0 : index
    %383 = vector.load %arg14[%382, %c0_118] : memref<128x128xbf16, #tpu.memory_space<vmem>>, vector<16x128xbf16>
    tpu.vector_store %arg14[%382, %c0_118], %381 {strides = array<i32>} : memref<128x128xbf16, #tpu.memory_space<vmem>>, vector<16x128xbf16>,
    %c2_i32_119 = arith.constant 2 : i32
    %c16_i32_120 = arith.constant 16 : i32
    %384 = arith.muli %c2_i32_119, %c16_i32_120 : i32
    %385 = tpu.assume_multiple %384, 16 : i32
    %386 = arith.index_cast %385 : i32 to index
    %c0_121 = arith.constant 0 : index
    %387 = vector.load %arg15[%386, %c0_121] : memref<128x512xf32, #tpu.memory_space<vmem>>, vector<16x512xf32>
    %cst_122 = arith.constant dense<0.000000e+00> : vector<16x512xf32>
    %388 = tpu.matmul %381, %313, %cst_122 {dimension_numbers = #tpu.dot_dimension_numbers<[1], [0], [0], [1], [0, 0, 1, 1], [], []>} : vector<16x128xbf16>, vector<128x512xbf16>, vector<16x512xf32> -> vector<16x512xf32>
    %389 = arith.addf %387, %388 : vector<16x512xf32>
    %390 = vector.extract_strided_slice %389 {offsets = [0, 0], sizes = [16, 128], strides = [1, 1]} : vector<16x512xf32> to vector<16x128xf32>
    %391 = arith.negf %390 : vector<16x128xf32>
    %392 = math.exp %391 : vector<16x128xf32>
    %cst_123 = arith.constant 1.000000e+00 : f32
    %393 = vector.broadcast %cst_123 : f32 to vector<16x128xf32>
    %394 = arith.addf %393, %392 : vector<16x128xf32>
    %395 = arith.divf %393, %394 : vector<16x128xf32>
    %396 = vector.extract_strided_slice %389 {offsets = [0, 128], sizes = [16, 128], strides = [1, 1]} : vector<16x512xf32> to vector<16x128xf32>
    %397 = arith.negf %396 : vector<16x128xf32>
    %398 = math.exp %397 : vector<16x128xf32>
    %cst_124 = arith.constant 1.000000e+00 : f32
    %399 = vector.broadcast %cst_124 : f32 to vector<16x128xf32>
    %400 = arith.addf %399, %398 : vector<16x128xf32>
    %401 = arith.divf %399, %400 : vector<16x128xf32>
    %402 = vector.extract_strided_slice %389 {offsets = [0, 256], sizes = [16, 128], strides = [1, 1]} : vector<16x512xf32> to vector<16x128xf32>
    %403 = math.tanh %402 : vector<16x128xf32>
    %404 = vector.extract_strided_slice %389 {offsets = [0, 384], sizes = [16, 128], strides = [1, 1]} : vector<16x512xf32> to vector<16x128xf32>
    %405 = arith.negf %404 : vector<16x128xf32>
    %406 = math.exp %405 : vector<16x128xf32>
    %cst_125 = arith.constant 1.000000e+00 : f32
    %407 = vector.broadcast %cst_125 : f32 to vector<16x128xf32>
    %408 = arith.addf %407, %406 : vector<16x128xf32>
    %409 = arith.divf %407, %408 : vector<16x128xf32>
    %410 = arith.mulf %401, %378 : vector<16x128xf32>
    %411 = arith.mulf %395, %403 : vector<16x128xf32>
    %412 = arith.addf %410, %411 : vector<16x128xf32>
    %413 = math.tanh %412 : vector<16x128xf32>
    %414 = arith.mulf %409, %413 : vector<16x128xf32>
    %415 = arith.truncf %414 : vector<16x128xf32> to vector<16x128xbf16>
    %416 = arith.index_cast %385 : i32 to index
    %c0_126 = arith.constant 0 : index
    %417 = vector.load %arg14[%416, %c0_126] : memref<128x128xbf16, #tpu.memory_space<vmem>>, vector<16x128xbf16>
    tpu.vector_store %arg14[%416, %c0_126], %415 {strides = array<i32>} : memref<128x128xbf16, #tpu.memory_space<vmem>>, vector<16x128xbf16>,
    %c3_i32_127 = arith.constant 3 : i32
    %c16_i32_128 = arith.constant 16 : i32
    %418 = arith.muli %c3_i32_127, %c16_i32_128 : i32
    %419 = tpu.assume_multiple %418, 16 : i32
    %420 = arith.index_cast %419 : i32 to index
    %c0_129 = arith.constant 0 : index
    %421 = vector.load %arg15[%420, %c0_129] : memref<128x512xf32, #tpu.memory_space<vmem>>, vector<16x512xf32>
    %cst_130 = arith.constant dense<0.000000e+00> : vector<16x512xf32>
    %422 = tpu.matmul %415, %313, %cst_130 {dimension_numbers = #tpu.dot_dimension_numbers<[1], [0], [0], [1], [0, 0, 1, 1], [], []>} : vector<16x128xbf16>, vector<128x512xbf16>, vector<16x512xf32> -> vector<16x512xf32>
    %423 = arith.addf %421, %422 : vector<16x512xf32>
    %424 = vector.extract_strided_slice %423 {offsets = [0, 0], sizes = [16, 128], strides = [1, 1]} : vector<16x512xf32> to vector<16x128xf32>
    %425 = arith.negf %424 : vector<16x128xf32>
    %426 = math.exp %425 : vector<16x128xf32>
    %cst_131 = arith.constant 1.000000e+00 : f32
    %427 = vector.broadcast %cst_131 : f32 to vector<16x128xf32>
    %428 = arith.addf %427, %426 : vector<16x128xf32>
    %429 = arith.divf %427, %428 : vector<16x128xf32>
    %430 = vector.extract_strided_slice %423 {offsets = [0, 128], sizes = [16, 128], strides = [1, 1]} : vector<16x512xf32> to vector<16x128xf32>
    %431 = arith.negf %430 : vector<16x128xf32>
    %432 = math.exp %431 : vector<16x128xf32>
    %cst_132 = arith.constant 1.000000e+00 : f32
    %433 = vector.broadcast %cst_132 : f32 to vector<16x128xf32>
    %434 = arith.addf %433, %432 : vector<16x128xf32>
    %435 = arith.divf %433, %434 : vector<16x128xf32>
    %436 = vector.extract_strided_slice %423 {offsets = [0, 256], sizes = [16, 128], strides = [1, 1]} : vector<16x512xf32> to vector<16x128xf32>
    %437 = math.tanh %436 : vector<16x128xf32>
    %438 = vector.extract_strided_slice %423 {offsets = [0, 384], sizes = [16, 128], strides = [1, 1]} : vector<16x512xf32> to vector<16x128xf32>
    %439 = arith.negf %438 : vector<16x128xf32>
    %440 = math.exp %439 : vector<16x128xf32>
    %cst_133 = arith.constant 1.000000e+00 : f32
    %441 = vector.broadcast %cst_133 : f32 to vector<16x128xf32>
    %442 = arith.addf %441, %440 : vector<16x128xf32>
    %443 = arith.divf %441, %442 : vector<16x128xf32>
    %444 = arith.mulf %435, %412 : vector<16x128xf32>
    %445 = arith.mulf %429, %437 : vector<16x128xf32>
    %446 = arith.addf %444, %445 : vector<16x128xf32>
    %447 = math.tanh %446 : vector<16x128xf32>
    %448 = arith.mulf %443, %447 : vector<16x128xf32>
    %449 = arith.truncf %448 : vector<16x128xf32> to vector<16x128xbf16>
    %450 = arith.index_cast %419 : i32 to index
    %c0_134 = arith.constant 0 : index
    %451 = vector.load %arg14[%450, %c0_134] : memref<128x128xbf16, #tpu.memory_space<vmem>>, vector<16x128xbf16>
    tpu.vector_store %arg14[%450, %c0_134], %449 {strides = array<i32>} : memref<128x128xbf16, #tpu.memory_space<vmem>>, vector<16x128xbf16>,
    %c4_i32_135 = arith.constant 4 : i32
    %c16_i32_136 = arith.constant 16 : i32
    %452 = arith.muli %c4_i32_135, %c16_i32_136 : i32
    %453 = tpu.assume_multiple %452, 16 : i32
    %454 = arith.index_cast %453 : i32 to index
    %c0_137 = arith.constant 0 : index
    %455 = vector.load %arg15[%454, %c0_137] : memref<128x512xf32, #tpu.memory_space<vmem>>, vector<16x512xf32>
    %cst_138 = arith.constant dense<0.000000e+00> : vector<16x512xf32>
    %456 = tpu.matmul %449, %313, %cst_138 {dimension_numbers = #tpu.dot_dimension_numbers<[1], [0], [0], [1], [0, 0, 1, 1], [], []>} : vector<16x128xbf16>, vector<128x512xbf16>, vector<16x512xf32> -> vector<16x512xf32>
    %457 = arith.addf %455, %456 : vector<16x512xf32>
    %458 = vector.extract_strided_slice %457 {offsets = [0, 0], sizes = [16, 128], strides = [1, 1]} : vector<16x512xf32> to vector<16x128xf32>
    %459 = arith.negf %458 : vector<16x128xf32>
    %460 = math.exp %459 : vector<16x128xf32>
    %cst_139 = arith.constant 1.000000e+00 : f32
    %461 = vector.broadcast %cst_139 : f32 to vector<16x128xf32>
    %462 = arith.addf %461, %460 : vector<16x128xf32>
    %463 = arith.divf %461, %462 : vector<16x128xf32>
    %464 = vector.extract_strided_slice %457 {offsets = [0, 128], sizes = [16, 128], strides = [1, 1]} : vector<16x512xf32> to vector<16x128xf32>
    %465 = arith.negf %464 : vector<16x128xf32>
    %466 = math.exp %465 : vector<16x128xf32>
    %cst_140 = arith.constant 1.000000e+00 : f32
    %467 = vector.broadcast %cst_140 : f32 to vector<16x128xf32>
    %468 = arith.addf %467, %466 : vector<16x128xf32>
    %469 = arith.divf %467, %468 : vector<16x128xf32>
    %470 = vector.extract_strided_slice %457 {offsets = [0, 256], sizes = [16, 128], strides = [1, 1]} : vector<16x512xf32> to vector<16x128xf32>
    %471 = math.tanh %470 : vector<16x128xf32>
    %472 = vector.extract_strided_slice %457 {offsets = [0, 384], sizes = [16, 128], strides = [1, 1]} : vector<16x512xf32> to vector<16x128xf32>
    %473 = arith.negf %472 : vector<16x128xf32>
    %474 = math.exp %473 : vector<16x128xf32>
    %cst_141 = arith.constant 1.000000e+00 : f32
    %475 = vector.broadcast %cst_141 : f32 to vector<16x128xf32>
    %476 = arith.addf %475, %474 : vector<16x128xf32>
    %477 = arith.divf %475, %476 : vector<16x128xf32>
    %478 = arith.mulf %469, %446 : vector<16x128xf32>
    %479 = arith.mulf %463, %471 : vector<16x128xf32>
    %480 = arith.addf %478, %479 : vector<16x128xf32>
    %481 = math.tanh %480 : vector<16x128xf32>
    %482 = arith.mulf %477, %481 : vector<16x128xf32>
    %483 = arith.truncf %482 : vector<16x128xf32> to vector<16x128xbf16>
    %484 = arith.index_cast %453 : i32 to index
    %c0_142 = arith.constant 0 : index
    %485 = vector.load %arg14[%484, %c0_142] : memref<128x128xbf16, #tpu.memory_space<vmem>>, vector<16x128xbf16>
    tpu.vector_store %arg14[%484, %c0_142], %483 {strides = array<i32>} : memref<128x128xbf16, #tpu.memory_space<vmem>>, vector<16x128xbf16>,
    %c5_i32_143 = arith.constant 5 : i32
    %c16_i32_144 = arith.constant 16 : i32
    %486 = arith.muli %c5_i32_143, %c16_i32_144 : i32
    %487 = tpu.assume_multiple %486, 16 : i32
    %488 = arith.index_cast %487 : i32 to index
    %c0_145 = arith.constant 0 : index
    %489 = vector.load %arg15[%488, %c0_145] : memref<128x512xf32, #tpu.memory_space<vmem>>, vector<16x512xf32>
    %cst_146 = arith.constant dense<0.000000e+00> : vector<16x512xf32>
    %490 = tpu.matmul %483, %313, %cst_146 {dimension_numbers = #tpu.dot_dimension_numbers<[1], [0], [0], [1], [0, 0, 1, 1], [], []>} : vector<16x128xbf16>, vector<128x512xbf16>, vector<16x512xf32> -> vector<16x512xf32>
    %491 = arith.addf %489, %490 : vector<16x512xf32>
    %492 = vector.extract_strided_slice %491 {offsets = [0, 0], sizes = [16, 128], strides = [1, 1]} : vector<16x512xf32> to vector<16x128xf32>
    %493 = arith.negf %492 : vector<16x128xf32>
    %494 = math.exp %493 : vector<16x128xf32>
    %cst_147 = arith.constant 1.000000e+00 : f32
    %495 = vector.broadcast %cst_147 : f32 to vector<16x128xf32>
    %496 = arith.addf %495, %494 : vector<16x128xf32>
    %497 = arith.divf %495, %496 : vector<16x128xf32>
    %498 = vector.extract_strided_slice %491 {offsets = [0, 128], sizes = [16, 128], strides = [1, 1]} : vector<16x512xf32> to vector<16x128xf32>
    %499 = arith.negf %498 : vector<16x128xf32>
    %500 = math.exp %499 : vector<16x128xf32>
    %cst_148 = arith.constant 1.000000e+00 : f32
    %501 = vector.broadcast %cst_148 : f32 to vector<16x128xf32>
    %502 = arith.addf %501, %500 : vector<16x128xf32>
    %503 = arith.divf %501, %502 : vector<16x128xf32>
    %504 = vector.extract_strided_slice %491 {offsets = [0, 256], sizes = [16, 128], strides = [1, 1]} : vector<16x512xf32> to vector<16x128xf32>
    %505 = math.tanh %504 : vector<16x128xf32>
    %506 = vector.extract_strided_slice %491 {offsets = [0, 384], sizes = [16, 128], strides = [1, 1]} : vector<16x512xf32> to vector<16x128xf32>
    %507 = arith.negf %506 : vector<16x128xf32>
    %508 = math.exp %507 : vector<16x128xf32>
    %cst_149 = arith.constant 1.000000e+00 : f32
    %509 = vector.broadcast %cst_149 : f32 to vector<16x128xf32>
    %510 = arith.addf %509, %508 : vector<16x128xf32>
    %511 = arith.divf %509, %510 : vector<16x128xf32>
    %512 = arith.mulf %503, %480 : vector<16x128xf32>
    %513 = arith.mulf %497, %505 : vector<16x128xf32>
    %514 = arith.addf %512, %513 : vector<16x128xf32>
    %515 = math.tanh %514 : vector<16x128xf32>
    %516 = arith.mulf %511, %515 : vector<16x128xf32>
    %517 = arith.truncf %516 : vector<16x128xf32> to vector<16x128xbf16>
    %518 = arith.index_cast %487 : i32 to index
    %c0_150 = arith.constant 0 : index
    %519 = vector.load %arg14[%518, %c0_150] : memref<128x128xbf16, #tpu.memory_space<vmem>>, vector<16x128xbf16>
    tpu.vector_store %arg14[%518, %c0_150], %517 {strides = array<i32>} : memref<128x128xbf16, #tpu.memory_space<vmem>>, vector<16x128xbf16>,
    %c6_i32_151 = arith.constant 6 : i32
    %c16_i32_152 = arith.constant 16 : i32
    %520 = arith.muli %c6_i32_151, %c16_i32_152 : i32
    %521 = tpu.assume_multiple %520, 16 : i32
    %522 = arith.index_cast %521 : i32 to index
    %c0_153 = arith.constant 0 : index
    %523 = vector.load %arg15[%522, %c0_153] : memref<128x512xf32, #tpu.memory_space<vmem>>, vector<16x512xf32>
    %cst_154 = arith.constant dense<0.000000e+00> : vector<16x512xf32>
    %524 = tpu.matmul %517, %313, %cst_154 {dimension_numbers = #tpu.dot_dimension_numbers<[1], [0], [0], [1], [0, 0, 1, 1], [], []>} : vector<16x128xbf16>, vector<128x512xbf16>, vector<16x512xf32> -> vector<16x512xf32>
    %525 = arith.addf %523, %524 : vector<16x512xf32>
    %526 = vector.extract_strided_slice %525 {offsets = [0, 0], sizes = [16, 128], strides = [1, 1]} : vector<16x512xf32> to vector<16x128xf32>
    %527 = arith.negf %526 : vector<16x128xf32>
    %528 = math.exp %527 : vector<16x128xf32>
    %cst_155 = arith.constant 1.000000e+00 : f32
    %529 = vector.broadcast %cst_155 : f32 to vector<16x128xf32>
    %530 = arith.addf %529, %528 : vector<16x128xf32>
    %531 = arith.divf %529, %530 : vector<16x128xf32>
    %532 = vector.extract_strided_slice %525 {offsets = [0, 128], sizes = [16, 128], strides = [1, 1]} : vector<16x512xf32> to vector<16x128xf32>
    %533 = arith.negf %532 : vector<16x128xf32>
    %534 = math.exp %533 : vector<16x128xf32>
    %cst_156 = arith.constant 1.000000e+00 : f32
    %535 = vector.broadcast %cst_156 : f32 to vector<16x128xf32>
    %536 = arith.addf %535, %534 : vector<16x128xf32>
    %537 = arith.divf %535, %536 : vector<16x128xf32>
    %538 = vector.extract_strided_slice %525 {offsets = [0, 256], sizes = [16, 128], strides = [1, 1]} : vector<16x512xf32> to vector<16x128xf32>
    %539 = math.tanh %538 : vector<16x128xf32>
    %540 = vector.extract_strided_slice %525 {offsets = [0, 384], sizes = [16, 128], strides = [1, 1]} : vector<16x512xf32> to vector<16x128xf32>
    %541 = arith.negf %540 : vector<16x128xf32>
    %542 = math.exp %541 : vector<16x128xf32>
    %cst_157 = arith.constant 1.000000e+00 : f32
    %543 = vector.broadcast %cst_157 : f32 to vector<16x128xf32>
    %544 = arith.addf %543, %542 : vector<16x128xf32>
    %545 = arith.divf %543, %544 : vector<16x128xf32>
    %546 = arith.mulf %537, %514 : vector<16x128xf32>
    %547 = arith.mulf %531, %539 : vector<16x128xf32>
    %548 = arith.addf %546, %547 : vector<16x128xf32>
    %549 = math.tanh %548 : vector<16x128xf32>
    %550 = arith.mulf %545, %549 : vector<16x128xf32>
    %551 = arith.truncf %550 : vector<16x128xf32> to vector<16x128xbf16>
    %552 = arith.index_cast %521 : i32 to index
    %c0_158 = arith.constant 0 : index
    %553 = vector.load %arg14[%552, %c0_158] : memref<128x128xbf16, #tpu.memory_space<vmem>>, vector<16x128xbf16>
    tpu.vector_store %arg14[%552, %c0_158], %551 {strides = array<i32>} : memref<128x128xbf16, #tpu.memory_space<vmem>>, vector<16x128xbf16>,
    %c7_i32_159 = arith.constant 7 : i32
    %c16_i32_160 = arith.constant 16 : i32
    %554 = arith.muli %c7_i32_159, %c16_i32_160 : i32
    %555 = tpu.assume_multiple %554, 16 : i32
    %556 = arith.index_cast %555 : i32 to index
    %c0_161 = arith.constant 0 : index
    %557 = vector.load %arg15[%556, %c0_161] : memref<128x512xf32, #tpu.memory_space<vmem>>, vector<16x512xf32>
    %cst_162 = arith.constant dense<0.000000e+00> : vector<16x512xf32>
    %558 = tpu.matmul %551, %313, %cst_162 {dimension_numbers = #tpu.dot_dimension_numbers<[1], [0], [0], [1], [0, 0, 1, 1], [], []>} : vector<16x128xbf16>, vector<128x512xbf16>, vector<16x512xf32> -> vector<16x512xf32>
    %559 = arith.addf %557, %558 : vector<16x512xf32>
    %560 = vector.extract_strided_slice %559 {offsets = [0, 0], sizes = [16, 128], strides = [1, 1]} : vector<16x512xf32> to vector<16x128xf32>
    %561 = arith.negf %560 : vector<16x128xf32>
    %562 = math.exp %561 : vector<16x128xf32>
    %cst_163 = arith.constant 1.000000e+00 : f32
    %563 = vector.broadcast %cst_163 : f32 to vector<16x128xf32>
    %564 = arith.addf %563, %562 : vector<16x128xf32>
    %565 = arith.divf %563, %564 : vector<16x128xf32>
    %566 = vector.extract_strided_slice %559 {offsets = [0, 128], sizes = [16, 128], strides = [1, 1]} : vector<16x512xf32> to vector<16x128xf32>
    %567 = arith.negf %566 : vector<16x128xf32>
    %568 = math.exp %567 : vector<16x128xf32>
    %cst_164 = arith.constant 1.000000e+00 : f32
    %569 = vector.broadcast %cst_164 : f32 to vector<16x128xf32>
    %570 = arith.addf %569, %568 : vector<16x128xf32>
    %571 = arith.divf %569, %570 : vector<16x128xf32>
    %572 = vector.extract_strided_slice %559 {offsets = [0, 256], sizes = [16, 128], strides = [1, 1]} : vector<16x512xf32> to vector<16x128xf32>
    %573 = math.tanh %572 : vector<16x128xf32>
    %574 = vector.extract_strided_slice %559 {offsets = [0, 384], sizes = [16, 128], strides = [1, 1]} : vector<16x512xf32> to vector<16x128xf32>
    %575 = arith.negf %574 : vector<16x128xf32>
    %576 = math.exp %575 : vector<16x128xf32>
    %cst_165 = arith.constant 1.000000e+00 : f32
    %577 = vector.broadcast %cst_165 : f32 to vector<16x128xf32>
    %578 = arith.addf %577, %576 : vector<16x128xf32>
    %579 = arith.divf %577, %578 : vector<16x128xf32>
    %580 = arith.mulf %571, %548 : vector<16x128xf32>
    %581 = arith.mulf %565, %573 : vector<16x128xf32>
    %582 = arith.addf %580, %581 : vector<16x128xf32>
    %583 = math.tanh %582 : vector<16x128xf32>
    %584 = arith.mulf %579, %583 : vector<16x128xf32>
    %585 = arith.truncf %584 : vector<16x128xf32> to vector<16x128xbf16>
    %586 = arith.index_cast %555 : i32 to index
    %c0_166 = arith.constant 0 : index
    %587 = vector.load %arg14[%586, %c0_166] : memref<128x128xbf16, #tpu.memory_space<vmem>>, vector<16x128xbf16>
    tpu.vector_store %arg14[%586, %c0_166], %585 {strides = array<i32>} : memref<128x128xbf16, #tpu.memory_space<vmem>>, vector<16x128xbf16>,
    %c8_i32_167 = arith.constant 8 : i32
    %c0_168 = arith.constant 0 : index
    %c0_169 = arith.constant 0 : index
    %588 = vector.load %arg14[%c0_168, %c0_169] : memref<128x128xbf16, #tpu.memory_space<vmem>>, vector<128x128xbf16>
    %c0_170 = arith.constant 0 : index
    %c0_171 = arith.constant 0 : index
    %589 = vector.load %arg11[%c0_170, %c0_171] : memref<128x128xbf16, #tpu.memory_space<vmem>>, vector<128x128xbf16>
    %cst_172 = arith.constant dense<0.000000e+00> : vector<128x128xf32>
    %590 = tpu.matmul %588, %589, %cst_172 {dimension_numbers = #tpu.dot_dimension_numbers<[1], [0], [0], [1], [0, 0, 1, 1], [], []>} : vector<128x128xbf16>, vector<128x128xbf16>, vector<128x128xf32> -> vector<128x128xf32>
    %c0_173 = arith.constant 0 : index
    %c0_174 = arith.constant 0 : index
    %591 = vector.load %arg12[%c0_173, %c0_174] : memref<1x128xf32, #tpu.memory_space<vmem>>, vector<1x128xf32>
    %592 = vector.broadcast %591 : vector<1x128xf32> to vector<128x128xf32>
    %593 = arith.addf %590, %592 : vector<128x128xf32>
    %c0_175 = arith.constant 0 : index
    %c0_176 = arith.constant 0 : index
    %594 = vector.load %arg13[%c0_175, %c0_176] : memref<128x128xf32, #tpu.memory_space<vmem>>, vector<128x128xf32>
    tpu.vector_store %arg13[%c0_175, %c0_176], %593 {strides = array<i32>} : memref<128x128xf32, #tpu.memory_space<vmem>>, vector<128x128xf32>,
    return
  }
  func.func @transform_0(%arg0: i32) -> (i32, i32) {
    %c0_i32 = arith.constant 0 : i32
    %c0_i32_0 = arith.constant 0 : i32
    return %arg0, %c0_i32 : i32, i32
  }
  func.func @transform_1(%arg0: i32) -> (i32, i32) {
    %c0_i32 = arith.constant 0 : i32
    %c0_i32_0 = arith.constant 0 : i32
    return %arg0, %c0_i32 : i32, i32
  }
  func.func @transform_2(%arg0: i32) -> (i32, i32) {
    %c0_i32 = arith.constant 0 : i32
    %c0_i32_0 = arith.constant 0 : i32
    %c0_i32_1 = arith.constant 0 : i32
    return %c0_i32, %c0_i32_0 : i32, i32
  }
  func.func @transform_3(%arg0: i32) -> (i32, i32) {
    %c0_i32 = arith.constant 0 : i32
    %c0_i32_0 = arith.constant 0 : i32
    %c0_i32_1 = arith.constant 0 : i32
    return %c0_i32, %c0_i32_0 : i32, i32
  }
  func.func @transform_4(%arg0: i32) -> (i32, i32) {
    %c0_i32 = arith.constant 0 : i32
    %c0_i32_0 = arith.constant 0 : i32
    %c0_i32_1 = arith.constant 0 : i32
    return %c0_i32, %c0_i32_0 : i32, i32
  }
  func.func @transform_5(%arg0: i32) -> (i32, i32) {
    %c0_i32 = arith.constant 0 : i32
    %c0_i32_0 = arith.constant 0 : i32
    %c0_i32_1 = arith.constant 0 : i32
    return %c0_i32, %c0_i32_0 : i32, i32
  }
  func.func @transform_6(%arg0: i32) -> (i32, i32) {
    %c0_i32 = arith.constant 0 : i32
    %c0_i32_0 = arith.constant 0 : i32
    %c0_i32_1 = arith.constant 0 : i32
    return %c0_i32, %c0_i32_0 : i32, i32
  }
  func.func @transform_7(%arg0: i32) -> (i32, i32, i32) {
    %c0_i32 = arith.constant 0 : i32
    %c0_i32_0 = arith.constant 0 : i32
    %c0_i32_1 = arith.constant 0 : i32
    %c0_i32_2 = arith.constant 0 : i32
    return %c0_i32, %c0_i32_0, %c0_i32_1 : i32, i32, i32
  }
  func.func @transform_8(%arg0: i32) -> (i32, i32, i32) {
    %c0_i32 = arith.constant 0 : i32
    %c0_i32_0 = arith.constant 0 : i32
    %c0_i32_1 = arith.constant 0 : i32
    %c0_i32_2 = arith.constant 0 : i32
    return %c0_i32, %c0_i32_0, %c0_i32_1 : i32, i32, i32
  }
  func.func @transform_9(%arg0: i32) -> (i32, i32, i32) {
    %c0_i32 = arith.constant 0 : i32
    %c0_i32_0 = arith.constant 0 : i32
    %c0_i32_1 = arith.constant 0 : i32
    %c0_i32_2 = arith.constant 0 : i32
    return %c0_i32, %c0_i32_0, %c0_i32_1 : i32, i32, i32
  }
  func.func @transform_10(%arg0: i32) -> (i32, i32) {
    %c0_i32 = arith.constant 0 : i32
    %c0_i32_0 = arith.constant 0 : i32
    %c0_i32_1 = arith.constant 0 : i32
    return %c0_i32, %c0_i32_0 : i32, i32
  }
  func.func @transform_11(%arg0: i32) -> (i32, i32) {
    %c0_i32 = arith.constant 0 : i32
    %c0_i32_0 = arith.constant 0 : i32
    %c0_i32_1 = arith.constant 0 : i32
    return %c0_i32, %c0_i32_0 : i32, i32
  }
  func.func @transform_12(%arg0: i32) -> (i32, i32) {
    %c0_i32 = arith.constant 0 : i32
    %c0_i32_0 = arith.constant 0 : i32
    return %arg0, %c0_i32 : i32, i32
  }
}

</mosaic_0001>

<bundles_post_ra>
// kernel: m5net_forward.1
= control target key start
LH: loop header
LB: loop body
LE: loop exit
PB: predicated region body
PF: predicated region fallthrough
CT: control target
= control target key end

     0   :  { %s7373_s21 = smov 0   ;;  %s9486_s0 = inlined_call_operand.vmem [shape: bf16[256,384], index: 0, kind: input, shape index: {}]   ;;  %s9487_s1 = inlined_call_operand.vmem [shape: bf16[256,5], index: 1, kind: input, shape index: {}]   ;;  %s9488_s2 = inlined_call_operand.vmem [shape: bf16[384,128], index: 2, kind: input, shape index: {}]   ;;  %s9489_s3 = inlined_call_operand.vmem [shape: bf16[128,128], index: 3, kind: input, shape index: {}]   ;;  %s9490_s4 = inlined_call_operand.vmem [shape: bf16[5,128], index: 4, kind: input, shape index: {}]   ;;  %s9491_s5 = inlined_call_operand.vmem [shape: f32[1,128], index: 5, kind: input, shape index: {}]   ;;  %s9492_s6 = inlined_call_operand.vmem [shape: f32[1,128], index: 6, kind: input, shape index: {}]   ;;  %s9493_s7 = inlined_call_operand.vmem [shape: bf16[2,128,512], index: 7, kind: input, shape index: {}]   ;;  %s9494_s8 = inlined_call_operand.vmem [shape: bf16[2,128,512], index: 8, kind: input, shape index: {}]   ;;  %s9495_s9 = inlined_call_operand.vmem [shape: f32[2,1,512], index: 9, kind: input, shape index: {}]   ;;  %s9496_s10 = inlined_call_operand.vmem [shape: bf16[128,128], index: 10, kind: input, shape index: {}]   ;;  %s9497_s11 = inlined_call_operand.vmem [shape: f32[1,128], index: 11, kind: input, shape index: {}]   ;;  %s9498_s12 = inlined_call_operand.vmem [shape: f32[256,128], index: 12, kind: output, shape index: {}]  }
   0x1 LB: > { %s5531_s22 = sadd.s32 4294967295, %s7304_s21   ;;  %p5535_p0 = scmp.ge.s32.totalorder %s7304_s21, 1  ;;  %s7304_s21 = sphi %s7373_s21, %s22_s21  }
   0x2   : > { %p375_p1 = scmp.lt.s32.totalorder %s7304_s21, 3 }
   0x4   : > { %p376_p2 = pnand %p5535_p0, %p375_p1 }
   0x5   : > { %v459_v0 = vld [vmem:[%s9490_s4] sm:$0x7] (!%p376_p2)  ;;  %vm532_vm0 = vcmask (!%p376_p2), 1041408   ;;  %vm533_vm1 = vcmask (!%p376_p2), 1042432   ;;  %s5536_s25 = sshll.u32 (!%p376_p2), %s5531_s22, 4  ;;  %v7306_v1 = vmov (!%p376_p2), 65535  }
   0x6   : > { %379 = sbr.rel (%p376_p2) target bundleno = 4993 (0x1381), region = 68  ;;  %v534_v2 = vsel (!%p376_p2), %vm532_vm0, 4294967295, %v7306_v1  ;;  %p424_p3 = scmp.lt.s32.totalorder (!%p376_p2), %s5536_s25, 31  ;;  %v6458_v3 = vld [vmem:[%s9489_s3] sm:$0xff] (!%p376_p2)   ;;  %v6459_v5 = vld [vmem:[%s9489_s3 + $0x8] sm:$0xff] (!%p376_p2)   ;;  %vm507_vm2 = vcmask (!%p376_p2), 39936  }
   0x7   : > { %v535_v4 = vsel (!%p376_p2), %vm533_vm1, %v534_v2, 0  ;;  %6055 = vmatprep.subr.bf16.mxu0 (!%p376_p2), %v6458_v3  ;;  %v6460_v7 = vld [vmem:[%s9489_s3 + $0x10] sm:$0xff] (!%p376_p2)   ;;  %v6461_v9 = vld [vmem:[%s9489_s3 + $0x18] sm:$0xff] (!%p376_p2)   ;;  %v6462_v12 = vld [vmem:[%s9489_s3 + $0x20] sm:$0xff] (!%p376_p2)  }
   0x8   : > { %v537_v6 = vand.u32 (!%p376_p2), %v535_v4, %v459_v0  ;;  %6056 = vmatpush3.bf16.msra.mxu0 (!%p376_p2), %v6458_v3  ;;  %v6463_v15 = vld [vmem:[%s9489_s3 + $0x28] sm:$0xff] (!%p376_p2)   ;;  %v6464_v19 = vld [vmem:[%s9489_s3 + $0x30] sm:$0xff] (!%p376_p2)   ;;  %v6465_v20 = vld [vmem:[%s9489_s3 + $0x38] sm:$0xff] (!%p376_p2)  }
   0x9   : > { %6057 = vmatprep.subr.bf16.mxu0 (!%p376_p2), %v6459_v5  ;;  %v6466_v21 = vld [vmem:[%s9488_s2 + $0x40] sm:$0xff] (!%p376_p2)   ;;  %v6471_v23 = vld [vmem:[%s9488_s2 + $0x88] sm:$0xff] (!%p376_p2)   ;;  %v6474_v24 = vld [vmem:[%s9488_s2 + $0x90] sm:$0xff] (!%p376_p2)  }
   0xa   : > { %6037 = vmatprep.subr.bf16.mxu1 (!%p376_p2), %v537_v6  ;;  %v6468_v22 = vld [vmem:[%s9488_s2 + $0x80] sm:$0xff] (!%p376_p2)   ;;  %v6477_v25 = vld [vmem:[%s9488_s2 + $0x98] sm:$0xff] (!%p376_p2)   ;;  %v6483_v27 = vld [vmem:[%s9488_s2 + $0xa8] sm:$0xff] (!%p376_p2)  }
   0xb   : > { %6038 = vmatpush3.bf16.msra.mxu1 (!%p376_p2), %v537_v6  ;;  %v6480_v26 = vld [vmem:[%s9488_s2 + $0xa0] sm:$0xff] (!%p376_p2)   ;;  %v6486_v28 = vld [vmem:[%s9488_s2 + $0xb0] sm:$0xff] (!%p376_p2)   ;;  %v6489_v29 = vld [vmem:[%s9488_s2 + $0xb8] sm:$0xff] (!%p376_p2)  }
   0xc   : > { %6058 = vmatpush3.bf16.msra.mxu0 (!%p376_p2), %v6459_v5  ;;  %6087 = vmatprep.subr.bf16.mxu1 (!%p376_p2), %v6468_v22  ;;  %v7466_v39 = vld [vmem:[%s9491_s5] ss:$0 sm:$0xff] (!%p376_p2)  ;;  %v6469_v50 = vld [vmem:[%s9488_s2 + $0x48] sm:$0xff] (!%p376_p2)   ;;  %v6472_v58 = vld [vmem:[%s9488_s2 + $0x50] sm:$0xff] (!%p376_p2)  }
   0xd   : > { %s9506_s25 = smov (!%p424_p3, %s5536_s25), 31  ;;  %6059 = vmatprep.subr.bf16.mxu0 %v6460_v7  ;;  %v6467_v49 = vld [vmem:[%s9488_s2] sm:$0xff]   ;;  %v6470_v54 = vld [vmem:[%s9488_s2 + $0x8] sm:$0xff]   ;;  %v6473_v63 = vld [vmem:[%s9488_s2 + $0x10] sm:$0xff]  }
   0xe   : > { %s5539_s30 = sshll.u32 %s9506_s25, 2  ;;  %s6439_s23 = smul.u32 12, %s9506_s25  ;;  %v6475_v0 = vld [vmem:[%s9488_s2 + $0x58] sm:$0xff]  }
   0xf   : > { %s434_s17 = scalar_lea.vmem %s9487_s1, %s5539_s30  ;;  %v6476_v4 = vld [vmem:[%s9488_s2 + $0x18] sm:$0xff]   ;;  %s5541_s30 = sshll.u32 %s9506_s25, 3 }
  0x10   : > { %v6450_v8 = vld [vmem:[%s434_s17] sm:$0xff]   ;;  %v6451_v10 = vld [vmem:[%s434_s17 + $0x8] sm:$0xff]   ;;  %v6452_v11 = vld [vmem:[%s434_s17 + $0x10] sm:$0xff]   ;;  %6060 = vmatpush3.bf16.msra.mxu0 %v6460_v7  ;;  %s7419_s29 = scalar_lea.vmem %s9486_s0, %s6439_s23 }
  0x11   : > { %6039 = vmatprep.mubr.msk.bf16.mxu1 %vm507_vm2, %v6450_v8  ;;  %v6453_v13 = vld [vmem:[%s434_s17 + $0x18] sm:$0xff]   ;;  %6061 = vmatprep.subr.bf16.mxu0 %v6461_v9  ;;  %v6454_v14 = vld [vmem:[%s434_s17 + $0x20] sm:$0xff]   ;;  %v6455_v16 = vld [vmem:[%s434_s17 + $0x28] sm:$0xff]  }
  0x12   : > { %6040 = vmatmul.mubr.msk.bf16.vlgmr.msra.gmra.mrb[0].mxu1 %vm507_vm2, %v6451_v10  ;;  %v6456_v17 = vld [vmem:[%s434_s17 + $0x30] sm:$0xff]   ;;  %v6457_v18 = vld [vmem:[%s434_s17 + $0x38] sm:$0xff]   ;;  %v6494_v31 = vld [vmem:[%s7419_s29 + $0x20] ss:$12 sps:$4 sm:$0xff]   ;;  %s9448_s17 = scalar_lea.vmem %s9498_s12, %s5541_s30 }
  0x13   : > { %6043 = vmatprep.mubr.msk.bf16.mxu1 %vm507_vm2, %v6452_v11  ;;  %6088 = vmatpush3.bf16.msra.mxu1 %v6468_v22  ;;  %v6493_v30 = vld [vmem:[%s7419_s29 + $0x8] ss:$12 sps:$4 sm:$0xff]   ;;  %v6501_v32 = vld [vmem:[%s7419_s29 + $0x38] ss:$12 sps:$4 sm:$0xff]   ;;  %v6502_v33 = vld [vmem:[%s7419_s29 + $0x50] ss:$12 sps:$4 sm:$0xff]  }
  0x14   : > { %6062 = vmatpush3.bf16.msra.mxu0 %v6461_v9  ;;  %6089 = vmatprep.subr.bf16.mxu1 %v6471_v23  ;;  %v6509_v34 = vld [vmem:[%s7419_s29 + $0x68] ss:$12 sps:$4 sm:$0xff]   ;;  %v6510_v35 = vld [vmem:[%s7419_s29 + $0x80] ss:$12 sps:$4 sm:$0xff]   ;;  %v6517_v36 = vld [vmem:[%s7419_s29 + $0x98] ss:$12 sps:$4 sm:$0xff]  }
  0x15   : > { %6063 = vmatprep.subr.bf16.mxu0 %v6462_v12  ;;  %v6518_v37 = vld [vmem:[%s7419_s29 + $0xb0] ss:$12 sps:$4 sm:$0xff]   ;;  %v6478_v8 = vld [vmem:[%s9488_s2 + $0x60] sm:$0xff]  }
  0x16   : > { %v6484_v22 = vld [vmem:[%s9488_s2 + $0x70] sm:$0xff]  }
  0x17   : > { %6090 = vmatpush3.bf16.msra.mxu1 %v6471_v23 }
  0x18   : > { %6064 = vmatpush3.bf16.msra.mxu0 %v6462_v12  ;;  %6091 = vmatprep.subr.bf16.mxu1 %v6474_v24 }
  0x19   : > { %6065 = vmatprep.subr.bf16.mxu0 %v6463_v15 }
  0x1a   : > { %6044 = vmatmul.mubr.msk.bf16.gmra.mrb[4].mxu1 %vm507_vm2, %v6453_v13  ;;  %v6479_v13 = vld [vmem:[%s9488_s2 + $0x20] sm:$0xff]  }
  0x1b   : > { %6047 = vmatprep.mubr.msk.bf16.mxu1 %vm507_vm2, %v6454_v14  ;;  %6092 = vmatpush3.bf16.msra.mxu1 %v6474_v24  ;;  %v6481_v14 = vld [vmem:[%s9488_s2 + $0x68] sm:$0xff]  }
  0x1c   : > { %6066 = vmatpush3.bf16.msra.mxu0 %v6463_v15  ;;  %6093 = vmatprep.subr.bf16.mxu1 %v6477_v25 }
  0x1d   : > { %6067 = vmatprep.subr.bf16.mxu0 %v6464_v19 }
  0x1f   : > { %6094 = vmatpush3.bf16.msra.mxu1 %v6477_v25 }
  0x20   : > { %6068 = vmatpush3.bf16.msra.mxu0 %v6464_v19  ;;  %6095 = vmatprep.subr.bf16.mxu1 %v6480_v26 }
  0x21   : > { %6069 = vmatprep.subr.bf16.mxu0 %v6465_v20 }
  0x22   : > { %6048 = vmatmul.mubr.msk.bf16.gmra.mrb[8].mxu1 %vm507_vm2, %v6455_v16 }
  0x23   : > { %6051 = vmatprep.mubr.msk.bf16.mxu1 %vm507_vm2, %v6456_v17  ;;  %6096 = vmatpush3.bf16.msra.mxu1 %v6480_v26 }
  0x24   : > { %6070 = vmatpush3.bf16.msra.mxu0 %v6465_v20  ;;  %6097 = vmatprep.subr.bf16.mxu1 %v6483_v27 }
  0x25   : > { %5941 = vmatprep.subr.bf16.mxu0 %v6466_v21 }
  0x27   : > { %6098 = vmatpush3.bf16.msra.mxu1 %v6483_v27  ;;  %v6485_v27 = vld [vmem:[%s9488_s2 + $0x30] sm:$0xff]  }
  0x28   : > { %6099 = vmatprep.subr.bf16.mxu1 %v6486_v28 }
  0x2a   : > { %6052 = vmatmul.mubr.msk.bf16.gmra.mrb[12].mxu1 %vm507_vm2, %v6457_v18  ;;  %v6482_v18 = vld [vmem:[%s9488_s2 + $0x28] sm:$0xff]  }
  0x2b   : > { %6100 = vmatpush3.bf16.msra.mxu1 %v6486_v28  ;;  %6103 = vmatprep.mubr.bf16.mxu1 %v6493_v30  ;;  %v6492_v28 = vld [vmem:[%s7419_s29 + $0x4] ss:$12 sps:$4 sm:$0xff]   ;;  %v6488_v30 = vld [vmem:[%s9488_s2 + $0x38] sm:$0xff]  }
  0x2c   : > { %6101 = vmatprep.subr.bf16.mxu1 %v6489_v29 }
  0x2f   : > { %6102 = vmatpush3.bf16.msra.mxu1 %v6489_v29  ;;  %v6487_v29 = vld [vmem:[%s9488_s2 + $0x78] sm:$0xff]  }
  0x32   : > { %6104 = vmatmul.mubr.bf16.vlgmr.msra.gmra.mrb[16].mxu1 %v6494_v31  ;;  %v6524_v31 = vld [vmem:[%s9493_s7 + $0xc] ss:$16 sps:$4 sm:$0xff]  }
  0x33   : > { %6107 = vmatprep.mubr.bf16.mxu1 %v6501_v32  ;;  %v6490_v32 = vld [vmem:[%s7419_s29] ss:$12 sps:$4 sm:$0xff]  }
  0x3a   : > { %6108 = vmatmul.mubr.bf16.gmra.mrb[20].mxu1 %v6502_v33  ;;  %v6495_v33 = vld [vmem:[%s7419_s29 + $0x1c] ss:$12 sps:$4 sm:$0xff]  }
  0x3b   : > { %6111 = vmatprep.mubr.bf16.mxu1 %v6509_v34  ;;  %v6522_v34 = vld [vmem:[%s9493_s7 + $0x8] ss:$16 sps:$4 sm:$0xff]  }
  0x42   : > { %6112 = vmatmul.mubr.bf16.gmra.mrb[24].mxu1 %v6510_v35  ;;  %v6497_v35 = vld [vmem:[%s7419_s29 + $0x18] ss:$12 sps:$4 sm:$0xff]  }
  0x43   : > { %6115 = vmatprep.mubr.bf16.mxu1 %v6517_v36  ;;  %v6498_v36 = vld [vmem:[%s7419_s29 + $0x34] ss:$12 sps:$4 sm:$0xff]  }
  0x4a   : > { %6116 = vmatmul.mubr.bf16.gmra.mrb[28].mxu1 %v6518_v37  ;;  %v6500_v37 = vld [vmem:[%s7419_s29 + $0x30] ss:$12 sps:$4 sm:$0xff]  }
  0xe5   : > { %v6041_v38 = vpop.f32.mrb[0].mxu1 }
  0xe6   : > { %v573_v40 = vpop.f32.mrb[1].mxu1  ;;  %v582_v42 = vadd.f32 %v6041_v38, %v7466_v39  ;;  %v6503_v38 = vld [vmem:[%s7419_s29 + $0x4c] ss:$12 sps:$4 sm:$0xff]  }
  0xe7   : > { %v6042_v41 = vpop.f32.mrb[2].mxu1  ;;  %v574_v45 = vadd.f32 %v7466_v39, %v573_v40  ;;  %v6506_v40 = vld [vmem:[%s7419_s29 + $0x64] ss:$12 sps:$4 sm:$0xff]  }
  0xe8   : > { %v585_v43 = vadd.f32 %v6042_v41, %v7466_v39  ;;  %v576_v44 = vpop.f32.mrb[3].mxu1  ;;  %v6508_v41 = vld [vmem:[%s7419_s29 + $0x60] ss:$12 sps:$4 sm:$0xff]  }
  0xe9   : > { %v577_v46 = vadd.f32 %v7466_v39, %v576_v44  ;;  %v6514_v44 = vld [vmem:[%s7419_s29 + $0x94] ss:$12 sps:$4 sm:$0xff]  }
  0xea   : > { %v717_v47 = vpack.c.bf16 %v585_v43, %v582_v42  ;;  %v6511_v42 = vld [vmem:[%s7419_s29 + $0x7c] ss:$12 sps:$4 sm:$0xff]   ;;  %v6513_v43 = vld [vmem:[%s7419_s29 + $0x78] ss:$12 sps:$4 sm:$0xff]  }
  0xeb   : > { %v716_v48 = vpack.c.bf16 %v577_v46, %v574_v45  ;;  %v6516_v45 = vld [vmem:[%s7419_s29 + $0x90] ss:$12 sps:$4 sm:$0xff]   ;;  %v6519_v46 = vld [vmem:[%s7419_s29 + $0xac] ss:$12 sps:$4 sm:$0xff]  }
  0xed   : > { %v6045_v51 = vpop.f32.mrb[4].mxu1  ;;  %6071 = vmatprep.mubr.bf16.mxu0 %v716_v48  ;;  %v6525_v48 = vld [vmem:[%s9493_s7 + $0x28] ss:$16 sps:$4 sm:$0xff]  }
  0xee   : > { %v589_v52 = vpop.f32.mrb[5].mxu1  ;;  %6072 = vmatmul.mubr.bf16.vlgmr.msra.gmra.mrb[0].mxu0 %v717_v47  ;;  %v598_v55 = vadd.f32 %v6045_v51, %v7466_v39  ;;  %v6521_v47 = vld [vmem:[%s7419_s29 + $0xa8] ss:$12 sps:$4 sm:$0xff]   ;;  %v6530_v51 = vld [vmem:[%s9493_s7 + $0x4c] ss:$16 sps:$4 sm:$0xff]  }
  0xef   : > { %5942 = vmatpush3.bf16.msra.mxu0 %v6467_v49  ;;  %v6046_v53 = vpop.f32.mrb[6].mxu1  ;;  %v590_v59 = vadd.f32 %v7466_v39, %v589_v52  ;;  %v6527_v49 = vld [vmem:[%s9493_s7 + $0x2c] ss:$16 sps:$4 sm:$0xff]   ;;  %v6531_v52 = vld [vmem:[%s9493_s7] ss:$16 sps:$4 sm:$0xff]  }
  0xf0   : > { %v601_v56 = vadd.f32 %v6046_v53, %v7466_v39  ;;  %v592_v57 = vpop.f32.mrb[7].mxu1  ;;  %5943 = vmatprep.subr.bf16.mxu0 %v6469_v50  ;;  %v6528_v50 = vld [vmem:[%s9493_s7 + $0x48] ss:$16 sps:$4 sm:$0xff]   ;;  %v6533_v53 = vld [vmem:[%s9493_s7 + $0x4] ss:$16 sps:$4 sm:$0xff]  }
  0xf1   : > { %v593_v60 = vadd.f32 %v7466_v39, %v592_v57  ;;  %1612 = vmatprep.subr.bf16.mxu1 %v6533_v53  ;;  %v6539_v57 = vld [vmem:[%s9493_s7 + $0x6c] ss:$16 sps:$4 sm:$0xff]  }
  0xf2   : > { %v719_v61 = vpack.c.bf16 %v601_v56, %v598_v55  ;;  %1613 = vmatpush1.bf16.msra.mxu1 %v6531_v52  ;;  %v6534_v55 = vld [vmem:[%s9493_s7 + $0x20] ss:$16 sps:$4 sm:$0xff]   ;;  %v6537_v56 = vld [vmem:[%s9493_s7 + $0x68] ss:$16 sps:$4 sm:$0xff]  }
  0xf3   : > { %v718_v62 = vpack.c.bf16 %v593_v60, %v590_v59  ;;  %5944 = vmatpush3.bf16.msra.mxu0 %v6470_v54  ;;  %v6536_v54 = vld [vmem:[%s9493_s7 + $0x24] ss:$16 sps:$4 sm:$0xff]  }
  0xf4   : > { %5945 = vmatprep.subr.bf16.mxu0 %v6472_v58  ;;  %1614 = vmatprep.subr.bf16.mxu1 %v6536_v54  ;;  %v6540_v58 = vld [vmem:[%s9493_s7 + $0x40] ss:$16 sps:$4 sm:$0xff]   ;;  %v6542_v59 = vld [vmem:[%s9493_s7 + $0x44] ss:$16 sps:$4 sm:$0xff]  }
  0xf5   : > { %v6049_v1 = vpop.f32.mrb[8].mxu1  ;;  %6075 = vmatprep.mubr.bf16.mxu0 %v718_v62  ;;  %v6545_v60 = vld [vmem:[%s9493_s7 + $0x64] ss:$16 sps:$4 sm:$0xff]   ;;  %v6546_v62 = vld [vmem:[%s9493_s7 + $0x88] ss:$16 sps:$4 sm:$0xff]  }
  0xf6   : > { %v605_v2 = vpop.f32.mrb[9].mxu1  ;;  %6076 = vmatmul.mubr.bf16.gmra.mrb[4].mxu0 %v719_v61  ;;  %v614_v5 = vadd.f32 %v6049_v1, %v7466_v39  ;;  %1615 = vmatpush1.bf16.msra.mxu1 %v6534_v55  ;;  %v6543_v61 = vld [vmem:[%s9493_s7 + $0x60] ss:$16 sps:$4 sm:$0xff]   ;;  %v6551_v1 = vld [vmem:[%s9493_s7 + $0x84] ss:$16 sps:$4 sm:$0xff]  }
  0xf7   : > { %5946 = vmatpush3.bf16.msra.mxu0 %v6473_v63  ;;  %v6050_v3 = vpop.f32.mrb[10].mxu1  ;;  %v606_v9 = vadd.f32 %v7466_v39, %v605_v2  ;;  %1616 = vmatprep.subr.bf16.mxu1 %v6542_v59  ;;  %v6548_v63 = vld [vmem:[%s9493_s7 + $0x8c] ss:$16 sps:$4 sm:$0xff]   ;;  %v6554_v2 = vld [vmem:[%s9493_s7 + $0xa4] ss:$16 sps:$4 sm:$0xff]  }
  0xf8   : > { %v617_v6 = vadd.f32 %v6050_v3, %v7466_v39  ;;  %v608_v7 = vpop.f32.mrb[11].mxu1  ;;  %5947 = vmatprep.subr.bf16.mxu0 %v6475_v0  ;;  %v6549_v0 = vld [vmem:[%s9493_s7 + $0x80] ss:$16 sps:$4 sm:$0xff]   ;;  %v6557_v3 = vld [vmem:[%s9493_s7 + $0xac] ss:$16 sps:$4 sm:$0xff]  }
  0xf9   : > { %v609_v10 = vadd.f32 %v7466_v39, %v608_v7 }
  0xfa   : > { %v721_v11 = vpack.c.bf16 %v617_v6, %v614_v5  ;;  %1617 = vmatpush1.bf16.msra.mxu1 %v6540_v58  ;;  %v6552_v5 = vld [vmem:[%s9493_s7 + $0xa0] ss:$16 sps:$4 sm:$0xff]   ;;  %v6555_v6 = vld [vmem:[%s9493_s7 + $0xa8] ss:$16 sps:$4 sm:$0xff]  }
  0xfb   : > { %v720_v12 = vpack.c.bf16 %v609_v10, %v606_v9  ;;  %5948 = vmatpush3.bf16.msra.mxu0 %v6476_v4  ;;  %1618 = vmatprep.subr.bf16.mxu1 %v6545_v60  ;;  %v6560_v10 = vld [vmem:[%s9493_s7 + $0xc4] ss:$16 sps:$4 sm:$0xff]   ;;  %v7711_v58 = vld [vmem:[%s9492_s6] ss:$0 sm:$0xff] }
  0xfc   : > { %5949 = vmatprep.subr.bf16.mxu0 %v6478_v8 }
  0xfd   : > { %v6053_v15 = vpop.f32.mrb[12].mxu1  ;;  %6079 = vmatprep.mubr.bf16.mxu0 %v720_v12  ;;  %v6558_v12 = vld [vmem:[%s9493_s7 + $0xc0] ss:$16 sps:$4 sm:$0xff]  }
  0xfe   : > { %v621_v16 = vpop.f32.mrb[13].mxu1  ;;  %6080 = vmatmul.mubr.bf16.gmra.mrb[8].mxu0 %v721_v11  ;;  %v630_v19 = vadd.f32 %v6053_v15, %v7466_v39  ;;  %1619 = vmatpush1.bf16.msra.mxu1 %v6543_v61  ;;  %v6563_v11 = vld [vmem:[%s9493_s7 + $0xcc] ss:$16 sps:$4 sm:$0xff]  }
  0xff   : > { %5950 = vmatpush3.bf16.msra.mxu0 %v6479_v13  ;;  %v6054_v17 = vpop.f32.mrb[14].mxu1  ;;  %v622_v23 = vadd.f32 %v7466_v39, %v621_v16  ;;  %1620 = vmatprep.subr.bf16.mxu1 %v6551_v1  ;;  %v6561_v13 = vld [vmem:[%s9493_s7 + $0xc8] ss:$16 sps:$4 sm:$0xff]   ;;  %v6569_v15 = vld [vmem:[%s9493_s7 + $0xec] ss:$16 sps:$4 sm:$0xff]  }
 0x100   : > { %v633_v20 = vadd.f32 %v6054_v17, %v7466_v39  ;;  %v624_v21 = vpop.f32.mrb[15].mxu1  ;;  %5951 = vmatprep.subr.bf16.mxu0 %v6481_v14  ;;  %v6566_v14 = vld [vmem:[%s9493_s7 + $0xe4] ss:$16 sps:$4 sm:$0xff]   ;;  %v6564_v16 = vld [vmem:[%s9493_s7 + $0xe0] ss:$16 sps:$4 sm:$0xff]  }
 0x101   : > { %v625_v24 = vadd.f32 %v7466_v39, %v624_v21  ;;  %v6505_v39 = vld [vmem:[%s7419_s29 + $0x48] ss:$12 sps:$4 sm:$0xff]  }
 0x102   : > { %v723_v25 = vpack.c.bf16 %v633_v20, %v630_v19  ;;  %1621 = vmatpush1.bf16.msra.mxu1 %v6549_v0  ;;  %v6567_v17 = vld [vmem:[%s9493_s7 + $0xe8] ss:$16 sps:$4 sm:$0xff]   ;;  %v7652_v19 = vld [vmem:[%s9494_s8 + $0x4] ss:$16 sps:$4 sm:$0xff]  }
 0x103   : > { %v722_v26 = vpack.c.bf16 %v625_v24, %v622_v23  ;;  %5952 = vmatpush3.bf16.msra.mxu0 %v6482_v18  ;;  %1622 = vmatprep.subr.bf16.mxu1 %v6554_v2  ;;  %v7307_v18 = vmov 0   ;;  %v7666_v24 = vld [vmem:[%s9494_s8 + $0xc] ss:$16 sps:$4 sm:$0xff]  }
 0x104   : > { %5953 = vmatprep.subr.bf16.mxu0 %v6484_v22  ;;  %1644 = vmatprep.mubr.bf16.mxu1 %v7307_v18 }
 0x105   : > { %6083 = vmatprep.mubr.bf16.mxu0 %v722_v26  ;;  %v7611_v4 = vpop.f32.mrb[16].mxu1 }
 0x106   : > { %6084 = vmatmul.mubr.bf16.gmra.mrb[12].mxu0 %v723_v25  ;;  %v7619_v7 = vpop.f32.mrb[17].mxu1  ;;  %1623 = vmatpush1.bf16.msra.mxu1 %v6552_v5 }
 0x107   : > { %5954 = vmatpush3.bf16.msra.mxu0 %v6485_v27  ;;  %1189 = vmatprep.mubr.bf16.mxu0 %v6492_v28  ;;  %v7621_v8 = vpop.f32.mrb[18].mxu1 }
 0x108   : > { %5955 = vmatprep.subr.bf16.mxu0 %v6487_v29  ;;  %v1291_v9 = vpop.f32.mrb[19].mxu1  ;;  %1624 = vmatprep.subr.bf16.mxu1 %v6560_v10  ;;  %v7728_v10 = vld [vmem:[%s9494_s8 + $0x8] ss:$16 sps:$4 sm:$0xff]  }
 0x10a   : > { %1625 = vmatpush1.bf16.msra.mxu1 %v6558_v12 }
 0x10b   : > { %5956 = vmatpush3.bf16.msra.mxu0 %v6488_v30  ;;  %1626 = vmatprep.subr.bf16.mxu1 %v6566_v14  ;;  %v7741_v14 = vld [vmem:[%s9494_s8 + $0x20] ss:$16 sps:$4 sm:$0xff]  }
 0x10c   : > { %1725 = vmatprep.subr.bf16.mxu0 %v6524_v31 }
 0x10d   : > { %v7654_v20 = vpop.f32.mrb[20].mxu1 }
 0x10e   : > { %1190 = vmatmul.mubr.bf16.vlgmr.msra.gmra.mrb[16].mxu0 %v6490_v32  ;;  %1627 = vmatpush1.bf16.msra.mxu1 %v6564_v16  ;;  %v7657_v21 = vpop.f32.mrb[21].mxu1  ;;  %v7749_v16 = vld [vmem:[%s9494_s8 + $0x44] ss:$16 sps:$4 sm:$0xff]  }
 0x10f   : > { %1197 = vmatprep.mubr.bf16.mxu0 %v6495_v33  ;;  %1726 = vmatpush1.bf16.msra.mxu0 %v6522_v34  ;;  %v7659_v22 = vpop.f32.mrb[22].mxu1 }
 0x110   : > { %1727 = vmatprep.subr.bf16.mxu0 %v6527_v49  ;;  %2105 = vmatprep.subr.bf16.mxu1 %v7652_v19  ;;  %v7661_v23 = vpop.f32.mrb[23].mxu1 }
 0x113   : > { %1728 = vmatpush1.bf16.msra.mxu0 %v6525_v48 }
 0x114   : > { %1729 = vmatprep.subr.bf16.mxu0 %v6530_v51 }
 0x115   : > { %v7668_v25 = vpop.f32.mrb[24].mxu1 }
 0x116   : > { %1198 = vmatmul.mubr.bf16.gmra.mrb[20].mxu0 %v6497_v35  ;;  %v7671_v26 = vpop.f32.mrb[25].mxu1 }
 0x117   : > { %1205 = vmatprep.mubr.bf16.mxu0 %v6498_v36  ;;  %1730 = vmatpush1.bf16.msra.mxu0 %v6528_v50  ;;  %v7673_v27 = vpop.f32.mrb[26].mxu1 }
 0x118   : > { %1731 = vmatprep.subr.bf16.mxu0 %v6539_v57  ;;  %v7675_v28 = vpop.f32.mrb[27].mxu1 }
 0x11b   : > { %1732 = vmatpush1.bf16.msra.mxu0 %v6537_v56 }
 0x11c   : > { %1733 = vmatprep.subr.bf16.mxu0 %v6548_v63 }
 0x11d   : > { %v7677_v29 = vpop.f32.mrb[28].mxu1 }
 0x11e   : > { %1206 = vmatmul.mubr.bf16.gmra.mrb[24].mxu0 %v6500_v37  ;;  %v7679_v30 = vpop.f32.mrb[29].mxu1 }
 0x11f   : > { %1213 = vmatprep.mubr.bf16.mxu0 %v6503_v38  ;;  %1734 = vmatpush1.bf16.msra.mxu0 %v6546_v62  ;;  %v7681_v31 = vpop.f32.mrb[30].mxu1 }
 0x120   : > { %1735 = vmatprep.subr.bf16.mxu0 %v6557_v3  ;;  %v7683_v32 = vpop.f32.mrb[31].mxu1  ;;  %v7718_v3 = vld [vmem:[%s9494_s8] ss:$16 sps:$4 sm:$0xff]  }
 0x123   : > { %1736 = vmatpush1.bf16.msra.mxu0 %v6555_v6 }
 0x124   : > { %1737 = vmatprep.subr.bf16.mxu0 %v6563_v11 }
 0x126   : > { %1214 = vmatmul.mubr.bf16.gmra.mrb[28].mxu0 %v6505_v39 }
 0x127   : > { %1221 = vmatprep.mubr.bf16.mxu0 %v6506_v40  ;;  %1738 = vmatpush1.bf16.msra.mxu0 %v6561_v13  ;;  %v7734_v13 = vld [vmem:[%s9494_s8 + $0x2c] ss:$16 sps:$4 sm:$0xff]  }
 0x128   : > { %1739 = vmatprep.subr.bf16.mxu0 %v6569_v15 }
 0x12b   : > { %1740 = vmatpush1.bf16.msra.mxu0 %v6567_v17 }
 0x12c   : > { %2148 = vmatprep.subr.bf16.mxu0 %v7666_v24 }
 0x12e   : > { %1222 = vmatmul.mubr.bf16.gmra.mrb[32].mxu0 %v6508_v41 }
 0x12f   : > { %1229 = vmatprep.mubr.bf16.mxu0 %v6511_v42 }
 0x136   : > { %1230 = vmatmul.mubr.bf16.gmra.mrb[36].mxu0 %v6513_v43 }
 0x137   : > { %1237 = vmatprep.mubr.bf16.mxu0 %v6514_v44 }
 0x13e   : > { %1238 = vmatmul.mubr.bf16.gmra.mrb[40].mxu0 %v6516_v45 }
 0x13f   : > { %1245 = vmatprep.mubr.bf16.mxu0 %v6519_v46 }
 0x146   : > { %1246 = vmatmul.mubr.bf16.gmra.mrb[44].mxu0 %v6521_v47 }
 0x147   : > { %1757 = vmatprep.mubr.bf16.mxu0 %v7307_v18 }
 0x1c1   : > { %v6073_v33 = vpop.f32.mrb[0].mxu0 }
 0x1c2   : > { %v822_v34 = vpop.f32.mrb[1].mxu0 }
 0x1c3   : > { %v6074_v35 = vpop.f32.mrb[2].mxu0 }
 0x1c4   : > { %v825_v36 = vpop.f32.mrb[3].mxu0 }
 0x1c9   : > { %v7685_v37 = vpop.f32.mrb[4].mxu0 }
 0x1ca   : > { %v838_v38 = vpop.f32.mrb[5].mxu0 }
 0x1cb   : > { %v7687_v39 = vpop.f32.mrb[6].mxu0 }
 0x1cc   : > { %v7689_v40 = vpop.f32.mrb[7].mxu0 }
 0x1d1   : > { %v7691_v41 = vpop.f32.mrb[8].mxu0 }
 0x1d2   : > { %v7693_v42 = vpop.f32.mrb[9].mxu0 }
 0x1d3   : > { %v7695_v43 = vpop.f32.mrb[10].mxu0 }
 0x1d4   : > { %v7697_v44 = vpop.f32.mrb[11].mxu0 }
 0x1d9   : > { %v7699_v45 = vpop.f32.mrb[12].mxu0 }
 0x1da   : > { %v7701_v46 = vpop.f32.mrb[13].mxu0 }
 0x1db   : > { %v7703_v47 = vpop.f32.mrb[14].mxu0 }
 0x1dc   : > { %v7705_v48 = vpop.f32.mrb[15].mxu0 }
 0x1e1   : > { %v5957_v49 = vpop.f32.mrb[16].mxu0 }
 0x1e2   : > { %v5958_v50 = vpop.f32.mrb[17].mxu0 }
 0x1e3   : > { %v5959_v51 = vadd.f32 %v5958_v50, %v5957_v49  ;;  %v5960_v52 = vpop.f32.mrb[18].mxu0 }
 0x1e4   : > { %v5961_v53 = vpop.f32.mrb[19].mxu0 }
 0x1e5   : > { %v1192_v54 = vadd.f32 %v5959_v51, %v822_v34  ;;  %v5962_v55 = vadd.f32 %v5961_v53, %v5960_v52  ;;  %v7765_v53 = vld [vmem:[%s9494_s8 + $0x40] ss:$16 sps:$4 sm:$0xff]  }
 0x1e7   : > { %v1289_v56 = vadd.f32 %v7619_v7, %v1192_v54  ;;  %v1195_v57 = vadd.f32 %v5962_v55, %v825_v36  ;;  %v7770_v54 = vld [vmem:[%s9494_s8 + $0x4c] ss:$16 sps:$4 sm:$0xff]   ;;  %v7775_v55 = vld [vmem:[%s9494_s8 + $0x64] ss:$16 sps:$4 sm:$0xff]  }
 0x1e9   : > { %v1292_v59 = vadd.f32 %v1291_v9, %v1195_v57  ;;  %v5963_v60 = vpop.f32.mrb[20].mxu0  ;;  %v1358_v62 = vadd.f32 %v7711_v58, %v1289_v56  ;;  %v7723_v9 = vld [vmem:[%s9494_s8 + $0x24] ss:$16 sps:$4 sm:$0xff]  }
 0x1ea   : > { %v5964_v61 = vpop.f32.mrb[21].mxu0 }
 0x1eb   : > { %v1359_v63 = vadd.f32 %v7711_v58, %v1292_v59  ;;  %v5965_v0 = vadd.f32 %v5964_v61, %v5963_v60  ;;  %v5966_v1 = vpop.f32.mrb[22].mxu0  ;;  %v7788_v59 = vld [vmem:[%s9494_s8 + $0x6c] ss:$16 sps:$4 sm:$0xff]  }
 0x1ec   : > { %v5967_v2 = vpop.f32.mrb[23].mxu0 }
 0x1ed   : > { %v1374_v5 = vpack.c.bf16 %v1359_v63, %v1358_v62  ;;  %v1200_v6 = vadd.f32 %v6073_v33, %v5965_v0  ;;  %v5968_v7 = vadd.f32 %v5967_v2, %v5966_v1  ;;  %v7755_v33 = vld [vmem:[%s9494_s8 + $0x28] ss:$16 sps:$4 sm:$0xff]   ;;  %v7804_v62 = vld [vmem:[%s9494_s8 + $0x84] ss:$16 sps:$4 sm:$0xff]  }
 0x1ef   : > { %v1297_v11 = vadd.f32 %v7611_v4, %v1200_v6  ;;  %v1203_v12 = vadd.f32 %v6074_v35, %v5968_v7  ;;  %1645 = vmatmul.mubr.bf16.vlgmr.msra.gmra.mrb[32].mxu1 %v1374_v5  ;;  %1758 = vmatmul.mubr.bf16.vlgmr.msra.gmra.mrb[48].mxu0 %v1374_v5 }
 0x1f0   : > { %2106 = vmatpush1.bf16.msra.mxu1 %v7718_v3  ;;  %1654 = vmatprep.mubr.bf16.mxu1 %v7307_v18 }
 0x1f1   : > { %v1300_v15 = vadd.f32 %v7621_v8, %v1203_v12  ;;  %v5969_v4 = vpop.f32.mrb[24].mxu0  ;;  %1767 = vmatprep.mubr.bf16.mxu0 %v7307_v18  ;;  %2107 = vmatprep.subr.bf16.mxu1 %v7723_v9  ;;  %v1360_v35 = vadd.f32 %v7711_v58, %v1297_v11  ;;  %v7820_v12 = vld [vmem:[%s9494_s8 + $0x80] ss:$16 sps:$4 sm:$0xff]  }
 0x1f2   : > { %v5970_v17 = vpop.f32.mrb[25].mxu0  ;;  %2149 = vmatpush1.bf16.msra.mxu0 %v7728_v10 }
 0x1f3   : > { %v5971_v34 = vadd.f32 %v5970_v17, %v5969_v4  ;;  %v5972_v8 = vpop.f32.mrb[26].mxu0  ;;  %v1361_v36 = vadd.f32 %v7711_v58, %v1300_v15  ;;  %2150 = vmatprep.subr.bf16.mxu0 %v7734_v13  ;;  %v7825_v15 = vld [vmem:[%s9494_s8 + $0x8c] ss:$16 sps:$4 sm:$0xff]   ;;  %v7837_v4 = vld [vmem:[%s9494_s8 + $0x88] ss:$16 sps:$4 sm:$0xff]  }
 0x1f4   : > { %v5973_v49 = vpop.f32.mrb[27].mxu0  ;;  %2108 = vmatpush1.bf16.msra.mxu1 %v7741_v14 }
 0x1f5   : > { %v1208_v50 = vadd.f32 %v5971_v34, %v838_v38  ;;  %v5974_v51 = vadd.f32 %v5973_v49, %v5972_v8  ;;  %v1375_v52 = vpack.c.bf16 %v1361_v36, %v1360_v35  ;;  %2109 = vmatprep.subr.bf16.mxu1 %v7749_v16  ;;  %v7781_v38 = vld [vmem:[%s9494_s8 + $0x48] ss:$16 sps:$4 sm:$0xff]   ;;  %v7844_v8 = vld [vmem:[%s9494_s8 + $0xac] ss:$16 sps:$4 sm:$0xff]   ;;  %v7860_v49 = vld [vmem:[%s9494_s8 + $0xc4] ss:$16 sps:$4 sm:$0xff]  }
 0x1f6   : > { %2151 = vmatpush1.bf16.msra.mxu0 %v7755_v33 }
 0x1f7   : > { %v1305_v56 = vadd.f32 %v7657_v21, %v1208_v50  ;;  %v1211_v57 = vadd.f32 %v5974_v51, %v7689_v40  ;;  %1655 = vmatmul.mubr.bf16.gmra.mrb[36].mxu1 %v1375_v52  ;;  %1768 = vmatmul.mubr.bf16.gmra.mrb[52].mxu0 %v1375_v52  ;;  %v7797_v21 = vld [vmem:[%s9494_s8 + $0x60] ss:$16 sps:$4 sm:$0xff]  }
 0x1f8   : > { %1664 = vmatprep.mubr.bf16.mxu1 %v7307_v18  ;;  %1777 = vmatprep.mubr.bf16.mxu0 %v7307_v18 }
 0x1f9   : > { %v1308_v60 = vadd.f32 %v7661_v23, %v1211_v57  ;;  %v5975_v61 = vpop.f32.mrb[28].mxu0  ;;  %2110 = vmatpush1.bf16.msra.mxu1 %v7765_v53  ;;  %2152 = vmatprep.subr.bf16.mxu0 %v7770_v54  ;;  %v7810_v23 = vld [vmem:[%s9494_s8 + $0x68] ss:$16 sps:$4 sm:$0xff]   ;;  %v1362_v63 = vadd.f32 %v7711_v58, %v1305_v56 }
 0x1fa   : > { %v5976_v40 = vpop.f32.mrb[29].mxu0  ;;  %2111 = vmatprep.subr.bf16.mxu1 %v7775_v55  ;;  %2153 = vmatpush1.bf16.msra.mxu0 %v7781_v38 }
 0x1fb   : > { %v1363_v0 = vadd.f32 %v7711_v58, %v1308_v60  ;;  %v5977_v1 = vadd.f32 %v5976_v40, %v5975_v61  ;;  %v5978_v2 = vpop.f32.mrb[30].mxu0  ;;  %2154 = vmatprep.subr.bf16.mxu0 %v7788_v59 }
 0x1fc   : > { %v5979_v5 = vpop.f32.mrb[31].mxu0 }
 0x1fd   : > { %v1216_v6 = vadd.f32 %v7685_v37, %v5977_v1  ;;  %v5980_v7 = vadd.f32 %v5979_v5, %v5978_v2  ;;  %v1376_v11 = vpack.c.bf16 %v1363_v0, %v1362_v63  ;;  %2112 = vmatpush1.bf16.msra.mxu1 %v7797_v21  ;;  %v7831_v37 = vld [vmem:[%s9494_s8 + $0xa4] ss:$16 sps:$4 sm:$0xff]   ;;  %v7876_v63 = vld [vmem:[%s9494_s8 + $0xc0] ss:$16 sps:$4 sm:$0xff]   ;;  %v7881_v0 = vld [vmem:[%s9494_s8 + $0xcc] ss:$16 sps:$4 sm:$0xff]  }
 0x1fe   : > { %2113 = vmatprep.subr.bf16.mxu1 %v7804_v62  ;;  %2155 = vmatpush1.bf16.msra.mxu0 %v7810_v23  ;;  %v7893_v1 = vld [vmem:[%s9494_s8 + $0xc8] ss:$16 sps:$4 sm:$0xff]  }
 0x1ff   : > { %v1313_v17 = vadd.f32 %v7654_v20, %v1216_v6  ;;  %v1219_v34 = vadd.f32 %v7687_v39, %v5980_v7  ;;  %1665 = vmatmul.mubr.bf16.gmra.mrb[40].mxu1 %v1376_v11  ;;  %1778 = vmatmul.mubr.bf16.gmra.mrb[56].mxu0 %v1376_v11  ;;  %v7853_v20 = vld [vmem:[%s9494_s8 + $0xa0] ss:$16 sps:$4 sm:$0xff]   ;;  %v7900_v6 = vld [vmem:[%s9494_s8 + $0xec] ss:$16 sps:$4 sm:$0xff]  }
 0x200   : > { %1674 = vmatprep.mubr.bf16.mxu1 %v7307_v18  ;;  %1787 = vmatprep.mubr.bf16.mxu0 %v7307_v18 }
 0x201   : > { %v1316_v35 = vadd.f32 %v7659_v22, %v1219_v34  ;;  %v5981_v36 = vpop.f32.mrb[32].mxu0  ;;  %2114 = vmatpush1.bf16.msra.mxu1 %v7820_v12  ;;  %2156 = vmatprep.subr.bf16.mxu0 %v7825_v15  ;;  %v7866_v22 = vld [vmem:[%s9494_s8 + $0xa8] ss:$16 sps:$4 sm:$0xff]   ;;  %v1364_v52 = vadd.f32 %v7711_v58, %v1313_v17 }
 0x202   : > { %v5982_v39 = vpop.f32.mrb[33].mxu0  ;;  %2115 = vmatprep.subr.bf16.mxu1 %v7831_v37  ;;  %2157 = vmatpush1.bf16.msra.mxu0 %v7837_v4  ;;  %v7917_v17 = vld [vmem:[%s9494_s8 + $0xe8] ss:$16 sps:$4 sm:$0xff]  }
 0x203   : > { %v5983_v50 = vadd.f32 %v5982_v39, %v5981_v36  ;;  %v5984_v51 = vpop.f32.mrb[34].mxu0  ;;  %v1365_v56 = vadd.f32 %v7711_v58, %v1316_v35  ;;  %2158 = vmatprep.subr.bf16.mxu0 %v7844_v8 }
 0x204   : > { %v5985_v57 = vpop.f32.mrb[35].mxu0 }
 0x205   : > { %v1224_v60 = vadd.f32 %v5983_v50, %v7693_v42  ;;  %v5986_v61 = vadd.f32 %v5985_v57, %v5984_v51  ;;  %v1377_v40 = vpack.c.bf16 %v1365_v56, %v1364_v52  ;;  %2116 = vmatpush1.bf16.msra.mxu1 %v7853_v20  ;;  %v7888_v42 = vld [vmem:[%s9494_s8 + $0xe4] ss:$16 sps:$4 sm:$0xff]  }
 0x206   : > { %2117 = vmatprep.subr.bf16.mxu1 %v7860_v49  ;;  %2159 = vmatpush1.bf16.msra.mxu0 %v7866_v22 }
 0x207   : > { %v1321_v2 = vadd.f32 %v7671_v26, %v1224_v60  ;;  %v1227_v5 = vadd.f32 %v5986_v61, %v7697_v44  ;;  %1675 = vmatmul.mubr.bf16.gmra.mrb[44].mxu1 %v1377_v40  ;;  %1788 = vmatmul.mubr.bf16.gmra.mrb[60].mxu0 %v1377_v40  ;;  %v7909_v26 = vld [vmem:[%s9494_s8 + $0xe0] ss:$16 sps:$4 sm:$0xff]  }
 0x208   : > { %1684 = vmatprep.mubr.bf16.mxu1 %v7307_v18  ;;  %1797 = vmatprep.mubr.bf16.mxu0 %v7307_v18 }
 0x209   : > { %v1324_v7 = vadd.f32 %v7675_v28, %v1227_v5  ;;  %v5987_v11 = vpop.f32.mrb[36].mxu0  ;;  %2118 = vmatpush1.bf16.msra.mxu1 %v7876_v63  ;;  %2160 = vmatprep.subr.bf16.mxu0 %v7881_v0  ;;  %v1366_v28 = vadd.f32 %v7711_v58, %v1321_v2 }
 0x20a   : > { %v5988_v44 = vpop.f32.mrb[37].mxu0  ;;  %2119 = vmatprep.subr.bf16.mxu1 %v7888_v42  ;;  %2161 = vmatpush1.bf16.msra.mxu0 %v7893_v1 }
 0x20b   : > { %v1367_v34 = vadd.f32 %v7711_v58, %v1324_v7  ;;  %v5989_v35 = vadd.f32 %v5988_v44, %v5987_v11  ;;  %v5990_v36 = vpop.f32.mrb[38].mxu0  ;;  %2162 = vmatprep.subr.bf16.mxu0 %v7900_v6 }
 0x20c   : > { %v5991_v39 = vpop.f32.mrb[39].mxu0 }
 0x20d   : > { %v1232_v50 = vadd.f32 %v7691_v41, %v5989_v35  ;;  %v5992_v51 = vadd.f32 %v5991_v39, %v5990_v36  ;;  %v1378_v52 = vpack.c.bf16 %v1367_v34, %v1366_v28  ;;  %2120 = vmatpush1.bf16.msra.mxu1 %v7909_v26 }
 0x20e   : > { %2163 = vmatpush1.bf16.msra.mxu0 %v7917_v17  ;;  %2260 = vmatprep.subr.bf16.mxu1 %v7652_v19 }
 0x20f   : > { %v1329_v56 = vadd.f32 %v7668_v25, %v1232_v50  ;;  %v1235_v57 = vadd.f32 %v7695_v43, %v5992_v51  ;;  %1685 = vmatmul.mubr.bf16.gmra.mrb[48].mxu1 %v1378_v52  ;;  %1798 = vmatmul.mubr.bf16.gmra.mrb[64].mxu0 %v1378_v52 }
 0x210   : > { %1694 = vmatprep.mubr.bf16.mxu1 %v7307_v18  ;;  %1807 = vmatprep.mubr.bf16.mxu0 %v7307_v18 }
 0x211   : > { %v1332_v41 = vadd.f32 %v7673_v27, %v1235_v57  ;;  %v5993_v60 = vpop.f32.mrb[40].mxu0  ;;  %2303 = vmatprep.subr.bf16.mxu0 %v7666_v24  ;;  %v1368_v5 = vadd.f32 %v7711_v58, %v1329_v56 }
 0x212   : > { %v5994_v61 = vpop.f32.mrb[41].mxu0 }
 0x213   : > { %v5995_v40 = vadd.f32 %v5994_v61, %v5993_v60  ;;  %v5996_v2 = vpop.f32.mrb[42].mxu0  ;;  %v1369_v25 = vadd.f32 %v7711_v58, %v1332_v41 }
 0x214   : > { %v5997_v7 = vpop.f32.mrb[43].mxu0 }
 0x215   : > { %v1240_v43 = vadd.f32 %v5995_v40, %v7701_v46  ;;  %v5998_v11 = vadd.f32 %v5997_v7, %v5996_v2  ;;  %v1379_v44 = vpack.c.bf16 %v1369_v25, %v1368_v5 }
 0x217   : > { %v1337_v28 = vadd.f32 %v7679_v30, %v1240_v43  ;;  %v1243_v34 = vadd.f32 %v5998_v11, %v7705_v48  ;;  %1695 = vmatmul.mubr.bf16.gmra.mrb[52].mxu1 %v1379_v44  ;;  %1808 = vmatmul.mubr.bf16.gmra.mrb[68].mxu0 %v1379_v44 }
 0x218   : > { %1704 = vmatprep.mubr.bf16.mxu1 %v7307_v18  ;;  %1817 = vmatprep.mubr.bf16.mxu0 %v7307_v18 }
 0x219   : > { %v1340_v27 = vadd.f32 %v7683_v32, %v1243_v34  ;;  %v5999_v35 = vpop.f32.mrb[44].mxu0  ;;  %v1370_v39 = vadd.f32 %v7711_v58, %v1337_v28 }
 0x21a   : > { %v6000_v36 = vpop.f32.mrb[45].mxu0 }
 0x21b   : > { %v1371_v46 = vadd.f32 %v7711_v58, %v1340_v27  ;;  %v6001_v50 = vadd.f32 %v6000_v36, %v5999_v35  ;;  %v6002_v51 = vpop.f32.mrb[46].mxu0 }
 0x21c   : > { %v6003_v52 = vpop.f32.mrb[47].mxu0 }
 0x21d   : > { %v1248_v30 = vadd.f32 %v7699_v45, %v6001_v50  ;;  %v6004_v48 = vadd.f32 %v6003_v52, %v6002_v51  ;;  %v1380_v56 = vpack.c.bf16 %v1371_v46, %v1370_v39 }
 0x21f   : > { %v1345_v57 = vadd.f32 %v7677_v29, %v1248_v30  ;;  %v1251_v41 = vadd.f32 %v7703_v47, %v6004_v48  ;;  %1705 = vmatmul.mubr.bf16.gmra.mrb[56].mxu1 %v1380_v56  ;;  %1818 = vmatmul.mubr.bf16.gmra.mrb[72].mxu0 %v1380_v56  ;;  %v1432_v29 = vlaneseq  ;;  %v1430_v47 = vld [vmem:[%s9495_s9] sm:$0xf] }
 0x220   : > { %1714 = vmatprep.mubr.bf16.mxu1 %v7307_v18  ;;  %1827 = vmatprep.mubr.bf16.mxu0 %v7307_v18 }
 0x221   : > { %v1348_v32 = vadd.f32 %v7681_v31, %v1251_v41  ;;  %v1372_v60 = vadd.f32 %v7711_v58, %v1345_v57  ;;  %v7988_v31 = vshrl.u32 %v1432_v29, 7 }
 0x223   : > { %v1373_v61 = vadd.f32 %v7711_v58, %v1348_v32  ;;  %v1434_v45 = vsub.s32 0, %v7988_v31  ;;  %v9501_v58 = vsub.s32 1, %v7988_v31  ;;  %v9500_v43 = vsub.s32 3, %v7988_v31 }
 0x224   : > { %v9499_v39 = vsub.s32 2, %v7988_v31 }
 0x225   : > { %v1381_v40 = vpack.c.bf16 %v1373_v61, %v1372_v60  ;;  %v7997_v2 = vrot.slane %v1430_v47, %v1434_v45  ;;  %v8001_v5 = vrot.slane %v1430_v47, %v9501_v58  ;;  %v8010_v30 = vrot.slane %v1430_v47, %v9500_v43 }
 0x226   : > { %v8015_v41 = vrot.slane %v1430_v47, %v9499_v39 }
 0x227   : > { %1715 = vmatmul.mubr.bf16.gmra.mrb[60].mxu1 %v1381_v40  ;;  %1828 = vmatmul.mubr.bf16.gmra.mrb[76].mxu0 %v1381_v40 }
 0x228   : > { %2137 = vmatprep.mubr.bf16.mxu1 %v7307_v18  ;;  %2180 = vmatprep.mubr.bf16.mxu0 %v7307_v18 }
 0x22f   : > { %2138 = vmatmul.mubr.bf16.vlgmr.msra.gmra.mrb[32].mxu1 %v7307_v18  ;;  %2181 = vmatmul.mubr.bf16.vlgmr.msra.gmra.mrb[48].mxu0 %v7307_v18 }
 0x230   : > { %2261 = vmatpush1.bf16.msra.mxu1 %v7718_v3  ;;  %2304 = vmatpush1.bf16.msra.mxu0 %v7728_v10 }
 0x231   : > { %2262 = vmatprep.subr.bf16.mxu1 %v7723_v9  ;;  %2305 = vmatprep.subr.bf16.mxu0 %v7734_v13 }
 0x232   : > { %2292 = vmatprep.mubr.bf16.mxu1 %v7307_v18  ;;  %2335 = vmatprep.mubr.bf16.mxu0 %v7307_v18 }
 0x234   : > { %2263 = vmatpush1.bf16.msra.mxu1 %v7741_v14  ;;  %2306 = vmatpush1.bf16.msra.mxu0 %v7755_v33 }
 0x235   : > { %2264 = vmatprep.subr.bf16.mxu1 %v7749_v16  ;;  %2307 = vmatprep.subr.bf16.mxu0 %v7770_v54 }
 0x238   : > { %2265 = vmatpush1.bf16.msra.mxu1 %v7765_v53  ;;  %2308 = vmatpush1.bf16.msra.mxu0 %v7781_v38 }
 0x239   : > { %2266 = vmatprep.subr.bf16.mxu1 %v7775_v55  ;;  %2309 = vmatprep.subr.bf16.mxu0 %v7788_v59 }
 0x23c   : > { %2267 = vmatpush1.bf16.msra.mxu1 %v7797_v21  ;;  %2310 = vmatpush1.bf16.msra.mxu0 %v7810_v23 }
 0x23d   : > { %2268 = vmatprep.subr.bf16.mxu1 %v7804_v62  ;;  %2311 = vmatprep.subr.bf16.mxu0 %v7825_v15 }
 0x240   : > { %2269 = vmatpush1.bf16.msra.mxu1 %v7820_v12  ;;  %2312 = vmatpush1.bf16.msra.mxu0 %v7837_v4 }
 0x241   : > { %2270 = vmatprep.subr.bf16.mxu1 %v7831_v37  ;;  %2313 = vmatprep.subr.bf16.mxu0 %v7844_v8 }
 0x244   : > { %2271 = vmatpush1.bf16.msra.mxu1 %v7853_v20  ;;  %2314 = vmatpush1.bf16.msra.mxu0 %v7866_v22 }
 0x245   : > { %2272 = vmatprep.subr.bf16.mxu1 %v7860_v49  ;;  %2315 = vmatprep.subr.bf16.mxu0 %v7881_v0 }
 0x248   : > { %2273 = vmatpush1.bf16.msra.mxu1 %v7876_v63  ;;  %2316 = vmatpush1.bf16.msra.mxu0 %v7893_v1 }
 0x249   : > { %2274 = vmatprep.subr.bf16.mxu1 %v7888_v42  ;;  %2317 = vmatprep.subr.bf16.mxu0 %v7900_v6 }
 0x24c   : > { %2275 = vmatpush1.bf16.msra.mxu1 %v7909_v26  ;;  %2318 = vmatpush1.bf16.msra.mxu0 %v7917_v17 }
 0x24d   : > { %2416 = vmatprep.subr.bf16.mxu1 %v7652_v19  ;;  %2459 = vmatprep.subr.bf16.mxu0 %v7666_v24 }
 0x302   : > { %v2139_v25 = vpop.f32.mrb[32].mxu1  ;;  %v2182_v7 = vpop.f32.mrb[48].mxu0 }
 0x303   : > { %v6183_v11 = vadd.f32 %v2139_v25, %v7997_v2  ;;  %v2141_v44 = vpop.f32.mrb[33].mxu1  ;;  %v2184_v28 = vpop.f32.mrb[49].mxu0  ;;  %v6215_v60 = vadd.f32 %v2182_v7, %v8015_v41 }
 0x304   : > { %v6184_v34 = vadd.f32 %v2141_v44, %v8001_v5  ;;  %v2143_v27 = vpop.f32.mrb[34].mxu1  ;;  %v2186_v35 = vpop.f32.mrb[50].mxu0  ;;  %v6216_v32 = vadd.f32 %v2184_v28, %v8010_v30 }
 0x305   : > { %v5680_v36 = vmul.f32 -1.442695, %v6183_v11  ;;  %v6185_v46 = vadd.f32 %v2143_v27, %v7997_v2  ;;  %v2145_v50 = vpop.f32.mrb[35].mxu1  ;;  %v2188_v51 = vpop.f32.mrb[51].mxu0  ;;  %v6217_v29 = vadd.f32 %v2186_v35, %v8015_v41 }
 0x306   : > { %v5682_v52 = vmul.f32 -1.442695, %v6184_v34  ;;  %v6186_v48 = vadd.f32 %v2145_v50, %v8001_v5  ;;  %v5684_v61 = vmul.f32 -1.442695, %v6216_v32  ;;  %v6218_v40 = vadd.f32 %v2188_v51, %v8010_v30 }
 0x307   : > { %6722 = vpow2.f32 %v5680_v36  ;;  %v5681_v56 = vmul.f32 -1.442695, %v6185_v46 }
 0x308   : > { %6724 = vpow2.f32 %v5682_v52  ;;  %v5683_v57 = vmul.f32 -1.442695, %v6186_v48  ;;  %v5685_v34 = vmul.f32 -1.442695, %v6218_v40 }
 0x309   : > { %6726 = vpow2.f32 %v5681_v56 }
 0x30a   : > { %6728 = vpow2.f32 %v5683_v57 }
 0x30b   : > { %6730 = vtanh.f32 %v6215_v60 }
 0x30c   : > { %6732 = vpow2.f32 %v5684_v61 }
 0x30d   : > { %6734 = vtanh.f32 %v6217_v29 }
 0x311   : > { %v6723_v25 = vpop.eup %6722 }
 0x312   : > { %v6725_v11 = vpop.eup %6724  ;;  %v2205_v44 = vadd.f32 1.0, %v6723_v25 }
 0x313   : > { %v2217_v27 = vadd.f32 1.0, %v6725_v11  ;;  %v6727_v47 = vpop.eup %6726 }
 0x314   : > { %6736 = vrcp.f32 %v2205_v44  ;;  %v2206_v28 = vadd.f32 1.0, %v6727_v47  ;;  %v6729_v36 = vpop.eup %6728 }
 0x315   : > { %6738 = vrcp.f32 %v2217_v27  ;;  %v2218_v7 = vadd.f32 1.0, %v6729_v36  ;;  %v6731_v46 = vpop.eup %6730 }
 0x316   : > { %6740 = vpow2.f32 %v5685_v34  ;;  %v6733_v50 = vpop.eup %6732 }
 0x317   : > { %6742 = vrcp.f32 %v2206_v28  ;;  %v6735_v35 = vpop.eup %6734  ;;  %v2231_v60 = vadd.f32 1.0, %v6733_v50 }
 0x318   : > { %6744 = vrcp.f32 %v2218_v7 }
 0x319   : > { %6746 = vrcp.f32 %v2231_v60 }
 0x31e   : > { %v6737_v51 = vpop.eup %6736 }
 0x31f   : > { %v6739_v52 = vpop.eup %6738  ;;  %v2239_v48 = vmul.f32 %v6737_v51, %v6731_v46 }
 0x320   : > { %v6741_v56 = vpop.eup %6740  ;;  %v2237_v57 = vmul.f32 0.0, %v6739_v52 }
 0x321   : > { %v6743_v32 = vpop.eup %6742  ;;  %v2232_v25 = vadd.f32 1.0, %v6741_v56 }
 0x322   : > { %v8021_v61 = vadd.f32 %v2239_v48, %v2237_v57  ;;  %v2240_v40 = vmul.f32 %v6743_v32, %v6735_v35  ;;  %v6745_v29 = vpop.eup %6744 }
 0x323   : > { %v2238_v11 = vmul.f32 0.0, %v6745_v29  ;;  %v6747_v34 = vpop.eup %6746 }
 0x324   : > { %6748 = vtanh.f32 %v8021_v61 }
 0x325   : > { %v8024_v44 = vadd.f32 %v2240_v40, %v2238_v11  ;;  %6750 = vrcp.f32 %v2232_v25 }
 0x327   : > { %6752 = vtanh.f32 %v8024_v44 }
 0x32e   : > { %v6749_v27 = vpop.eup %6748 }
 0x32f   : > { %v6751_v47 = vpop.eup %6750  ;;  %v2245_v36 = vmul.f32 %v6749_v27, %v6747_v34 }
 0x331   : > { %v6753_v28 = vpop.eup %6752 }
 0x332   : > { %v2246_v7 = vmul.f32 %v6753_v28, %v6751_v47 }
 0x334   : > { %v8027_v46 = vpack.c.bf16 %v2246_v7, %v2245_v36 }
 0x336   : > { %2293 = vmatmul.mubr.bf16.vlgmr.msra.gmra.mrb[36].mxu1 %v8027_v46  ;;  %2336 = vmatmul.mubr.bf16.vlgmr.msra.gmra.mrb[52].mxu0 %v8027_v46 }
 0x337   : > { %2417 = vmatpush1.bf16.msra.mxu1 %v7718_v3  ;;  %2460 = vmatpush1.bf16.msra.mxu0 %v7728_v10 }
 0x338   : > { %2418 = vmatprep.subr.bf16.mxu1 %v7723_v9  ;;  %2461 = vmatprep.subr.bf16.mxu0 %v7734_v13 }
 0x339   : > { %2448 = vmatprep.mubr.bf16.mxu1 %v7307_v18  ;;  %2491 = vmatprep.mubr.bf16.mxu0 %v7307_v18 }
 0x33b   : > { %2419 = vmatpush1.bf16.msra.mxu1 %v7741_v14  ;;  %2462 = vmatpush1.bf16.msra.mxu0 %v7755_v33 }
 0x33c   : > { %2420 = vmatprep.subr.bf16.mxu1 %v7749_v16  ;;  %2463 = vmatprep.subr.bf16.mxu0 %v7770_v54 }
 0x33f   : > { %2421 = vmatpush1.bf16.msra.mxu1 %v7765_v53  ;;  %2464 = vmatpush1.bf16.msra.mxu0 %v7781_v38 }
 0x340   : > { %2422 = vmatprep.subr.bf16.mxu1 %v7775_v55  ;;  %2465 = vmatprep.subr.bf16.mxu0 %v7788_v59 }
 0x343   : > { %2423 = vmatpush1.bf16.msra.mxu1 %v7797_v21  ;;  %2466 = vmatpush1.bf16.msra.mxu0 %v7810_v23 }
 0x344   : > { %2424 = vmatprep.subr.bf16.mxu1 %v7804_v62  ;;  %2467 = vmatprep.subr.bf16.mxu0 %v7825_v15 }
 0x347   : > { %2425 = vmatpush1.bf16.msra.mxu1 %v7820_v12  ;;  %2468 = vmatpush1.bf16.msra.mxu0 %v7837_v4 }
 0x348   : > { %2426 = vmatprep.subr.bf16.mxu1 %v7831_v37  ;;  %2469 = vmatprep.subr.bf16.mxu0 %v7844_v8 }
 0x34b   : > { %2427 = vmatpush1.bf16.msra.mxu1 %v7853_v20  ;;  %2470 = vmatpush1.bf16.msra.mxu0 %v7866_v22 }
 0x34c   : > { %2428 = vmatprep.subr.bf16.mxu1 %v7860_v49  ;;  %2471 = vmatprep.subr.bf16.mxu0 %v7881_v0 }
 0x34f   : > { %2429 = vmatpush1.bf16.msra.mxu1 %v7876_v63  ;;  %2472 = vmatpush1.bf16.msra.mxu0 %v7893_v1 }
 0x350   : > { %2430 = vmatprep.subr.bf16.mxu1 %v7888_v42  ;;  %2473 = vmatprep.subr.bf16.mxu0 %v7900_v6 }
 0x353   : > { %2431 = vmatpush1.bf16.msra.mxu1 %v7909_v26  ;;  %2474 = vmatpush1.bf16.msra.mxu0 %v7917_v17 }
 0x354   : > { %2572 = vmatprep.subr.bf16.mxu1 %v7652_v19  ;;  %2615 = vmatprep.subr.bf16.mxu0 %v7666_v24 }
 0x409   : > { %v2294_v50 = vpop.f32.mrb[36].mxu1  ;;  %v2337_v35 = vpop.f32.mrb[52].mxu0 }
 0x40a   : > { %v6187_v51 = vadd.f32 %v2294_v50, %v7997_v2  ;;  %v2296_v52 = vpop.f32.mrb[37].mxu1  ;;  %v2339_v48 = vpop.f32.mrb[53].mxu0  ;;  %v6219_v36 = vadd.f32 %v2337_v35, %v8015_v41 }
 0x40b   : > { %v6188_v56 = vadd.f32 %v2296_v52, %v8001_v5  ;;  %v2298_v57 = vpop.f32.mrb[38].mxu1  ;;  %v2341_v32 = vpop.f32.mrb[54].mxu0  ;;  %v6220_v28 = vadd.f32 %v2339_v48, %v8010_v30 }
 0x40c   : > { %v5686_v60 = vmul.f32 -1.442695, %v6187_v51  ;;  %v6189_v40 = vadd.f32 %v2298_v57, %v7997_v2  ;;  %v2300_v29 = vpop.f32.mrb[39].mxu1  ;;  %v2343_v25 = vpop.f32.mrb[55].mxu0  ;;  %v6221_v51 = vadd.f32 %v2341_v32, %v8015_v41 }
 0x40d   : > { %v5688_v11 = vmul.f32 -1.442695, %v6188_v56  ;;  %v6190_v34 = vadd.f32 %v2300_v29, %v8001_v5  ;;  %v5690_v7 = vmul.f32 -1.442695, %v6220_v28  ;;  %v6222_v50 = vadd.f32 %v2343_v25, %v8010_v30 }
 0x40e   : > { %6754 = vpow2.f32 %v5686_v60  ;;  %v5687_v27 = vmul.f32 -1.442695, %v6189_v40 }
 0x40f   : > { %6756 = vpow2.f32 %v5688_v11  ;;  %v5689_v47 = vmul.f32 -1.442695, %v6190_v34  ;;  %v5691_v60 = vmul.f32 -1.442695, %v6222_v50 }
 0x410   : > { %6758 = vpow2.f32 %v5687_v27 }
 0x411   : > { %6760 = vpow2.f32 %v5689_v47 }
 0x412   : > { %6762 = vtanh.f32 %v6219_v36 }
 0x413   : > { %6764 = vpow2.f32 %v5690_v7 }
 0x414   : > { %6766 = vtanh.f32 %v6221_v51 }
 0x418   : > { %v6755_v52 = vpop.eup %6754 }
 0x419   : > { %v6757_v56 = vpop.eup %6756  ;;  %v2360_v57 = vadd.f32 1.0, %v6755_v52 }
 0x41a   : > { %v2372_v40 = vadd.f32 1.0, %v6757_v56  ;;  %v6759_v29 = vpop.eup %6758 }
 0x41b   : > { %6768 = vrcp.f32 %v2360_v57  ;;  %v2361_v48 = vadd.f32 1.0, %v6759_v29  ;;  %v6761_v11 = vpop.eup %6760 }
 0x41c   : > { %6770 = vrcp.f32 %v2372_v40  ;;  %v2373_v35 = vadd.f32 1.0, %v6761_v11  ;;  %v6763_v25 = vpop.eup %6762 }
 0x41d   : > { %6772 = vpow2.f32 %v5691_v60  ;;  %v6765_v34 = vpop.eup %6764 }
 0x41e   : > { %6774 = vrcp.f32 %v2361_v48  ;;  %v6767_v32 = vpop.eup %6766  ;;  %v2386_v51 = vadd.f32 1.0, %v6765_v34 }
 0x41f   : > { %6776 = vrcp.f32 %v2373_v35 }
 0x420   : > { %6778 = vrcp.f32 %v2386_v51 }
 0x425   : > { %v6769_v27 = vpop.eup %6768 }
 0x426   : > { %v6771_v47 = vpop.eup %6770  ;;  %v2394_v28 = vmul.f32 %v6769_v27, %v6763_v25 }
 0x427   : > { %v6773_v36 = vpop.eup %6772  ;;  %v2392_v7 = vmul.f32 %v6771_v47, %v8021_v61 }
 0x428   : > { %v6775_v50 = vpop.eup %6774  ;;  %v2387_v40 = vadd.f32 1.0, %v6773_v36 }
 0x429   : > { %v8074_v52 = vadd.f32 %v2394_v28, %v2392_v7  ;;  %v2395_v56 = vmul.f32 %v6775_v50, %v6767_v32  ;;  %v6777_v57 = vpop.eup %6776 }
 0x42a   : > { %v2393_v60 = vmul.f32 %v6777_v57, %v8024_v44  ;;  %v6779_v48 = vpop.eup %6778 }
 0x42b   : > { %6780 = vtanh.f32 %v8074_v52 }
 0x42c   : > { %v8078_v29 = vadd.f32 %v2395_v56, %v2393_v60  ;;  %6782 = vrcp.f32 %v2387_v40 }
 0x42e   : > { %6784 = vtanh.f32 %v8078_v29 }
 0x435   : > { %v6781_v11 = vpop.eup %6780 }
 0x436   : > { %v6783_v61 = vpop.eup %6782  ;;  %v2400_v25 = vmul.f32 %v6781_v11, %v6779_v48 }
 0x438   : > { %v6785_v35 = vpop.eup %6784 }
 0x439   : > { %v2401_v34 = vmul.f32 %v6785_v35, %v6783_v61 }
 0x43b   : > { %v8081_v27 = vpack.c.bf16 %v2401_v34, %v2400_v25 }
 0x43d   : > { %2449 = vmatmul.mubr.bf16.vlgmr.msra.gmra.mrb[40].mxu1 %v8081_v27  ;;  %2492 = vmatmul.mubr.bf16.vlgmr.msra.gmra.mrb[56].mxu0 %v8081_v27 }
 0x43e   : > { %2573 = vmatpush1.bf16.msra.mxu1 %v7718_v3  ;;  %2616 = vmatpush1.bf16.msra.mxu0 %v7728_v10 }
 0x43f   : > { %2574 = vmatprep.subr.bf16.mxu1 %v7723_v9  ;;  %2617 = vmatprep.subr.bf16.mxu0 %v7734_v13 }
 0x440   : > { %2604 = vmatprep.mubr.bf16.mxu1 %v7307_v18  ;;  %2647 = vmatprep.mubr.bf16.mxu0 %v7307_v18 }
 0x442   : > { %2575 = vmatpush1.bf16.msra.mxu1 %v7741_v14  ;;  %2618 = vmatpush1.bf16.msra.mxu0 %v7755_v33 }
 0x443   : > { %2576 = vmatprep.subr.bf16.mxu1 %v7749_v16  ;;  %2619 = vmatprep.subr.bf16.mxu0 %v7770_v54 }
 0x446   : > { %2577 = vmatpush1.bf16.msra.mxu1 %v7765_v53  ;;  %2620 = vmatpush1.bf16.msra.mxu0 %v7781_v38 }
 0x447   : > { %2578 = vmatprep.subr.bf16.mxu1 %v7775_v55  ;;  %2621 = vmatprep.subr.bf16.mxu0 %v7788_v59 }
 0x44a   : > { %2579 = vmatpush1.bf16.msra.mxu1 %v7797_v21  ;;  %2622 = vmatpush1.bf16.msra.mxu0 %v7810_v23 }
 0x44b   : > { %2580 = vmatprep.subr.bf16.mxu1 %v7804_v62  ;;  %2623 = vmatprep.subr.bf16.mxu0 %v7825_v15 }
 0x44e   : > { %2581 = vmatpush1.bf16.msra.mxu1 %v7820_v12  ;;  %2624 = vmatpush1.bf16.msra.mxu0 %v7837_v4 }
 0x44f   : > { %2582 = vmatprep.subr.bf16.mxu1 %v7831_v37  ;;  %2625 = vmatprep.subr.bf16.mxu0 %v7844_v8 }
 0x452   : > { %2583 = vmatpush1.bf16.msra.mxu1 %v7853_v20  ;;  %2626 = vmatpush1.bf16.msra.mxu0 %v7866_v22 }
 0x453   : > { %2584 = vmatprep.subr.bf16.mxu1 %v7860_v49  ;;  %2627 = vmatprep.subr.bf16.mxu0 %v7881_v0 }
 0x456   : > { %2585 = vmatpush1.bf16.msra.mxu1 %v7876_v63  ;;  %2628 = vmatpush1.bf16.msra.mxu0 %v7893_v1 }
 0x457   : > { %2586 = vmatprep.subr.bf16.mxu1 %v7888_v42  ;;  %2629 = vmatprep.subr.bf16.mxu0 %v7900_v6 }
 0x45a   : > { %2587 = vmatpush1.bf16.msra.mxu1 %v7909_v26  ;;  %2630 = vmatpush1.bf16.msra.mxu0 %v7917_v17 }
 0x45b   : > { %2728 = vmatprep.subr.bf16.mxu1 %v7652_v19  ;;  %2771 = vmatprep.subr.bf16.mxu0 %v7666_v24 }
 0x510   : > { %v2450_v44 = vpop.f32.mrb[40].mxu1  ;;  %v2493_v32 = vpop.f32.mrb[56].mxu0 }
 0x511   : > { %v6191_v47 = vadd.f32 %v2450_v44, %v7997_v2  ;;  %v2452_v28 = vpop.f32.mrb[41].mxu1  ;;  %v2495_v36 = vpop.f32.mrb[57].mxu0  ;;  %v6223_v35 = vadd.f32 %v2493_v32, %v8015_v41 }
 0x512   : > { %v6192_v7 = vadd.f32 %v2452_v28, %v8001_v5  ;;  %v2454_v50 = vpop.f32.mrb[42].mxu1  ;;  %v2497_v51 = vpop.f32.mrb[58].mxu0  ;;  %v6224_v61 = vadd.f32 %v2495_v36, %v8010_v30 }
 0x513   : > { %v5692_v56 = vmul.f32 -1.442695, %v6191_v47  ;;  %v6193_v57 = vadd.f32 %v2454_v50, %v7997_v2  ;;  %v2456_v40 = vpop.f32.mrb[43].mxu1  ;;  %v2499_v60 = vpop.f32.mrb[59].mxu0  ;;  %v6225_v44 = vadd.f32 %v2497_v51, %v8015_v41 }
 0x514   : > { %v5694_v48 = vmul.f32 -1.442695, %v6192_v7  ;;  %v6194_v19 = vadd.f32 %v2456_v40, %v8001_v5  ;;  %v5696_v25 = vmul.f32 -1.442695, %v6224_v61  ;;  %v6226_v34 = vadd.f32 %v2499_v60, %v8010_v30 }
 0x515   : > { %6786 = vpow2.f32 %v5692_v56  ;;  %v5693_v24 = vmul.f32 -1.442695, %v6193_v57 }
 0x516   : > { %6788 = vpow2.f32 %v5694_v48  ;;  %v5695_v11 = vmul.f32 -1.442695, %v6194_v19  ;;  %v5697_v50 = vmul.f32 -1.442695, %v6226_v34 }
 0x517   : > { %6790 = vpow2.f32 %v5693_v24 }
 0x518   : > { %6792 = vpow2.f32 %v5695_v11 }
 0x519   : > { %6794 = vtanh.f32 %v6223_v35 }
 0x51a   : > { %6796 = vpow2.f32 %v5696_v25 }
 0x51b   : > { %6798 = vtanh.f32 %v6225_v44 }
 0x51f   : > { %v6787_v47 = vpop.eup %6786 }
 0x520   : > { %v6789_v28 = vpop.eup %6788  ;;  %v2516_v7 = vadd.f32 1.0, %v6787_v47 }
 0x521   : > { %v2528_v56 = vadd.f32 1.0, %v6789_v28  ;;  %v6791_v57 = vpop.eup %6790 }
 0x522   : > { %6800 = vrcp.f32 %v2516_v7  ;;  %v2517_v36 = vadd.f32 1.0, %v6791_v57  ;;  %v6793_v40 = vpop.eup %6792 }
 0x523   : > { %6802 = vrcp.f32 %v2528_v56  ;;  %v2529_v32 = vadd.f32 1.0, %v6793_v40  ;;  %v6795_v60 = vpop.eup %6794 }
 0x524   : > { %6804 = vpow2.f32 %v5697_v50  ;;  %v6797_v48 = vpop.eup %6796 }
 0x525   : > { %6806 = vrcp.f32 %v2517_v36  ;;  %v6799_v51 = vpop.eup %6798  ;;  %v2542_v34 = vadd.f32 1.0, %v6797_v48 }
 0x526   : > { %6808 = vrcp.f32 %v2529_v32 }
 0x527   : > { %6810 = vrcp.f32 %v2542_v34 }
 0x52c   : > { %v6801_v19 = vpop.eup %6800 }
 0x52d   : > { %v6803_v24 = vpop.eup %6802  ;;  %v2550_v11 = vmul.f32 %v6801_v19, %v6795_v60 }
 0x52e   : > { %v6805_v61 = vpop.eup %6804  ;;  %v2548_v35 = vmul.f32 %v6803_v24, %v8074_v52 }
 0x52f   : > { %v6807_v25 = vpop.eup %6806  ;;  %v2543_v7 = vadd.f32 1.0, %v6805_v61 }
 0x530   : > { %v8128_v44 = vadd.f32 %v2550_v11, %v2548_v35  ;;  %v2551_v47 = vmul.f32 %v6807_v25, %v6799_v51  ;;  %v6809_v28 = vpop.eup %6808 }
 0x531   : > { %v2549_v50 = vmul.f32 %v6809_v28, %v8078_v29  ;;  %v6811_v57 = vpop.eup %6810 }
 0x532   : > { %6812 = vtanh.f32 %v8128_v44 }
 0x533   : > { %v8132_v56 = vadd.f32 %v2551_v47, %v2549_v50  ;;  %6814 = vrcp.f32 %v2543_v7 }
 0x535   : > { %6816 = vtanh.f32 %v8132_v56 }
 0x53c   : > { %v6813_v36 = vpop.eup %6812 }
 0x53d   : > { %v6815_v52 = vpop.eup %6814  ;;  %v2556_v32 = vmul.f32 %v6813_v36, %v6811_v57 }
 0x53f   : > { %v6817_v40 = vpop.eup %6816 }
 0x540   : > { %v2557_v60 = vmul.f32 %v6817_v40, %v6815_v52 }
 0x542   : > { %v8135_v48 = vpack.c.bf16 %v2557_v60, %v2556_v32 }
 0x544   : > { %2605 = vmatmul.mubr.bf16.vlgmr.msra.gmra.mrb[44].mxu1 %v8135_v48  ;;  %2648 = vmatmul.mubr.bf16.vlgmr.msra.gmra.mrb[60].mxu0 %v8135_v48 }
 0x545   : > { %2729 = vmatpush1.bf16.msra.mxu1 %v7718_v3  ;;  %2772 = vmatpush1.bf16.msra.mxu0 %v7728_v10  ;;  %v8174_v3 = vld [vmem:[%s9494_s8 + $0x4] ss:$16 sps:$4 sm:$0xff]  }
 0x546   : > { %2730 = vmatprep.subr.bf16.mxu1 %v7723_v9  ;;  %2773 = vmatprep.subr.bf16.mxu0 %v7734_v13  ;;  %v8180_v9 = vld [vmem:[%s9494_s8 + $0xc] ss:$16 sps:$4 sm:$0xff]  }
 0x547   : > { %2760 = vmatprep.mubr.bf16.mxu1 %v7307_v18  ;;  %2803 = vmatprep.mubr.bf16.mxu0 %v7307_v18 }
 0x549   : > { %2731 = vmatpush1.bf16.msra.mxu1 %v7741_v14  ;;  %2774 = vmatpush1.bf16.msra.mxu0 %v7755_v33 }
 0x54a   : > { %2732 = vmatprep.subr.bf16.mxu1 %v7749_v16  ;;  %2775 = vmatprep.subr.bf16.mxu0 %v7770_v54 }
 0x54d   : > { %2733 = vmatpush1.bf16.msra.mxu1 %v7765_v53  ;;  %2776 = vmatpush1.bf16.msra.mxu0 %v7781_v38 }
 0x54e   : > { %2734 = vmatprep.subr.bf16.mxu1 %v7775_v55  ;;  %2777 = vmatprep.subr.bf16.mxu0 %v7788_v59 }
 0x551   : > { %2735 = vmatpush1.bf16.msra.mxu1 %v7797_v21  ;;  %2778 = vmatpush1.bf16.msra.mxu0 %v7810_v23 }
 0x552   : > { %2736 = vmatprep.subr.bf16.mxu1 %v7804_v62  ;;  %2779 = vmatprep.subr.bf16.mxu0 %v7825_v15 }
 0x555   : > { %2737 = vmatpush1.bf16.msra.mxu1 %v7820_v12  ;;  %2780 = vmatpush1.bf16.msra.mxu0 %v7837_v4 }
 0x556   : > { %2738 = vmatprep.subr.bf16.mxu1 %v7831_v37  ;;  %2781 = vmatprep.subr.bf16.mxu0 %v7844_v8 }
 0x559   : > { %2739 = vmatpush1.bf16.msra.mxu1 %v7853_v20  ;;  %2782 = vmatpush1.bf16.msra.mxu0 %v7866_v22 }
 0x55a   : > { %2740 = vmatprep.subr.bf16.mxu1 %v7860_v49  ;;  %2783 = vmatprep.subr.bf16.mxu0 %v7881_v0 }
 0x55d   : > { %2741 = vmatpush1.bf16.msra.mxu1 %v7876_v63  ;;  %2784 = vmatpush1.bf16.msra.mxu0 %v7893_v1 }
 0x55e   : > { %2742 = vmatprep.subr.bf16.mxu1 %v7888_v42  ;;  %2785 = vmatprep.subr.bf16.mxu0 %v7900_v6 }
 0x561   : > { %2743 = vmatpush1.bf16.msra.mxu1 %v7909_v26  ;;  %2786 = vmatpush1.bf16.msra.mxu0 %v7917_v17 }
 0x562   : > { %2884 = vmatprep.subr.bf16.mxu1 %v8174_v3  ;;  %2927 = vmatprep.subr.bf16.mxu0 %v8180_v9 }
 0x617   : > { %v2606_v10 = vpop.f32.mrb[44].mxu1  ;;  %v2649_v13 = vpop.f32.mrb[60].mxu0 }
 0x618   : > { %v6195_v14 = vadd.f32 %v2606_v10, %v7997_v2  ;;  %v2608_v16 = vpop.f32.mrb[45].mxu1  ;;  %v2651_v33 = vpop.f32.mrb[61].mxu0  ;;  %v6227_v8 = vadd.f32 %v2649_v13, %v8015_v41 }
 0x619   : > { %v6196_v53 = vadd.f32 %v2608_v16, %v8001_v5  ;;  %v2610_v54 = vpop.f32.mrb[46].mxu1  ;;  %v2653_v55 = vpop.f32.mrb[62].mxu0  ;;  %v6228_v4 = vadd.f32 %v2651_v33, %v8010_v30 }
 0x61a   : > { %v5698_v38 = vmul.f32 -1.442695, %v6195_v14  ;;  %v6197_v59 = vadd.f32 %v2610_v54, %v7997_v2  ;;  %v2612_v21 = vpop.f32.mrb[47].mxu1  ;;  %v2655_v62 = vpop.f32.mrb[63].mxu0  ;;  %v6229_v22 = vadd.f32 %v2653_v55, %v8015_v41  ;;  %v8218_v54 = vld [vmem:[%s9494_s8 + $0x24] ss:$16 sps:$4 sm:$0xff]  }
 0x61b   : > { %v5700_v23 = vmul.f32 -1.442695, %v6196_v53  ;;  %v6198_v12 = vadd.f32 %v2612_v21, %v8001_v5  ;;  %v5702_v20 = vmul.f32 -1.442695, %v6228_v4  ;;  %v6230_v49 = vadd.f32 %v2655_v62, %v8010_v30  ;;  %v8212_v53 = vld [vmem:[%s9494_s8 + $0x8] ss:$16 sps:$4 sm:$0xff]  }
 0x61c   : > { %6818 = vpow2.f32 %v5698_v38  ;;  %v5699_v15 = vmul.f32 -1.442695, %v6197_v59  ;;  %v8224_v55 = vld [vmem:[%s9494_s8 + $0x2c] ss:$16 sps:$4 sm:$0xff]   ;;  %v8232_v38 = vld [vmem:[%s9494_s8 + $0x20] ss:$16 sps:$4 sm:$0xff]  }
 0x61d   : > { %6820 = vpow2.f32 %v5700_v23  ;;  %v5701_v37 = vmul.f32 -1.442695, %v6198_v12  ;;  %v5703_v1 = vmul.f32 -1.442695, %v6230_v49  ;;  %v8238_v59 = vld [vmem:[%s9494_s8 + $0x28] ss:$16 sps:$4 sm:$0xff]  }
 0x61e   : > { %6822 = vpow2.f32 %v5699_v15  ;;  %v8244_v21 = vld [vmem:[%s9494_s8 + $0x44] ss:$16 sps:$4 sm:$0xff]   ;;  %v8250_v62 = vld [vmem:[%s9494_s8 + $0x4c] ss:$16 sps:$4 sm:$0xff]   ;;  %v8256_v23 = vld [vmem:[%s9494_s8 + $0x40] ss:$16 sps:$4 sm:$0xff]  }
 0x61f   : > { %6824 = vpow2.f32 %v5701_v37  ;;  %v8262_v12 = vld [vmem:[%s9494_s8 + $0x48] ss:$16 sps:$4 sm:$0xff]   ;;  %v8268_v15 = vld [vmem:[%s9494_s8 + $0x64] ss:$16 sps:$4 sm:$0xff]   ;;  %v8274_v37 = vld [vmem:[%s9494_s8 + $0x6c] ss:$16 sps:$4 sm:$0xff]  }
 0x620   : > { %6826 = vtanh.f32 %v6227_v8  ;;  %v8280_v4 = vld [vmem:[%s9494_s8 + $0x60] ss:$16 sps:$4 sm:$0xff]   ;;  %v8286_v8 = vld [vmem:[%s9494_s8 + $0x68] ss:$16 sps:$4 sm:$0xff]   ;;  %v8298_v49 = vld [vmem:[%s9494_s8 + $0x8c] ss:$16 sps:$4 sm:$0xff]  }
 0x621   : > { %6828 = vpow2.f32 %v5702_v20  ;;  %v8292_v20 = vld [vmem:[%s9494_s8 + $0x84] ss:$16 sps:$4 sm:$0xff]  }
 0x622   : > { %6830 = vtanh.f32 %v6229_v22  ;;  %v8304_v22 = vld [vmem:[%s9494_s8 + $0x80] ss:$16 sps:$4 sm:$0xff]  }
 0x626   : > { %v6819_v63 = vpop.eup %6818 }
 0x627   : > { %v6821_v0 = vpop.eup %6820  ;;  %v2672_v42 = vadd.f32 1.0, %v6819_v63  ;;  %v8310_v63 = vld [vmem:[%s9494_s8 + $0x88] ss:$16 sps:$4 sm:$0xff]  }
 0x628   : > { %v2684_v6 = vadd.f32 1.0, %v6821_v0  ;;  %v6823_v26 = vpop.eup %6822  ;;  %v8316_v0 = vld [vmem:[%s9494_s8 + $0xa4] ss:$16 sps:$4 sm:$0xff]  }
 0x629   : > { %6832 = vrcp.f32 %v2672_v42  ;;  %v2673_v17 = vadd.f32 1.0, %v6823_v26  ;;  %v6825_v29 = vpop.eup %6824  ;;  %v8322_v42 = vld [vmem:[%s9494_s8 + $0xac] ss:$16 sps:$4 sm:$0xff]   ;;  %v8340_v26 = vld [vmem:[%s9494_s8 + $0xc4] ss:$16 sps:$4 sm:$0xff]  }
 0x62a   : > { %6834 = vrcp.f32 %v2684_v6  ;;  %v2685_v51 = vadd.f32 1.0, %v6825_v29  ;;  %v6827_v19 = vpop.eup %6826  ;;  %v8334_v6 = vld [vmem:[%s9494_s8 + $0xa8] ss:$16 sps:$4 sm:$0xff]   ;;  %v8352_v29 = vld [vmem:[%s9494_s8 + $0xc0] ss:$16 sps:$4 sm:$0xff]  }
 0x62b   : > { %6836 = vpow2.f32 %v5703_v1  ;;  %v6829_v24 = vpop.eup %6828  ;;  %v8328_v1 = vld [vmem:[%s9494_s8 + $0xa0] ss:$16 sps:$4 sm:$0xff]  }
 0x62c   : > { %6838 = vrcp.f32 %v2673_v17  ;;  %v6831_v11 = vpop.eup %6830  ;;  %v2698_v7 = vadd.f32 1.0, %v6829_v24  ;;  %v8346_v17 = vld [vmem:[%s9494_s8 + $0xcc] ss:$16 sps:$4 sm:$0xff]  }
 0x62d   : > { %6840 = vrcp.f32 %v2685_v51  ;;  %v8358_v51 = vld [vmem:[%s9494_s8 + $0xc8] ss:$16 sps:$4 sm:$0xff]   ;;  %v8370_v24 = vld [vmem:[%s9494_s8 + $0xec] ss:$16 sps:$4 sm:$0xff]  }
 0x62e   : > { %6842 = vrcp.f32 %v2698_v7 }
 0x633   : > { %v6833_v61 = vpop.eup %6832 }
 0x634   : > { %v6835_v35 = vpop.eup %6834  ;;  %v2706_v25 = vmul.f32 %v6833_v61, %v6827_v19  ;;  %v8364_v19 = vld [vmem:[%s9494_s8 + $0xe4] ss:$16 sps:$4 sm:$0xff]   ;;  %v8382_v61 = vld [vmem:[%s9494_s8 + $0xe8] ss:$16 sps:$4 sm:$0xff]  }
 0x635   : > { %v6837_v34 = vpop.eup %6836  ;;  %v2704_v47 = vmul.f32 %v6835_v35, %v8128_v44 }
 0x636   : > { %v6839_v28 = vpop.eup %6838  ;;  %v2699_v52 = vadd.f32 1.0, %v6837_v34 }
 0x637   : > { %v8192_v50 = vadd.f32 %v2706_v25, %v2704_v47  ;;  %v2707_v57 = vmul.f32 %v6839_v28, %v6831_v11  ;;  %v6841_v36 = vpop.eup %6840  ;;  %v8376_v11 = vld [vmem:[%s9494_s8 + $0xe0] ss:$16 sps:$4 sm:$0xff]  }
 0x638   : > { %v2705_v40 = vmul.f32 %v6841_v36, %v8132_v56  ;;  %v6843_v60 = vpop.eup %6842  ;;  %v8206_v56 = vld [vmem:[%s9494_s8] ss:$16 sps:$4 sm:$0xff]  }
 0x639   : > { %6844 = vtanh.f32 %v8192_v50 }
 0x63a   : > { %v8196_v32 = vadd.f32 %v2707_v57, %v2705_v40  ;;  %6846 = vrcp.f32 %v2699_v52 }
 0x63c   : > { %6848 = vtanh.f32 %v8196_v32 }
 0x643   : > { %v6845_v10 = vpop.eup %6844 }
 0x644   : > { %v6847_v44 = vpop.eup %6846  ;;  %v2712_v14 = vmul.f32 %v6845_v10, %v6843_v60 }
 0x646   : > { %v6849_v13 = vpop.eup %6848 }
 0x647   : > { %v2713_v16 = vmul.f32 %v6849_v13, %v6847_v44 }
 0x649   : > { %v8199_v33 = vpack.c.bf16 %v2713_v16, %v2712_v14 }
 0x64b   : > { %2761 = vmatmul.mubr.bf16.vlgmr.msra.gmra.mrb[48].mxu1 %v8199_v33  ;;  %2804 = vmatmul.mubr.bf16.vlgmr.msra.gmra.mrb[64].mxu0 %v8199_v33 }
 0x64c   : > { %2885 = vmatpush1.bf16.msra.mxu1 %v8206_v56  ;;  %2928 = vmatpush1.bf16.msra.mxu0 %v8212_v53 }
 0x64d   : > { %2886 = vmatprep.subr.bf16.mxu1 %v8218_v54  ;;  %2929 = vmatprep.subr.bf16.mxu0 %v8224_v55 }
 0x64e   : > { %2916 = vmatprep.mubr.bf16.mxu1 %v7307_v18  ;;  %2959 = vmatprep.mubr.bf16.mxu0 %v7307_v18 }
 0x650   : > { %2887 = vmatpush1.bf16.msra.mxu1 %v8232_v38  ;;  %2930 = vmatpush1.bf16.msra.mxu0 %v8238_v59 }
 0x651   : > { %2888 = vmatprep.subr.bf16.mxu1 %v8244_v21  ;;  %2931 = vmatprep.subr.bf16.mxu0 %v8250_v62 }
 0x654   : > { %2889 = vmatpush1.bf16.msra.mxu1 %v8256_v23  ;;  %2932 = vmatpush1.bf16.msra.mxu0 %v8262_v12 }
 0x655   : > { %2890 = vmatprep.subr.bf16.mxu1 %v8268_v15  ;;  %2933 = vmatprep.subr.bf16.mxu0 %v8274_v37 }
 0x658   : > { %2891 = vmatpush1.bf16.msra.mxu1 %v8280_v4  ;;  %2934 = vmatpush1.bf16.msra.mxu0 %v8286_v8 }
 0x659   : > { %2892 = vmatprep.subr.bf16.mxu1 %v8292_v20  ;;  %2935 = vmatprep.subr.bf16.mxu0 %v8298_v49 }
 0x65c   : > { %2893 = vmatpush1.bf16.msra.mxu1 %v8304_v22  ;;  %2936 = vmatpush1.bf16.msra.mxu0 %v8310_v63 }
 0x65d   : > { %2894 = vmatprep.subr.bf16.mxu1 %v8316_v0  ;;  %2937 = vmatprep.subr.bf16.mxu0 %v8322_v42 }
 0x660   : > { %2895 = vmatpush1.bf16.msra.mxu1 %v8328_v1  ;;  %2938 = vmatpush1.bf16.msra.mxu0 %v8334_v6 }
 0x661   : > { %2896 = vmatprep.subr.bf16.mxu1 %v8340_v26  ;;  %2939 = vmatprep.subr.bf16.mxu0 %v8346_v17 }
 0x664   : > { %2897 = vmatpush1.bf16.msra.mxu1 %v8352_v29  ;;  %2940 = vmatpush1.bf16.msra.mxu0 %v8358_v51 }
 0x665   : > { %2898 = vmatprep.subr.bf16.mxu1 %v8364_v19  ;;  %2941 = vmatprep.subr.bf16.mxu0 %v8370_v24 }
 0x668   : > { %2899 = vmatpush1.bf16.msra.mxu1 %v8376_v11  ;;  %2942 = vmatpush1.bf16.msra.mxu0 %v8382_v61 }
 0x669   : > { %3040 = vmatprep.subr.bf16.mxu1 %v8174_v3  ;;  %3083 = vmatprep.subr.bf16.mxu0 %v8180_v9 }
 0x71e   : > { %v2762_v35 = vpop.f32.mrb[48].mxu1  ;;  %v2805_v25 = vpop.f32.mrb[64].mxu0 }
 0x71f   : > { %v6199_v34 = vadd.f32 %v2762_v35, %v7997_v2  ;;  %v2764_v47 = vpop.f32.mrb[49].mxu1  ;;  %v2807_v28 = vpop.f32.mrb[65].mxu0 }
 0x720   : > { %v6200_v7 = vadd.f32 %v2764_v47, %v8001_v5  ;;  %v2766_v57 = vpop.f32.mrb[50].mxu1  ;;  %v2809_v36 = vpop.f32.mrb[66].mxu0  ;;  %v6232_v35 = vadd.f32 %v2807_v28, %v8010_v30  ;;  %v6231_v47 = vadd.f32 %v2805_v25, %v8015_v41 }
 0x721   : > { %v5704_v52 = vmul.f32 -1.442695, %v6199_v34  ;;  %v6201_v40 = vadd.f32 %v2766_v57, %v7997_v2  ;;  %v2768_v60 = vpop.f32.mrb[51].mxu1  ;;  %v2811_v10 = vpop.f32.mrb[67].mxu0  ;;  %v6233_v57 = vadd.f32 %v2809_v36, %v8015_v41 }
 0x722   : > { %v5706_v44 = vmul.f32 -1.442695, %v6200_v7  ;;  %v6202_v13 = vadd.f32 %v2768_v60, %v8001_v5  ;;  %v5708_v39 = vmul.f32 -1.442695, %v6232_v35  ;;  %v6234_v34 = vadd.f32 %v2811_v10, %v8010_v30 }
 0x723   : > { %6850 = vpow2.f32 %v5704_v52  ;;  %v5705_v14 = vmul.f32 -1.442695, %v6201_v40 }
 0x724   : > { %6852 = vpow2.f32 %v5706_v44  ;;  %v5707_v16 = vmul.f32 -1.442695, %v6202_v13  ;;  %v5709_v52 = vmul.f32 -1.442695, %v6234_v34 }
 0x725   : > { %6854 = vpow2.f32 %v5705_v14 }
 0x726   : > { %6856 = vpow2.f32 %v5707_v16 }
 0x727   : > { %6858 = vtanh.f32 %v6231_v47 }
 0x728   : > { %6860 = vpow2.f32 %v5708_v39 }
 0x729   : > { %6862 = vtanh.f32 %v6233_v57 }
 0x72d   : > { %v6851_v43 = vpop.eup %6850 }
 0x72e   : > { %v6853_v7 = vpop.eup %6852  ;;  %v2828_v58 = vadd.f32 1.0, %v6851_v43 }
 0x72f   : > { %v2840_v40 = vadd.f32 1.0, %v6853_v7  ;;  %v6855_v60 = vpop.eup %6854 }
 0x730   : > { %6864 = vrcp.f32 %v2828_v58  ;;  %v2829_v28 = vadd.f32 1.0, %v6855_v60  ;;  %v6857_v44 = vpop.eup %6856 }
 0x731   : > { %6866 = vrcp.f32 %v2840_v40  ;;  %v2841_v25 = vadd.f32 1.0, %v6857_v44  ;;  %v6859_v10 = vpop.eup %6858 }
 0x732   : > { %6868 = vpow2.f32 %v5709_v52  ;;  %v6861_v13 = vpop.eup %6860 }
 0x733   : > { %6870 = vrcp.f32 %v2829_v28  ;;  %v6863_v36 = vpop.eup %6862  ;;  %v2854_v34 = vadd.f32 1.0, %v6861_v13 }
 0x734   : > { %6872 = vrcp.f32 %v2841_v25 }
 0x735   : > { %6874 = vrcp.f32 %v2854_v34 }
 0x73a   : > { %v6865_v14 = vpop.eup %6864 }
 0x73b   : > { %v6867_v16 = vpop.eup %6866  ;;  %v2862_v35 = vmul.f32 %v6865_v14, %v6859_v10 }
 0x73c   : > { %v6869_v43 = vpop.eup %6868  ;;  %v2860_v39 = vmul.f32 %v6867_v16, %v8192_v50 }
 0x73d   : > { %v6871_v47 = vpop.eup %6870  ;;  %v2855_v40 = vadd.f32 1.0, %v6869_v43 }
 0x73e   : > { %v8396_v57 = vadd.f32 %v2862_v35, %v2860_v39  ;;  %v2863_v58 = vmul.f32 %v6871_v47, %v6863_v36  ;;  %v6873_v7 = vpop.eup %6872 }
 0x73f   : > { %v2861_v52 = vmul.f32 %v6873_v7, %v8196_v32  ;;  %v6875_v28 = vpop.eup %6874 }
 0x740   : > { %6876 = vtanh.f32 %v8396_v57 }
 0x741   : > { %v8400_v60 = vadd.f32 %v2863_v58, %v2861_v52  ;;  %6878 = vrcp.f32 %v2855_v40 }
 0x743   : > { %6880 = vtanh.f32 %v8400_v60 }
 0x74a   : > { %v6877_v44 = vpop.eup %6876 }
 0x74b   : > { %v6879_v50 = vpop.eup %6878  ;;  %v2868_v10 = vmul.f32 %v6877_v44, %v6875_v28 }
 0x74d   : > { %v6881_v25 = vpop.eup %6880 }
 0x74e   : > { %v2869_v13 = vmul.f32 %v6881_v25, %v6879_v50 }
 0x750   : > { %v8403_v14 = vpack.c.bf16 %v2869_v13, %v2868_v10 }
 0x752   : > { %2917 = vmatmul.mubr.bf16.vlgmr.msra.gmra.mrb[52].mxu1 %v8403_v14  ;;  %2960 = vmatmul.mubr.bf16.vlgmr.msra.gmra.mrb[68].mxu0 %v8403_v14 }
 0x753   : > { %3041 = vmatpush1.bf16.msra.mxu1 %v8206_v56  ;;  %3084 = vmatpush1.bf16.msra.mxu0 %v8212_v53 }
 0x754   : > { %3042 = vmatprep.subr.bf16.mxu1 %v8218_v54  ;;  %3085 = vmatprep.subr.bf16.mxu0 %v8224_v55 }
 0x755   : > { %3072 = vmatprep.mubr.bf16.mxu1 %v7307_v18  ;;  %3115 = vmatprep.mubr.bf16.mxu0 %v7307_v18 }
 0x757   : > { %3043 = vmatpush1.bf16.msra.mxu1 %v8232_v38  ;;  %3086 = vmatpush1.bf16.msra.mxu0 %v8238_v59 }
 0x758   : > { %3044 = vmatprep.subr.bf16.mxu1 %v8244_v21  ;;  %3087 = vmatprep.subr.bf16.mxu0 %v8250_v62 }
 0x75b   : > { %3045 = vmatpush1.bf16.msra.mxu1 %v8256_v23  ;;  %3088 = vmatpush1.bf16.msra.mxu0 %v8262_v12 }
 0x75c   : > { %3046 = vmatprep.subr.bf16.mxu1 %v8268_v15  ;;  %3089 = vmatprep.subr.bf16.mxu0 %v8274_v37 }
 0x75f   : > { %3047 = vmatpush1.bf16.msra.mxu1 %v8280_v4  ;;  %3090 = vmatpush1.bf16.msra.mxu0 %v8286_v8 }
 0x760   : > { %3048 = vmatprep.subr.bf16.mxu1 %v8292_v20  ;;  %3091 = vmatprep.subr.bf16.mxu0 %v8298_v49 }
 0x763   : > { %3049 = vmatpush1.bf16.msra.mxu1 %v8304_v22  ;;  %3092 = vmatpush1.bf16.msra.mxu0 %v8310_v63 }
 0x764   : > { %3050 = vmatprep.subr.bf16.mxu1 %v8316_v0  ;;  %3093 = vmatprep.subr.bf16.mxu0 %v8322_v42 }
 0x767   : > { %3051 = vmatpush1.bf16.msra.mxu1 %v8328_v1  ;;  %3094 = vmatpush1.bf16.msra.mxu0 %v8334_v6 }
 0x768   : > { %3052 = vmatprep.subr.bf16.mxu1 %v8340_v26  ;;  %3095 = vmatprep.subr.bf16.mxu0 %v8346_v17 }
 0x76b   : > { %3053 = vmatpush1.bf16.msra.mxu1 %v8352_v29  ;;  %3096 = vmatpush1.bf16.msra.mxu0 %v8358_v51 }
 0x76c   : > { %3054 = vmatprep.subr.bf16.mxu1 %v8364_v19  ;;  %3097 = vmatprep.subr.bf16.mxu0 %v8370_v24 }
 0x76f   : > { %3055 = vmatpush1.bf16.msra.mxu1 %v8376_v11  ;;  %3098 = vmatpush1.bf16.msra.mxu0 %v8382_v61 }
 0x770   : > { %3196 = vmatprep.subr.bf16.mxu1 %v8174_v3  ;;  %3239 = vmatprep.subr.bf16.mxu0 %v8180_v9 }
 0x825   : > { %v2918_v32 = vpop.f32.mrb[52].mxu1  ;;  %v2961_v36 = vpop.f32.mrb[68].mxu0 }
 0x826   : > { %v6203_v16 = vadd.f32 %v2918_v32, %v7997_v2  ;;  %v2920_v35 = vpop.f32.mrb[53].mxu1  ;;  %v2963_v43 = vpop.f32.mrb[69].mxu0  ;;  %v6235_v25 = vadd.f32 %v2961_v36, %v8015_v41 }
 0x827   : > { %v6204_v39 = vadd.f32 %v2920_v35, %v8001_v5  ;;  %v2922_v47 = vpop.f32.mrb[54].mxu1  ;;  %v2965_v34 = vpop.f32.mrb[70].mxu0  ;;  %v6236_v50 = vadd.f32 %v2963_v43, %v8010_v30 }
 0x828   : > { %v5710_v58 = vmul.f32 -1.442695, %v6203_v16  ;;  %v6205_v7 = vadd.f32 %v2922_v47, %v7997_v2  ;;  %v2924_v40 = vpop.f32.mrb[55].mxu1  ;;  %v2967_v52 = vpop.f32.mrb[71].mxu0  ;;  %v6237_v32 = vadd.f32 %v2965_v34, %v8015_v41 }
 0x829   : > { %v5712_v28 = vmul.f32 -1.442695, %v6204_v39  ;;  %v6206_v3 = vadd.f32 %v2924_v40, %v8001_v5  ;;  %v5714_v10 = vmul.f32 -1.442695, %v6236_v50  ;;  %v6238_v13 = vadd.f32 %v2967_v52, %v8010_v30 }
 0x82a   : > { %6882 = vpow2.f32 %v5710_v58  ;;  %v5711_v9 = vmul.f32 -1.442695, %v6205_v7 }
 0x82b   : > { %6884 = vpow2.f32 %v5712_v28  ;;  %v5713_v44 = vmul.f32 -1.442695, %v6206_v3  ;;  %v5715_v47 = vmul.f32 -1.442695, %v6238_v13 }
 0x82c   : > { %6886 = vpow2.f32 %v5711_v9 }
 0x82d   : > { %6888 = vpow2.f32 %v5713_v44 }
 0x82e   : > { %6890 = vtanh.f32 %v6235_v25 }
 0x82f   : > { %6892 = vpow2.f32 %v5714_v10 }
 0x830   : > { %6894 = vtanh.f32 %v6237_v32 }
 0x834   : > { %v6883_v16 = vpop.eup %6882 }
 0x835   : > { %v6885_v35 = vpop.eup %6884  ;;  %v2984_v39 = vadd.f32 1.0, %v6883_v16 }
 0x836   : > { %v2996_v58 = vadd.f32 1.0, %v6885_v35  ;;  %v6887_v7 = vpop.eup %6886 }
 0x837   : > { %6896 = vrcp.f32 %v2984_v39  ;;  %v2985_v43 = vadd.f32 1.0, %v6887_v7  ;;  %v6889_v40 = vpop.eup %6888 }
 0x838   : > { %6898 = vrcp.f32 %v2996_v58  ;;  %v2997_v36 = vadd.f32 1.0, %v6889_v40  ;;  %v6891_v52 = vpop.eup %6890 }
 0x839   : > { %6900 = vpow2.f32 %v5715_v47  ;;  %v6893_v28 = vpop.eup %6892 }
 0x83a   : > { %6902 = vrcp.f32 %v2985_v43  ;;  %v6895_v34 = vpop.eup %6894  ;;  %v3010_v13 = vadd.f32 1.0, %v6893_v28 }
 0x83b   : > { %6904 = vrcp.f32 %v2997_v36 }
 0x83c   : > { %6906 = vrcp.f32 %v3010_v13 }
 0x841   : > { %v6897_v3 = vpop.eup %6896 }
 0x842   : > { %v6899_v9 = vpop.eup %6898  ;;  %v3018_v44 = vmul.f32 %v6897_v3, %v6891_v52 }
 0x843   : > { %v6901_v50 = vpop.eup %6900  ;;  %v3016_v25 = vmul.f32 %v6899_v9, %v8396_v57 }
 0x844   : > { %v6903_v10 = vpop.eup %6902  ;;  %v3011_v39 = vadd.f32 1.0, %v6901_v50 }
 0x845   : > { %v8450_v32 = vadd.f32 %v3018_v44, %v3016_v25  ;;  %v3019_v16 = vmul.f32 %v6903_v10, %v6895_v34  ;;  %v6905_v35 = vpop.eup %6904 }
 0x846   : > { %v3017_v47 = vmul.f32 %v6905_v35, %v8400_v60  ;;  %v6907_v7 = vpop.eup %6906 }
 0x847   : > { %6908 = vtanh.f32 %v8450_v32 }
 0x848   : > { %v8454_v58 = vadd.f32 %v3019_v16, %v3017_v47  ;;  %6910 = vrcp.f32 %v3011_v39 }
 0x84a   : > { %6912 = vtanh.f32 %v8454_v58 }
 0x851   : > { %v6909_v43 = vpop.eup %6908 }
 0x852   : > { %v6911_v57 = vpop.eup %6910  ;;  %v3024_v36 = vmul.f32 %v6909_v43, %v6907_v7 }
 0x854   : > { %v6913_v40 = vpop.eup %6912 }
 0x855   : > { %v3025_v52 = vmul.f32 %v6913_v40, %v6911_v57 }
 0x857   : > { %v8457_v28 = vpack.c.bf16 %v3025_v52, %v3024_v36 }
 0x859   : > { %3073 = vmatmul.mubr.bf16.vlgmr.msra.gmra.mrb[56].mxu1 %v8457_v28  ;;  %3116 = vmatmul.mubr.bf16.vlgmr.msra.gmra.mrb[72].mxu0 %v8457_v28 }
 0x85a   : > { %3197 = vmatpush1.bf16.msra.mxu1 %v8206_v56  ;;  %3240 = vmatpush1.bf16.msra.mxu0 %v8212_v53  ;;  %v6620_v56 = vld [vmem:[%s9493_s7 + $0x104] ss:$16 sps:$4 sm:$0xff]   ;;  %v6623_v53 = vld [vmem:[%s9493_s7 + $0x10c] ss:$16 sps:$4 sm:$0xff]  }
 0x85b   : > { %3198 = vmatprep.subr.bf16.mxu1 %v8218_v54  ;;  %3241 = vmatprep.subr.bf16.mxu0 %v8224_v55 }
 0x85c   : > { %3228 = vmatprep.mubr.bf16.mxu1 %v7307_v18  ;;  %3271 = vmatprep.mubr.bf16.mxu0 %v7307_v18 }
 0x85e   : > { %3199 = vmatpush1.bf16.msra.mxu1 %v8232_v38  ;;  %3242 = vmatpush1.bf16.msra.mxu0 %v8238_v59 }
 0x85f   : > { %3200 = vmatprep.subr.bf16.mxu1 %v8244_v21  ;;  %3243 = vmatprep.subr.bf16.mxu0 %v8250_v62 }
 0x862   : > { %3201 = vmatpush1.bf16.msra.mxu1 %v8256_v23  ;;  %3244 = vmatpush1.bf16.msra.mxu0 %v8262_v12 }
 0x863   : > { %3202 = vmatprep.subr.bf16.mxu1 %v8268_v15  ;;  %3245 = vmatprep.subr.bf16.mxu0 %v8274_v37 }
 0x866   : > { %3203 = vmatpush1.bf16.msra.mxu1 %v8280_v4  ;;  %3246 = vmatpush1.bf16.msra.mxu0 %v8286_v8 }
 0x867   : > { %3204 = vmatprep.subr.bf16.mxu1 %v8292_v20  ;;  %3247 = vmatprep.subr.bf16.mxu0 %v8298_v49 }
 0x86a   : > { %3205 = vmatpush1.bf16.msra.mxu1 %v8304_v22  ;;  %3248 = vmatpush1.bf16.msra.mxu0 %v8310_v63 }
 0x86b   : > { %3206 = vmatprep.subr.bf16.mxu1 %v8316_v0  ;;  %3249 = vmatprep.subr.bf16.mxu0 %v8322_v42 }
 0x86e   : > { %3207 = vmatpush1.bf16.msra.mxu1 %v8328_v1  ;;  %3250 = vmatpush1.bf16.msra.mxu0 %v8334_v6 }
 0x86f   : > { %3208 = vmatprep.subr.bf16.mxu1 %v8340_v26  ;;  %3251 = vmatprep.subr.bf16.mxu0 %v8346_v17 }
 0x872   : > { %3209 = vmatpush1.bf16.msra.mxu1 %v8352_v29  ;;  %3252 = vmatpush1.bf16.msra.mxu0 %v8358_v51 }
 0x873   : > { %3210 = vmatprep.subr.bf16.mxu1 %v8364_v19  ;;  %3253 = vmatprep.subr.bf16.mxu0 %v8370_v24 }
 0x876   : > { %3211 = vmatpush1.bf16.msra.mxu1 %v8376_v11  ;;  %3254 = vmatpush1.bf16.msra.mxu0 %v8382_v61 }
 0x877   : > { %3565 = vmatprep.subr.bf16.mxu1 %v6620_v56  ;;  %3678 = vmatprep.subr.bf16.mxu0 %v6623_v53 }
 0x92c   : > { %v3074_v54 = vpop.f32.mrb[56].mxu1  ;;  %v3117_v55 = vpop.f32.mrb[72].mxu0 }
 0x92d   : > { %v6207_v38 = vadd.f32 %v3074_v54, %v7997_v2  ;;  %v3076_v59 = vpop.f32.mrb[57].mxu1  ;;  %v3119_v21 = vpop.f32.mrb[73].mxu0  ;;  %v6239_v42 = vadd.f32 %v3117_v55, %v8015_v41 }
 0x92e   : > { %v6208_v62 = vadd.f32 %v3076_v59, %v8001_v5  ;;  %v3078_v23 = vpop.f32.mrb[58].mxu1  ;;  %v3121_v12 = vpop.f32.mrb[74].mxu0  ;;  %v6240_v0 = vadd.f32 %v3119_v21, %v8010_v30  ;;  %v6626_v21 = vld [vmem:[%s9493_s7 + $0x124] ss:$16 sps:$4 sm:$0xff]  }
 0x92f   : > { %v5716_v15 = vmul.f32 -1.442695, %v6207_v38  ;;  %v6209_v37 = vadd.f32 %v3078_v23, %v7997_v2  ;;  %v3080_v4 = vpop.f32.mrb[59].mxu1  ;;  %v3123_v8 = vpop.f32.mrb[75].mxu0  ;;  %v6241_v26 = vadd.f32 %v3121_v12, %v8015_v41  ;;  %v6618_v38 = vld [vmem:[%s9493_s7 + $0x100] ss:$16 sps:$4 sm:$0xff]  }
 0x930   : > { %v5718_v20 = vmul.f32 -1.442695, %v6208_v62  ;;  %v6210_v49 = vadd.f32 %v3080_v4, %v8001_v5  ;;  %v5720_v1 = vmul.f32 -1.442695, %v6240_v0  ;;  %v6242_v6 = vadd.f32 %v3123_v8, %v8010_v30  ;;  %v6629_v62 = vld [vmem:[%s9493_s7 + $0x12c] ss:$16 sps:$4 sm:$0xff]  }
 0x931   : > { %6914 = vpow2.f32 %v5716_v15  ;;  %v5717_v22 = vmul.f32 -1.442695, %v6209_v37  ;;  %v6624_v23 = vld [vmem:[%s9493_s7 + $0x120] ss:$16 sps:$4 sm:$0xff]   ;;  %v6627_v12 = vld [vmem:[%s9493_s7 + $0x128] ss:$16 sps:$4 sm:$0xff]  }
 0x932   : > { %6916 = vpow2.f32 %v5718_v20  ;;  %v5719_v63 = vmul.f32 -1.442695, %v6210_v49  ;;  %v5721_v19 = vmul.f32 -1.442695, %v6242_v6  ;;  %v6632_v15 = vld [vmem:[%s9493_s7 + $0x144] ss:$16 sps:$4 sm:$0xff]  }
 0x933   : > { %6918 = vpow2.f32 %v5717_v22  ;;  %v6635_v37 = vld [vmem:[%s9493_s7 + $0x14c] ss:$16 sps:$4 sm:$0xff]   ;;  %v6630_v4 = vld [vmem:[%s9493_s7 + $0x140] ss:$16 sps:$4 sm:$0xff]   ;;  %v6633_v8 = vld [vmem:[%s9493_s7 + $0x148] ss:$16 sps:$4 sm:$0xff]  }
 0x934   : > { %6920 = vpow2.f32 %v5719_v63  ;;  %v6638_v20 = vld [vmem:[%s9493_s7 + $0x164] ss:$16 sps:$4 sm:$0xff]   ;;  %v6641_v49 = vld [vmem:[%s9493_s7 + $0x16c] ss:$16 sps:$4 sm:$0xff]   ;;  %v6636_v22 = vld [vmem:[%s9493_s7 + $0x160] ss:$16 sps:$4 sm:$0xff]  }
 0x935   : > { %6922 = vtanh.f32 %v6239_v42  ;;  %v6639_v63 = vld [vmem:[%s9493_s7 + $0x168] ss:$16 sps:$4 sm:$0xff]   ;;  %v6644_v0 = vld [vmem:[%s9493_s7 + $0x184] ss:$16 sps:$4 sm:$0xff]   ;;  %v6647_v42 = vld [vmem:[%s9493_s7 + $0x18c] ss:$16 sps:$4 sm:$0xff]  }
 0x936   : > { %6924 = vpow2.f32 %v5720_v1  ;;  %v6642_v1 = vld [vmem:[%s9493_s7 + $0x180] ss:$16 sps:$4 sm:$0xff]   ;;  %v6645_v6 = vld [vmem:[%s9493_s7 + $0x188] ss:$16 sps:$4 sm:$0xff]  }
 0x937   : > { %6926 = vtanh.f32 %v6241_v26  ;;  %v6650_v26 = vld [vmem:[%s9493_s7 + $0x1a4] ss:$16 sps:$4 sm:$0xff]  }
 0x93b   : > { %v6915_v17 = vpop.eup %6914 }
 0x93c   : > { %v6917_v29 = vpop.eup %6916  ;;  %v3140_v51 = vadd.f32 1.0, %v6915_v17  ;;  %v6653_v17 = vld [vmem:[%s9493_s7 + $0x1ac] ss:$16 sps:$4 sm:$0xff]  }
 0x93d   : > { %v3152_v24 = vadd.f32 1.0, %v6917_v29  ;;  %v6919_v11 = vpop.eup %6918  ;;  %v6648_v29 = vld [vmem:[%s9493_s7 + $0x1a0] ss:$16 sps:$4 sm:$0xff]  }
 0x93e   : > { %6928 = vrcp.f32 %v3140_v51  ;;  %v3141_v61 = vadd.f32 1.0, %v6919_v11  ;;  %v6921_v60 = vpop.eup %6920  ;;  %v6651_v51 = vld [vmem:[%s9493_s7 + $0x1a8] ss:$16 sps:$4 sm:$0xff]   ;;  %v6654_v11 = vld [vmem:[%s9493_s7 + $0x1c0] ss:$16 sps:$4 sm:$0xff]  }
 0x93f   : > { %6930 = vrcp.f32 %v3152_v24  ;;  %v3153_v34 = vadd.f32 1.0, %v6921_v60  ;;  %v6923_v3 = vpop.eup %6922  ;;  %v6659_v24 = vld [vmem:[%s9493_s7 + $0x1cc] ss:$16 sps:$4 sm:$0xff]   ;;  %v6662_v60 = vld [vmem:[%s9493_s7 + $0x1e4] ss:$16 sps:$4 sm:$0xff]  }
 0x940   : > { %6932 = vpow2.f32 %v5721_v19  ;;  %v6925_v9 = vpop.eup %6924  ;;  %v6656_v19 = vld [vmem:[%s9493_s7 + $0x1c4] ss:$16 sps:$4 sm:$0xff]  }
 0x941   : > { %6934 = vrcp.f32 %v3141_v61  ;;  %v6927_v44 = vpop.eup %6926  ;;  %v3166_v39 = vadd.f32 1.0, %v6925_v9  ;;  %v6657_v61 = vld [vmem:[%s9493_s7 + $0x1c8] ss:$16 sps:$4 sm:$0xff]  }
 0x942   : > { %6936 = vrcp.f32 %v3153_v34  ;;  %v6665_v34 = vld [vmem:[%s9493_s7 + $0x1ec] ss:$16 sps:$4 sm:$0xff]   ;;  %v6663_v9 = vld [vmem:[%s9493_s7 + $0x1e8] ss:$16 sps:$4 sm:$0xff]  }
 0x943   : > { %6938 = vrcp.f32 %v3166_v39  ;;  %v8717_v39 = vld [vmem:[%s9494_s8 + $0x16c] ss:$16 sps:$4 sm:$0xff]  }
 0x948   : > { %v6929_v50 = vpop.eup %6928 }
 0x949   : > { %v6931_v25 = vpop.eup %6930  ;;  %v3174_v10 = vmul.f32 %v6929_v50, %v6923_v3  ;;  %v6660_v3 = vld [vmem:[%s9493_s7 + $0x1e0] ss:$16 sps:$4 sm:$0xff]  }
 0x94a   : > { %v6933_v13 = vpop.eup %6932  ;;  %v3172_v16 = vmul.f32 %v6931_v25, %v8450_v32  ;;  %v8620_v50 = vld [vmem:[%s9494_s8 + $0x100] ss:$16 sps:$4 sm:$0xff]   ;;  %v8688_v25 = vld [vmem:[%s9494_s8 + $0x128] ss:$16 sps:$4 sm:$0xff]  }
 0x94b   : > { %v6935_v35 = vpop.eup %6934  ;;  %v3167_v57 = vadd.f32 1.0, %v6933_v13  ;;  %v8699_v13 = vld [vmem:[%s9494_s8 + $0x14c] ss:$16 sps:$4 sm:$0xff]  }
 0x94c   : > { %v8508_v47 = vadd.f32 %v3174_v10, %v3172_v16  ;;  %v3175_v7 = vmul.f32 %v6935_v35, %v6927_v44  ;;  %v6937_v43 = vpop.eup %6936  ;;  %v8614_v44 = vld [vmem:[%s9494_s8 + $0x104] ss:$16 sps:$4 sm:$0xff]   ;;  %v8694_v10 = vld [vmem:[%s9494_s8 + $0x140] ss:$16 sps:$4 sm:$0xff]   ;;  %v8711_v35 = vld [vmem:[%s9494_s8 + $0x148] ss:$16 sps:$4 sm:$0xff]  }
 0x94d   : > { %v3173_v40 = vmul.f32 %v6937_v43, %v8454_v58  ;;  %v6939_v52 = vpop.eup %6938  ;;  %v6621_v58 = vld [vmem:[%s9493_s7 + $0x108] ss:$16 sps:$4 sm:$0xff]   ;;  %v8705_v16 = vld [vmem:[%s9494_s8 + $0x164] ss:$16 sps:$4 sm:$0xff]  }
 0x94e   : > { %6940 = vtanh.f32 %v8508_v47  ;;  %v8729_v43 = vld [vmem:[%s9494_s8 + $0x184] ss:$16 sps:$4 sm:$0xff]  }
 0x94f   : > { %v8512_v36 = vadd.f32 %v3175_v7, %v3173_v40  ;;  %6942 = vrcp.f32 %v3167_v57  ;;  %v8723_v7 = vld [vmem:[%s9494_s8 + $0x160] ss:$16 sps:$4 sm:$0xff]   ;;  %v8735_v57 = vld [vmem:[%s9494_s8 + $0x168] ss:$16 sps:$4 sm:$0xff]   ;;  %v8741_v40 = vld [vmem:[%s9494_s8 + $0x18c] ss:$16 sps:$4 sm:$0xff]  }
 0x951   : > { %6944 = vtanh.f32 %v8512_v36 }
 0x958   : > { %v6941_v56 = vpop.eup %6940 }
 0x959   : > { %v6943_v32 = vpop.eup %6942  ;;  %v3180_v54 = vmul.f32 %v6941_v56, %v6939_v52  ;;  %v8747_v52 = vld [vmem:[%s9494_s8 + $0x180] ss:$16 sps:$4 sm:$0xff]   ;;  %v8753_v56 = vld [vmem:[%s9494_s8 + $0x1a4] ss:$16 sps:$4 sm:$0xff]  }
 0x95b   : > { %v6945_v53 = vpop.eup %6944 }
 0x95c   : > { %v3181_v55 = vmul.f32 %v6945_v53, %v6943_v32  ;;  %v8759_v32 = vld [vmem:[%s9494_s8 + $0x188] ss:$16 sps:$4 sm:$0xff]   ;;  %v8765_v53 = vld [vmem:[%s9494_s8 + $0x1ac] ss:$16 sps:$4 sm:$0xff]  }
 0x95e   : > { %v8521_v59 = vpack.c.bf16 %v3181_v55, %v3180_v54  ;;  %v8771_v54 = vld [vmem:[%s9494_s8 + $0x1a0] ss:$16 sps:$4 sm:$0xff]   ;;  %v8777_v55 = vld [vmem:[%s9494_s8 + $0x1c4] ss:$16 sps:$4 sm:$0xff]  }
 0x960   : > { %3229 = vmatmul.mubr.bf16.vlgmr.msra.gmra.mrb[60].mxu1 %v8521_v59  ;;  %3272 = vmatmul.mubr.bf16.vlgmr.msra.gmra.mrb[76].mxu0 %v8521_v59 }
 0x961   : > { %3566 = vmatpush1.bf16.msra.mxu1 %v6618_v38  ;;  %3679 = vmatpush1.bf16.msra.mxu0 %v6621_v58  ;;  %v8783_v38 = vld [vmem:[%s9494_s8 + $0x1a8] ss:$16 sps:$4 sm:$0xff]   ;;  %v8790_v58 = vld [vmem:[%s9494_s8 + $0x1c0] ss:$16 sps:$4 sm:$0xff]  }
 0x962   : > { %3567 = vmatprep.subr.bf16.mxu1 %v6626_v21  ;;  %3680 = vmatprep.subr.bf16.mxu0 %v6629_v62  ;;  %v8802_v21 = vld [vmem:[%s9494_s8 + $0x1cc] ss:$16 sps:$4 sm:$0xff]   ;;  %v8807_v62 = vld [vmem:[%s9494_s8 + $0x1c8] ss:$16 sps:$4 sm:$0xff]  }
 0x963   : > { %3597 = vmatprep.mubr.bf16.mxu1 %v7307_v18  ;;  %3710 = vmatprep.mubr.bf16.mxu0 %v7307_v18 }
 0x965   : > { %3568 = vmatpush1.bf16.msra.mxu1 %v6624_v23  ;;  %3681 = vmatpush1.bf16.msra.mxu0 %v6627_v12  ;;  %v8812_v23 = vld [vmem:[%s9494_s8 + $0x1ec] ss:$16 sps:$4 sm:$0xff]   ;;  %v8819_v12 = vld [vmem:[%s9494_s8 + $0x1e0] ss:$16 sps:$4 sm:$0xff]  }
 0x966   : > { %3569 = vmatprep.subr.bf16.mxu1 %v6632_v15  ;;  %3682 = vmatprep.subr.bf16.mxu0 %v6635_v37  ;;  %v8826_v15 = vld [vmem:[%s9494_s8 + $0x1e8] ss:$16 sps:$4 sm:$0xff]  }
 0x969   : > { %3570 = vmatpush1.bf16.msra.mxu1 %v6630_v4  ;;  %3683 = vmatpush1.bf16.msra.mxu0 %v6633_v8 }
 0x96a   : > { %3571 = vmatprep.subr.bf16.mxu1 %v6638_v20  ;;  %3684 = vmatprep.subr.bf16.mxu0 %v6641_v49 }
 0x96d   : > { %3572 = vmatpush1.bf16.msra.mxu1 %v6636_v22  ;;  %3685 = vmatpush1.bf16.msra.mxu0 %v6639_v63 }
 0x96e   : > { %3573 = vmatprep.subr.bf16.mxu1 %v6644_v0  ;;  %3686 = vmatprep.subr.bf16.mxu0 %v6647_v42 }
 0x971   : > { %3574 = vmatpush1.bf16.msra.mxu1 %v6642_v1  ;;  %3687 = vmatpush1.bf16.msra.mxu0 %v6645_v6 }
 0x972   : > { %3575 = vmatprep.subr.bf16.mxu1 %v6650_v26  ;;  %3688 = vmatprep.subr.bf16.mxu0 %v6653_v17 }
 0x975   : > { %3576 = vmatpush1.bf16.msra.mxu1 %v6648_v29  ;;  %3689 = vmatpush1.bf16.msra.mxu0 %v6651_v51 }
 0x976   : > { %3577 = vmatprep.subr.bf16.mxu1 %v6656_v19  ;;  %3690 = vmatprep.subr.bf16.mxu0 %v6659_v24 }
 0x979   : > { %3578 = vmatpush1.bf16.msra.mxu1 %v6654_v11  ;;  %3691 = vmatpush1.bf16.msra.mxu0 %v6657_v61 }
 0x97a   : > { %3579 = vmatprep.subr.bf16.mxu1 %v6662_v60  ;;  %3692 = vmatprep.subr.bf16.mxu0 %v6665_v34 }
 0x97d   : > { %3580 = vmatpush1.bf16.msra.mxu1 %v6660_v3  ;;  %3693 = vmatpush1.bf16.msra.mxu0 %v6663_v9 }
 0x97e   : > { %4056 = vmatprep.subr.bf16.mxu1 %v8614_v44 }
 0x980   : > { %3598 = vmatmul.mubr.bf16.vlgmr.msra.gmra.mrb[64].mxu1 %v8027_v46  ;;  %3711 = vmatmul.mubr.bf16.vlgmr.msra.gmra.mrb[80].mxu0 %v8027_v46  ;;  %v8654_v46 = vld [vmem:[%s9494_s8 + $0x10c] ss:$16 sps:$4 sm:$0xff]  }
 0x981   : > { %3607 = vmatprep.mubr.bf16.mxu1 %v7307_v18  ;;  %3720 = vmatprep.mubr.bf16.mxu0 %v7307_v18 }
 0x982   : > { %4057 = vmatpush1.bf16.msra.mxu1 %v8620_v50  ;;  %4099 = vmatprep.subr.bf16.mxu0 %v8654_v46 }
 0x988   : > { %3608 = vmatmul.mubr.bf16.gmra.mrb[68].mxu1 %v8081_v27  ;;  %3721 = vmatmul.mubr.bf16.gmra.mrb[84].mxu0 %v8081_v27  ;;  %v8659_v27 = vld [vmem:[%s9494_s8 + $0x108] ss:$16 sps:$4 sm:$0xff]  }
 0x989   : > { %3617 = vmatprep.mubr.bf16.mxu1 %v7307_v18  ;;  %3730 = vmatprep.mubr.bf16.mxu0 %v7307_v18 }
 0x98a   : > { %4100 = vmatpush1.bf16.msra.mxu0 %v8659_v27 }
 0x990   : > { %3618 = vmatmul.mubr.bf16.gmra.mrb[72].mxu1 %v8135_v48  ;;  %3731 = vmatmul.mubr.bf16.gmra.mrb[88].mxu0 %v8135_v48  ;;  %v8665_v48 = vld [vmem:[%s9494_s8 + $0x124] ss:$16 sps:$4 sm:$0xff]  }
 0x991   : > { %3627 = vmatprep.mubr.bf16.mxu1 %v7307_v18  ;;  %3740 = vmatprep.mubr.bf16.mxu0 %v7307_v18 }
 0x992   : > { %4058 = vmatprep.subr.bf16.mxu1 %v8665_v48 }
 0x998   : > { %3628 = vmatmul.mubr.bf16.gmra.mrb[76].mxu1 %v8199_v33  ;;  %3741 = vmatmul.mubr.bf16.gmra.mrb[92].mxu0 %v8199_v33  ;;  %v8671_v33 = vld [vmem:[%s9494_s8 + $0x12c] ss:$16 sps:$4 sm:$0xff]  }
 0x999   : > { %3637 = vmatprep.mubr.bf16.mxu1 %v7307_v18  ;;  %3750 = vmatprep.mubr.bf16.mxu0 %v7307_v18 }
 0x99a   : > { %4101 = vmatprep.subr.bf16.mxu0 %v8671_v33 }
 0x99b   : > { %4102 = vmatpush1.bf16.msra.mxu0 %v8688_v25 }
 0x99c   : > { %4103 = vmatprep.subr.bf16.mxu0 %v8699_v13 }
 0x99f   : > { %4104 = vmatpush1.bf16.msra.mxu0 %v8711_v35 }
 0x9a0   : > { %3638 = vmatmul.mubr.bf16.gmra.mrb[80].mxu1 %v8403_v14  ;;  %3751 = vmatmul.mubr.bf16.gmra.mrb[96].mxu0 %v8403_v14  ;;  %v8677_v14 = vld [vmem:[%s9494_s8 + $0x120] ss:$16 sps:$4 sm:$0xff]  }
 0x9a1   : > { %3647 = vmatprep.mubr.bf16.mxu1 %v7307_v18  ;;  %3760 = vmatprep.mubr.bf16.mxu0 %v7307_v18 }
 0x9a2   : > { %4059 = vmatpush1.bf16.msra.mxu1 %v8677_v14  ;;  %4105 = vmatprep.subr.bf16.mxu0 %v8717_v39 }
 0x9a3   : > { %4106 = vmatpush1.bf16.msra.mxu0 %v8735_v57 }
 0x9a4   : > { %4107 = vmatprep.subr.bf16.mxu0 %v8741_v40 }
 0x9a7   : > { %4108 = vmatpush1.bf16.msra.mxu0 %v8759_v32 }
 0x9a8   : > { %3648 = vmatmul.mubr.bf16.gmra.mrb[84].mxu1 %v8457_v28  ;;  %3761 = vmatmul.mubr.bf16.gmra.mrb[100].mxu0 %v8457_v28  ;;  %v8682_v28 = vld [vmem:[%s9494_s8 + $0x144] ss:$16 sps:$4 sm:$0xff]  }
 0x9a9   : > { %3657 = vmatprep.mubr.bf16.mxu1 %v7307_v18  ;;  %3770 = vmatprep.mubr.bf16.mxu0 %v7307_v18 }
 0x9aa   : > { %4060 = vmatprep.subr.bf16.mxu1 %v8682_v28  ;;  %4109 = vmatprep.subr.bf16.mxu0 %v8765_v53 }
 0x9ab   : > { %4061 = vmatpush1.bf16.msra.mxu1 %v8694_v10  ;;  %4110 = vmatpush1.bf16.msra.mxu0 %v8783_v38 }
 0x9ac   : > { %4062 = vmatprep.subr.bf16.mxu1 %v8705_v16  ;;  %4111 = vmatprep.subr.bf16.mxu0 %v8802_v21 }
 0x9af   : > { %4063 = vmatpush1.bf16.msra.mxu1 %v8723_v7  ;;  %4112 = vmatpush1.bf16.msra.mxu0 %v8807_v62 }
 0x9b0   : > { %3658 = vmatmul.mubr.bf16.gmra.mrb[88].mxu1 %v8521_v59  ;;  %3771 = vmatmul.mubr.bf16.gmra.mrb[104].mxu0 %v8521_v59  ;;  %v8797_v59 = vld [vmem:[%s9494_s8 + $0x1e4] ss:$16 sps:$4 sm:$0xff]  }
 0x9b1   : > { %3667 = vmatprep.mubr.bf16.mxu1 %v7307_v18  ;;  %3780 = vmatprep.mubr.bf16.mxu0 %v7307_v18 }
 0x9b2   : > { %4064 = vmatprep.subr.bf16.mxu1 %v8729_v43  ;;  %4113 = vmatprep.subr.bf16.mxu0 %v8812_v23 }
 0x9b3   : > { %4065 = vmatpush1.bf16.msra.mxu1 %v8747_v52  ;;  %4114 = vmatpush1.bf16.msra.mxu0 %v8826_v15 }
 0x9b4   : > { %4066 = vmatprep.subr.bf16.mxu1 %v8753_v56  ;;  %4251 = vmatprep.subr.bf16.mxu0 %v8654_v46 }
 0x9b7   : > { %4067 = vmatpush1.bf16.msra.mxu1 %v8771_v54 }
 0x9b8   : > { %4068 = vmatprep.subr.bf16.mxu1 %v8777_v55 }
 0x9bb   : > { %4069 = vmatpush1.bf16.msra.mxu1 %v8790_v58 }
 0x9bc   : > { %4070 = vmatprep.subr.bf16.mxu1 %v8797_v59 }
 0x9bf   : > { %4071 = vmatpush1.bf16.msra.mxu1 %v8819_v12 }
 0x9c0   : > { %4208 = vmatprep.subr.bf16.mxu1 %v8614_v44 }
 0xa33   : > { %v3230_v37 = vpop.f32.mrb[60].mxu1  ;;  %v3273_v4 = vpop.f32.mrb[76].mxu0 }
 0xa34   : > { %v6211_v8 = vadd.f32 %v3230_v37, %v7997_v2  ;;  %v3232_v20 = vpop.f32.mrb[61].mxu1  ;;  %v3275_v49 = vpop.f32.mrb[77].mxu0  ;;  %v6243_v11 = vadd.f32 %v3273_v4, %v8015_v41 }
 0xa35   : > { %v6212_v22 = vadd.f32 %v3232_v20, %v8001_v5  ;;  %v3234_v63 = vpop.f32.mrb[62].mxu1  ;;  %v3277_v0 = vpop.f32.mrb[78].mxu0  ;;  %v6244_v24 = vadd.f32 %v3275_v49, %v8010_v30 }
 0xa36   : > { %v5722_v42 = vmul.f32 -1.442695, %v6211_v8  ;;  %v6213_v1 = vadd.f32 %v3234_v63, %v7997_v2  ;;  %v3236_v6 = vpop.f32.mrb[63].mxu1  ;;  %v3279_v26 = vpop.f32.mrb[79].mxu0  ;;  %v6245_v2 = vadd.f32 %v3277_v0, %v8015_v41 }
 0xa37   : > { %v5724_v17 = vmul.f32 -1.442695, %v6212_v22  ;;  %v6214_v29 = vadd.f32 %v3236_v6, %v8001_v5  ;;  %v5726_v61 = vmul.f32 -1.442695, %v6244_v24  ;;  %v6246_v60 = vadd.f32 %v3279_v26, %v8010_v30 }
 0xa38   : > { %6946 = vpow2.f32 %v5722_v42  ;;  %v5723_v51 = vmul.f32 -1.442695, %v6213_v1 }
 0xa39   : > { %6948 = vpow2.f32 %v5724_v17  ;;  %v5725_v19 = vmul.f32 -1.442695, %v6214_v29  ;;  %v5727_v5 = vmul.f32 -1.442695, %v6246_v60 }
 0xa3a   : > { %6950 = vpow2.f32 %v5723_v51 }
 0xa3b   : > { %6952 = vpow2.f32 %v5725_v19 }
 0xa3c   : > { %6954 = vtanh.f32 %v6243_v11 }
 0xa3d   : > { %6956 = vpow2.f32 %v5726_v61 }
 0xa3e   : > { %6958 = vtanh.f32 %v6245_v2 }
 0xa42   : > { %v6947_v34 = vpop.eup %6946 }
 0xa43   : > { %v6949_v3 = vpop.eup %6948  ;;  %v3296_v9 = vadd.f32 1.0, %v6947_v34 }
 0xa44   : > { %v3308_v37 = vadd.f32 1.0, %v6949_v3  ;;  %v6951_v8 = vpop.eup %6950 }
 0xa45   : > { %6960 = vrcp.f32 %v3296_v9  ;;  %v3297_v20 = vadd.f32 1.0, %v6951_v8  ;;  %v6953_v49 = vpop.eup %6952  ;;  %v9502_v8 = vsub.s32 1, %v7988_v31 }
 0xa46   : > { %6962 = vrcp.f32 %v3308_v37  ;;  %v3309_v4 = vadd.f32 1.0, %v6953_v49  ;;  %v6955_v30 = vpop.eup %6954 }
 0xa47   : > { %6964 = vpow2.f32 %v5727_v5  ;;  %v6957_v22 = vpop.eup %6956 }
 0xa48   : > { %6966 = vrcp.f32 %v3297_v20  ;;  %v6959_v41 = vpop.eup %6958  ;;  %v3322_v1 = vadd.f32 1.0, %v6957_v22 }
 0xa49   : > { %6968 = vrcp.f32 %v3309_v4 }
 0xa4a   : > { %6970 = vrcp.f32 %v3322_v1 }
 0xa4f   : > { %v6961_v63 = vpop.eup %6960 }
 0xa50   : > { %v6963_v0 = vpop.eup %6962  ;;  %v3330_v42 = vmul.f32 %v6961_v63, %v6955_v30 }
 0xa51   : > { %v6965_v6 = vpop.eup %6964  ;;  %v3328_v26 = vmul.f32 %v6963_v0, %v8508_v47  ;;  %v5760_v47 = vld [vmem:[%s9495_s9 + $0x4] sm:$0xf] }
 0xa52   : > { %v6967_v17 = vpop.eup %6966  ;;  %v3323_v24 = vadd.f32 1.0, %v6965_v6  ;;  %v8890_v20 = vrot.slane %v5760_v47, %v9502_v8 }
 0xa53   : > { %v3331_v29 = vmul.f32 %v6967_v17, %v6959_v41  ;;  %v3332_v51 = vadd.f32 %v3330_v42, %v3328_v26  ;;  %v6969_v19 = vpop.eup %6968 }
 0xa54   : > { %v3329_v11 = vmul.f32 %v6969_v19, %v8512_v36  ;;  %v6971_v60 = vpop.eup %6970  ;;  %v8886_v36 = vrot.slane %v5760_v47, %v1434_v45 }
 0xa55   : > { %6972 = vtanh.f32 %v3332_v51 }
 0xa56   : > { %v3333_v61 = vadd.f32 %v3331_v29, %v3329_v11  ;;  %6974 = vrcp.f32 %v3323_v24  ;;  %v9503_v29 = vsub.s32 3, %v7988_v31 }
 0xa58   : > { %6976 = vtanh.f32 %v3333_v61  ;;  %v8897_v51 = vrot.slane %v5760_v47, %v9503_v29  ;;  %v9504_v61 = vsub.s32 2, %v7988_v31 }
 0xa5f   : > { %v6973_v2 = vpop.eup %6972 }
 0xa60   : > { %v3336_v34 = vmul.f32 %v6973_v2, %v6971_v60  ;;  %v6975_v3 = vpop.eup %6974  ;;  %v8902_v60 = vrot.slane %v5760_v47, %v9504_v61 }
 0xa62   : > { %v6977_v9 = vpop.eup %6976 }
 0xa63   : > { %v3337_v5 = vmul.f32 %v6977_v9, %v6975_v3 }
 0xa65   : > { %v3338_v37 = vpack.c.bf16 %v3337_v5, %v3336_v34 }
 0xa67   : > { %3668 = vmatmul.mubr.bf16.gmra.mrb[92].mxu1 %v3338_v37  ;;  %3781 = vmatmul.mubr.bf16.gmra.mrb[108].mxu0 %v3338_v37 }
 0xa68   : > { %4088 = vmatprep.mubr.bf16.mxu1 %v7307_v18  ;;  %4131 = vmatprep.mubr.bf16.mxu0 %v7307_v18 }
 0xa6f   : > { %4089 = vmatmul.mubr.bf16.vlgmr.msra.gmra.mrb[64].mxu1 %v7307_v18  ;;  %4132 = vmatmul.mubr.bf16.vlgmr.msra.gmra.mrb[80].mxu0 %v7307_v18 }
 0xa70   : > { %4209 = vmatpush1.bf16.msra.mxu1 %v8620_v50  ;;  %4252 = vmatpush1.bf16.msra.mxu0 %v8659_v27 }
 0xa71   : > { %4210 = vmatprep.subr.bf16.mxu1 %v8665_v48  ;;  %4253 = vmatprep.subr.bf16.mxu0 %v8671_v33 }
 0xa72   : > { %4240 = vmatprep.mubr.bf16.mxu1 %v7307_v18  ;;  %4283 = vmatprep.mubr.bf16.mxu0 %v7307_v18 }
 0xa74   : > { %4211 = vmatpush1.bf16.msra.mxu1 %v8677_v14  ;;  %4254 = vmatpush1.bf16.msra.mxu0 %v8688_v25 }
 0xa75   : > { %4212 = vmatprep.subr.bf16.mxu1 %v8682_v28  ;;  %4255 = vmatprep.subr.bf16.mxu0 %v8699_v13 }
 0xa78   : > { %4213 = vmatpush1.bf16.msra.mxu1 %v8694_v10  ;;  %4256 = vmatpush1.bf16.msra.mxu0 %v8711_v35 }
 0xa79   : > { %4214 = vmatprep.subr.bf16.mxu1 %v8705_v16  ;;  %4257 = vmatprep.subr.bf16.mxu0 %v8717_v39 }
 0xa7c   : > { %4215 = vmatpush1.bf16.msra.mxu1 %v8723_v7  ;;  %4258 = vmatpush1.bf16.msra.mxu0 %v8735_v57 }
 0xa7d   : > { %4216 = vmatprep.subr.bf16.mxu1 %v8729_v43  ;;  %4259 = vmatprep.subr.bf16.mxu0 %v8741_v40 }
 0xa80   : > { %4217 = vmatpush1.bf16.msra.mxu1 %v8747_v52  ;;  %4260 = vmatpush1.bf16.msra.mxu0 %v8759_v32 }
 0xa81   : > { %4218 = vmatprep.subr.bf16.mxu1 %v8753_v56  ;;  %4261 = vmatprep.subr.bf16.mxu0 %v8765_v53 }
 0xa84   : > { %4219 = vmatpush1.bf16.msra.mxu1 %v8771_v54  ;;  %4262 = vmatpush1.bf16.msra.mxu0 %v8783_v38 }
 0xa85   : > { %4220 = vmatprep.subr.bf16.mxu1 %v8777_v55  ;;  %4263 = vmatprep.subr.bf16.mxu0 %v8802_v21 }
 0xa88   : > { %4221 = vmatpush1.bf16.msra.mxu1 %v8790_v58  ;;  %4264 = vmatpush1.bf16.msra.mxu0 %v8807_v62 }
 0xa89   : > { %4222 = vmatprep.subr.bf16.mxu1 %v8797_v59  ;;  %4265 = vmatprep.subr.bf16.mxu0 %v8812_v23 }
 0xa8c   : > { %4223 = vmatpush1.bf16.msra.mxu1 %v8819_v12  ;;  %4266 = vmatpush1.bf16.msra.mxu0 %v8826_v15 }
 0xa8d   : > { %4360 = vmatprep.subr.bf16.mxu1 %v8614_v44  ;;  %4403 = vmatprep.subr.bf16.mxu0 %v8654_v46 }
 0xb42   : > { %v4090_v49 = vpop.f32.mrb[64].mxu1  ;;  %v4133_v4 = vpop.f32.mrb[80].mxu0 }
 0xb43   : > { %v6247_v30 = vadd.f32 %v4090_v49, %v8886_v36  ;;  %v4092_v22 = vpop.f32.mrb[65].mxu1  ;;  %v4135_v41 = vpop.f32.mrb[81].mxu0  ;;  %v6279_v34 = vadd.f32 %v4133_v4, %v8902_v60 }
 0xb44   : > { %v6248_v63 = vadd.f32 %v4092_v22, %v8890_v20  ;;  %v4094_v0 = vpop.f32.mrb[66].mxu1  ;;  %v4137_v42 = vpop.f32.mrb[82].mxu0  ;;  %v6280_v2 = vadd.f32 %v4135_v41, %v8897_v51 }
 0xb45   : > { %v5857_v1 = vmul.f32 -1.442695, %v6247_v30  ;;  %v6249_v6 = vadd.f32 %v4094_v0, %v8886_v36  ;;  %v4096_v26 = vpop.f32.mrb[67].mxu1  ;;  %v4139_v45 = vpop.f32.mrb[83].mxu0  ;;  %v6281_v5 = vadd.f32 %v4137_v42, %v8902_v60 }
 0xb46   : > { %v5859_v17 = vmul.f32 -1.442695, %v6248_v63  ;;  %v6250_v19 = vadd.f32 %v4096_v26, %v8890_v20  ;;  %v5861_v3 = vmul.f32 -1.442695, %v6280_v2  ;;  %v6282_v9 = vadd.f32 %v4139_v45, %v8897_v51 }
 0xb47   : > { %6978 = vpow2.f32 %v5857_v1  ;;  %v5858_v24 = vmul.f32 -1.442695, %v6249_v6 }
 0xb48   : > { %6980 = vpow2.f32 %v5859_v17  ;;  %v5860_v11 = vmul.f32 -1.442695, %v6250_v19  ;;  %v5862_v30 = vmul.f32 -1.442695, %v6282_v9 }
 0xb49   : > { %6982 = vpow2.f32 %v5858_v24 }
 0xb4a   : > { %6984 = vpow2.f32 %v5860_v11 }
 0xb4b   : > { %6986 = vtanh.f32 %v6279_v34 }
 0xb4c   : > { %6988 = vpow2.f32 %v5861_v3 }
 0xb4d   : > { %6990 = vtanh.f32 %v6281_v5 }
 0xb51   : > { %v6979_v37 = vpop.eup %6978 }
 0xb52   : > { %v6981_v8 = vpop.eup %6980  ;;  %v4156_v49 = vadd.f32 1.0, %v6979_v37 }
 0xb53   : > { %v4168_v31 = vadd.f32 1.0, %v6981_v8  ;;  %v6983_v47 = vpop.eup %6982 }
 0xb54   : > { %6992 = vrcp.f32 %v4156_v49  ;;  %v4157_v22 = vadd.f32 1.0, %v6983_v47  ;;  %v6985_v41 = vpop.eup %6984 }
 0xb55   : > { %6994 = vrcp.f32 %v4168_v31  ;;  %v4169_v4 = vadd.f32 1.0, %v6985_v41  ;;  %v6987_v63 = vpop.eup %6986 }
 0xb56   : > { %6996 = vpow2.f32 %v5862_v30  ;;  %v6989_v0 = vpop.eup %6988 }
 0xb57   : > { %6998 = vrcp.f32 %v4157_v22  ;;  %v6991_v42 = vpop.eup %6990  ;;  %v4182_v19 = vadd.f32 1.0, %v6989_v0 }
 0xb58   : > { %7000 = vrcp.f32 %v4169_v4 }
 0xb59   : > { %7002 = vrcp.f32 %v4182_v19 }
 0xb5e   : > { %v6993_v1 = vpop.eup %6992 }
 0xb5f   : > { %v6995_v6 = vpop.eup %6994  ;;  %v4190_v26 = vmul.f32 %v6993_v1, %v6987_v63 }
 0xb60   : > { %v6997_v45 = vpop.eup %6996  ;;  %v4188_v17 = vmul.f32 0.0, %v6995_v6 }
 0xb61   : > { %v6999_v29 = vpop.eup %6998  ;;  %v4183_v2 = vadd.f32 1.0, %v6997_v45 }
 0xb62   : > { %v8908_v24 = vadd.f32 %v4190_v26, %v4188_v17  ;;  %v4191_v11 = vmul.f32 %v6999_v29, %v6991_v42  ;;  %v7001_v61 = vpop.eup %7000 }
 0xb63   : > { %v4189_v34 = vmul.f32 0.0, %v7001_v61  ;;  %v7003_v9 = vpop.eup %7002 }
 0xb64   : > { %7004 = vtanh.f32 %v8908_v24 }
 0xb65   : > { %v8911_v3 = vadd.f32 %v4191_v11, %v4189_v34  ;;  %7006 = vrcp.f32 %v4183_v2 }
 0xb67   : > { %7008 = vtanh.f32 %v8911_v3 }
 0xb6e   : > { %v7005_v5 = vpop.eup %7004 }
 0xb6f   : > { %v7007_v37 = vpop.eup %7006  ;;  %v4196_v49 = vmul.f32 %v7005_v5, %v7003_v9 }
 0xb71   : > { %v7009_v8 = vpop.eup %7008 }
 0xb72   : > { %v4197_v30 = vmul.f32 %v7009_v8, %v7007_v37 }
 0xb74   : > { %v8914_v31 = vpack.c.bf16 %v4197_v30, %v4196_v49 }
 0xb76   : > { %4241 = vmatmul.mubr.bf16.vlgmr.msra.gmra.mrb[68].mxu1 %v8914_v31  ;;  %4284 = vmatmul.mubr.bf16.vlgmr.msra.gmra.mrb[84].mxu0 %v8914_v31 }
 0xb77   : > { %4361 = vmatpush1.bf16.msra.mxu1 %v8620_v50  ;;  %4404 = vmatpush1.bf16.msra.mxu0 %v8659_v27 }
 0xb78   : > { %4362 = vmatprep.subr.bf16.mxu1 %v8665_v48  ;;  %4405 = vmatprep.subr.bf16.mxu0 %v8671_v33 }
 0xb79   : > { %4392 = vmatprep.mubr.bf16.mxu1 %v7307_v18  ;;  %4435 = vmatprep.mubr.bf16.mxu0 %v7307_v18 }
 0xb7b   : > { %4363 = vmatpush1.bf16.msra.mxu1 %v8677_v14  ;;  %4406 = vmatpush1.bf16.msra.mxu0 %v8688_v25 }
 0xb7c   : > { %4364 = vmatprep.subr.bf16.mxu1 %v8682_v28  ;;  %4407 = vmatprep.subr.bf16.mxu0 %v8699_v13 }
 0xb7f   : > { %4365 = vmatpush1.bf16.msra.mxu1 %v8694_v10  ;;  %4408 = vmatpush1.bf16.msra.mxu0 %v8711_v35 }
 0xb80   : > { %4366 = vmatprep.subr.bf16.mxu1 %v8705_v16  ;;  %4409 = vmatprep.subr.bf16.mxu0 %v8717_v39 }
 0xb83   : > { %4367 = vmatpush1.bf16.msra.mxu1 %v8723_v7  ;;  %4410 = vmatpush1.bf16.msra.mxu0 %v8735_v57 }
 0xb84   : > { %4368 = vmatprep.subr.bf16.mxu1 %v8729_v43  ;;  %4411 = vmatprep.subr.bf16.mxu0 %v8741_v40 }
 0xb87   : > { %4369 = vmatpush1.bf16.msra.mxu1 %v8747_v52  ;;  %4412 = vmatpush1.bf16.msra.mxu0 %v8759_v32 }
 0xb88   : > { %4370 = vmatprep.subr.bf16.mxu1 %v8753_v56  ;;  %4413 = vmatprep.subr.bf16.mxu0 %v8765_v53 }
 0xb8b   : > { %4371 = vmatpush1.bf16.msra.mxu1 %v8771_v54  ;;  %4414 = vmatpush1.bf16.msra.mxu0 %v8783_v38 }
 0xb8c   : > { %4372 = vmatprep.subr.bf16.mxu1 %v8777_v55  ;;  %4415 = vmatprep.subr.bf16.mxu0 %v8802_v21 }
 0xb8f   : > { %4373 = vmatpush1.bf16.msra.mxu1 %v8790_v58  ;;  %4416 = vmatpush1.bf16.msra.mxu0 %v8807_v62 }
 0xb90   : > { %4374 = vmatprep.subr.bf16.mxu1 %v8797_v59  ;;  %4417 = vmatprep.subr.bf16.mxu0 %v8812_v23 }
 0xb93   : > { %4375 = vmatpush1.bf16.msra.mxu1 %v8819_v12  ;;  %4418 = vmatpush1.bf16.msra.mxu0 %v8826_v15 }
 0xb94   : > { %4512 = vmatprep.subr.bf16.mxu1 %v8614_v44  ;;  %4555 = vmatprep.subr.bf16.mxu0 %v8654_v46 }
 0xc49   : > { %v4242_v47 = vpop.f32.mrb[68].mxu1  ;;  %v4285_v22 = vpop.f32.mrb[84].mxu0 }
 0xc4a   : > { %v6251_v41 = vadd.f32 %v4242_v47, %v8886_v36  ;;  %v4244_v4 = vpop.f32.mrb[69].mxu1  ;;  %v4287_v63 = vpop.f32.mrb[85].mxu0  ;;  %v6283_v34 = vadd.f32 %v4285_v22, %v8902_v60 }
 0xc4b   : > { %v6252_v0 = vadd.f32 %v4244_v4, %v8890_v20  ;;  %v4246_v42 = vpop.f32.mrb[70].mxu1  ;;  %v4289_v1 = vpop.f32.mrb[86].mxu0  ;;  %v6284_v2 = vadd.f32 %v4287_v63, %v8897_v51 }
 0xc4c   : > { %v5863_v6 = vmul.f32 -1.442695, %v6251_v41  ;;  %v6253_v26 = vadd.f32 %v4246_v42, %v8886_v36  ;;  %v4248_v45 = vpop.f32.mrb[71].mxu1  ;;  %v4291_v17 = vpop.f32.mrb[87].mxu0  ;;  %v6285_v37 = vadd.f32 %v4289_v1, %v8902_v60 }
 0xc4d   : > { %v5865_v29 = vmul.f32 -1.442695, %v6252_v0  ;;  %v6254_v19 = vadd.f32 %v4248_v45, %v8890_v20  ;;  %v5867_v9 = vmul.f32 -1.442695, %v6284_v2  ;;  %v6286_v5 = vadd.f32 %v4291_v17, %v8897_v51 }
 0xc4e   : > { %7010 = vpow2.f32 %v5863_v6  ;;  %v5864_v11 = vmul.f32 -1.442695, %v6253_v26 }
 0xc4f   : > { %7012 = vpow2.f32 %v5865_v29  ;;  %v5866_v61 = vmul.f32 -1.442695, %v6254_v19  ;;  %v5868_v47 = vmul.f32 -1.442695, %v6286_v5 }
 0xc50   : > { %7014 = vpow2.f32 %v5864_v11 }
 0xc51   : > { %7016 = vpow2.f32 %v5866_v61 }
 0xc52   : > { %7018 = vtanh.f32 %v6283_v34 }
 0xc53   : > { %7020 = vpow2.f32 %v5867_v9 }
 0xc54   : > { %7022 = vtanh.f32 %v6285_v37 }
 0xc58   : > { %v7011_v8 = vpop.eup %7010 }
 0xc59   : > { %v7013_v49 = vpop.eup %7012  ;;  %v4308_v30 = vadd.f32 1.0, %v7011_v8 }
 0xc5a   : > { %v4320_v41 = vadd.f32 1.0, %v7013_v49  ;;  %v7015_v4 = vpop.eup %7014 }
 0xc5b   : > { %7024 = vrcp.f32 %v4308_v30  ;;  %v4309_v63 = vadd.f32 1.0, %v7015_v4  ;;  %v7017_v0 = vpop.eup %7016 }
 0xc5c   : > { %7026 = vrcp.f32 %v4320_v41  ;;  %v4321_v22 = vadd.f32 1.0, %v7017_v0  ;;  %v7019_v42 = vpop.eup %7018 }
 0xc5d   : > { %7028 = vpow2.f32 %v5868_v47  ;;  %v7021_v6 = vpop.eup %7020 }
 0xc5e   : > { %7030 = vrcp.f32 %v4309_v63  ;;  %v7023_v1 = vpop.eup %7022  ;;  %v4334_v61 = vadd.f32 1.0, %v7021_v6 }
 0xc5f   : > { %7032 = vrcp.f32 %v4321_v22 }
 0xc60   : > { %7034 = vrcp.f32 %v4334_v61 }
 0xc65   : > { %v7025_v26 = vpop.eup %7024 }
 0xc66   : > { %v7027_v45 = vpop.eup %7026  ;;  %v4342_v17 = vmul.f32 %v7025_v26, %v7019_v42 }
 0xc67   : > { %v7029_v29 = vpop.eup %7028  ;;  %v4340_v19 = vmul.f32 %v7027_v45, %v8908_v24 }
 0xc68   : > { %v7031_v11 = vpop.eup %7030  ;;  %v4335_v5 = vadd.f32 1.0, %v7029_v29 }
 0xc69   : > { %v8961_v2 = vadd.f32 %v4342_v17, %v4340_v19  ;;  %v4343_v34 = vmul.f32 %v7031_v11, %v7023_v1  ;;  %v7033_v9 = vpop.eup %7032 }
 0xc6a   : > { %v4341_v37 = vmul.f32 %v7033_v9, %v8911_v3  ;;  %v7035_v49 = vpop.eup %7034 }
 0xc6b   : > { %7036 = vtanh.f32 %v8961_v2 }
 0xc6c   : > { %v8965_v8 = vadd.f32 %v4343_v34, %v4341_v37  ;;  %7038 = vrcp.f32 %v4335_v5 }
 0xc6e   : > { %7040 = vtanh.f32 %v8965_v8 }
 0xc75   : > { %v7037_v30 = vpop.eup %7036 }
 0xc76   : > { %v7039_v24 = vpop.eup %7038  ;;  %v4348_v41 = vmul.f32 %v7037_v30, %v7035_v49 }
 0xc78   : > { %v7041_v47 = vpop.eup %7040 }
 0xc79   : > { %v4349_v4 = vmul.f32 %v7041_v47, %v7039_v24 }
 0xc7b   : > { %v8968_v63 = vpack.c.bf16 %v4349_v4, %v4348_v41 }
 0xc7d   : > { %4393 = vmatmul.mubr.bf16.vlgmr.msra.gmra.mrb[72].mxu1 %v8968_v63  ;;  %4436 = vmatmul.mubr.bf16.vlgmr.msra.gmra.mrb[88].mxu0 %v8968_v63 }
 0xc7e   : > { %4513 = vmatpush1.bf16.msra.mxu1 %v8620_v50  ;;  %4556 = vmatpush1.bf16.msra.mxu0 %v8659_v27 }
 0xc7f   : > { %4514 = vmatprep.subr.bf16.mxu1 %v8665_v48  ;;  %4557 = vmatprep.subr.bf16.mxu0 %v8671_v33 }
 0xc80   : > { %4544 = vmatprep.mubr.bf16.mxu1 %v7307_v18  ;;  %4587 = vmatprep.mubr.bf16.mxu0 %v7307_v18 }
 0xc82   : > { %4515 = vmatpush1.bf16.msra.mxu1 %v8677_v14  ;;  %4558 = vmatpush1.bf16.msra.mxu0 %v8688_v25 }
 0xc83   : > { %4516 = vmatprep.subr.bf16.mxu1 %v8682_v28  ;;  %4559 = vmatprep.subr.bf16.mxu0 %v8699_v13 }
 0xc86   : > { %4517 = vmatpush1.bf16.msra.mxu1 %v8694_v10  ;;  %4560 = vmatpush1.bf16.msra.mxu0 %v8711_v35 }
 0xc87   : > { %4518 = vmatprep.subr.bf16.mxu1 %v8705_v16  ;;  %4561 = vmatprep.subr.bf16.mxu0 %v8717_v39 }
 0xc8a   : > { %4519 = vmatpush1.bf16.msra.mxu1 %v8723_v7  ;;  %4562 = vmatpush1.bf16.msra.mxu0 %v8735_v57 }
 0xc8b   : > { %4520 = vmatprep.subr.bf16.mxu1 %v8729_v43  ;;  %4563 = vmatprep.subr.bf16.mxu0 %v8741_v40 }
 0xc8e   : > { %4521 = vmatpush1.bf16.msra.mxu1 %v8747_v52  ;;  %4564 = vmatpush1.bf16.msra.mxu0 %v8759_v32 }
 0xc8f   : > { %4522 = vmatprep.subr.bf16.mxu1 %v8753_v56  ;;  %4565 = vmatprep.subr.bf16.mxu0 %v8765_v53 }
 0xc92   : > { %4523 = vmatpush1.bf16.msra.mxu1 %v8771_v54  ;;  %4566 = vmatpush1.bf16.msra.mxu0 %v8783_v38 }
 0xc93   : > { %4524 = vmatprep.subr.bf16.mxu1 %v8777_v55  ;;  %4567 = vmatprep.subr.bf16.mxu0 %v8802_v21 }
 0xc96   : > { %4525 = vmatpush1.bf16.msra.mxu1 %v8790_v58  ;;  %4568 = vmatpush1.bf16.msra.mxu0 %v8807_v62 }
 0xc97   : > { %4526 = vmatprep.subr.bf16.mxu1 %v8797_v59  ;;  %4569 = vmatprep.subr.bf16.mxu0 %v8812_v23 }
 0xc9a   : > { %4527 = vmatpush1.bf16.msra.mxu1 %v8819_v12  ;;  %4570 = vmatpush1.bf16.msra.mxu0 %v8826_v15 }
 0xc9b   : > { %4664 = vmatprep.subr.bf16.mxu1 %v8614_v44  ;;  %4707 = vmatprep.subr.bf16.mxu0 %v8654_v46 }
 0xd50   : > { %v4394_v3 = vpop.f32.mrb[72].mxu1  ;;  %v4437_v0 = vpop.f32.mrb[88].mxu0 }
 0xd51   : > { %v6255_v22 = vadd.f32 %v4394_v3, %v8886_v36  ;;  %v4396_v42 = vpop.f32.mrb[73].mxu1  ;;  %v4439_v6 = vpop.f32.mrb[89].mxu0  ;;  %v6287_v37 = vadd.f32 %v4437_v0, %v8902_v60 }
 0xd52   : > { %v6256_v1 = vadd.f32 %v4396_v42, %v8890_v20  ;;  %v4398_v26 = vpop.f32.mrb[74].mxu1  ;;  %v4441_v45 = vpop.f32.mrb[90].mxu0  ;;  %v6288_v5 = vadd.f32 %v4439_v6, %v8897_v51 }
 0xd53   : > { %v5869_v17 = vmul.f32 -1.442695, %v6255_v22  ;;  %v6257_v29 = vadd.f32 %v4398_v26, %v8886_v36  ;;  %v4400_v19 = vpop.f32.mrb[75].mxu1  ;;  %v4443_v11 = vpop.f32.mrb[91].mxu0  ;;  %v6289_v24 = vadd.f32 %v4441_v45, %v8902_v60 }
 0xd54   : > { %v5871_v61 = vmul.f32 -1.442695, %v6256_v1  ;;  %v6258_v44 = vadd.f32 %v4400_v19, %v8890_v20  ;;  %v5873_v49 = vmul.f32 -1.442695, %v6288_v5  ;;  %v6290_v30 = vadd.f32 %v4443_v11, %v8897_v51 }
 0xd55   : > { %7042 = vpow2.f32 %v5869_v17  ;;  %v5870_v34 = vmul.f32 -1.442695, %v6257_v29 }
 0xd56   : > { %7044 = vpow2.f32 %v5871_v61  ;;  %v5872_v9 = vmul.f32 -1.442695, %v6258_v44  ;;  %v5874_v3 = vmul.f32 -1.442695, %v6290_v30 }
 0xd57   : > { %7046 = vpow2.f32 %v5870_v34 }
 0xd58   : > { %7048 = vpow2.f32 %v5872_v9 }
 0xd59   : > { %7050 = vtanh.f32 %v6287_v37 }
 0xd5a   : > { %7052 = vpow2.f32 %v5873_v49 }
 0xd5b   : > { %7054 = vtanh.f32 %v6289_v24 }
 0xd5f   : > { %v7043_v47 = vpop.eup %7042 }
 0xd60   : > { %v7045_v41 = vpop.eup %7044  ;;  %v4460_v4 = vadd.f32 1.0, %v7043_v47 }
 0xd61   : > { %v4472_v22 = vadd.f32 1.0, %v7045_v41  ;;  %v7047_v42 = vpop.eup %7046 }
 0xd62   : > { %7056 = vrcp.f32 %v4460_v4  ;;  %v4461_v6 = vadd.f32 1.0, %v7047_v42  ;;  %v7049_v1 = vpop.eup %7048 }
 0xd63   : > { %7058 = vrcp.f32 %v4472_v22  ;;  %v4473_v0 = vadd.f32 1.0, %v7049_v1  ;;  %v7051_v26 = vpop.eup %7050 }
 0xd64   : > { %7060 = vpow2.f32 %v5874_v3  ;;  %v7053_v17 = vpop.eup %7052 }
 0xd65   : > { %7062 = vrcp.f32 %v4461_v6  ;;  %v7055_v45 = vpop.eup %7054  ;;  %v4486_v9 = vadd.f32 1.0, %v7053_v17 }
 0xd66   : > { %7064 = vrcp.f32 %v4473_v0 }
 0xd67   : > { %7066 = vrcp.f32 %v4486_v9 }
 0xd6c   : > { %v7057_v29 = vpop.eup %7056 }
 0xd6d   : > { %v7059_v19 = vpop.eup %7058  ;;  %v4494_v11 = vmul.f32 %v7057_v29, %v7051_v26 }
 0xd6e   : > { %v7061_v61 = vpop.eup %7060  ;;  %v4492_v44 = vmul.f32 %v7059_v19, %v8961_v2 }
 0xd6f   : > { %v7063_v34 = vpop.eup %7062  ;;  %v4487_v30 = vadd.f32 1.0, %v7061_v61 }
 0xd70   : > { %v9015_v5 = vadd.f32 %v4494_v11, %v4492_v44  ;;  %v4495_v37 = vmul.f32 %v7063_v34, %v7055_v45  ;;  %v7065_v49 = vpop.eup %7064 }
 0xd71   : > { %v4493_v24 = vmul.f32 %v7065_v49, %v8965_v8  ;;  %v7067_v41 = vpop.eup %7066 }
 0xd72   : > { %7068 = vtanh.f32 %v9015_v5 }
 0xd73   : > { %v9019_v47 = vadd.f32 %v4495_v37, %v4493_v24  ;;  %7070 = vrcp.f32 %v4487_v30 }
 0xd75   : > { %7072 = vtanh.f32 %v9019_v47 }
 0xd7c   : > { %v7069_v4 = vpop.eup %7068 }
 0xd7d   : > { %v7071_v2 = vpop.eup %7070  ;;  %v4500_v22 = vmul.f32 %v7069_v4, %v7067_v41 }
 0xd7f   : > { %v7073_v3 = vpop.eup %7072 }
 0xd80   : > { %v4501_v42 = vmul.f32 %v7073_v3, %v7071_v2 }
 0xd82   : > { %v9022_v6 = vpack.c.bf16 %v4501_v42, %v4500_v22  ;;  %v9094_v42 = vld [vmem:[%s9494_s8 + $0x108] ss:$16 sps:$4 sm:$0xff]  }
 0xd84   : > { %4545 = vmatmul.mubr.bf16.vlgmr.msra.gmra.mrb[76].mxu1 %v9022_v6  ;;  %4588 = vmatmul.mubr.bf16.vlgmr.msra.gmra.mrb[92].mxu0 %v9022_v6 }
 0xd85   : > { %4665 = vmatpush1.bf16.msra.mxu1 %v8620_v50  ;;  %4708 = vmatpush1.bf16.msra.mxu0 %v8659_v27  ;;  %v9061_v50 = vld [vmem:[%s9494_s8 + $0x104] ss:$16 sps:$4 sm:$0xff]  }
 0xd86   : > { %4666 = vmatprep.subr.bf16.mxu1 %v8665_v48  ;;  %4709 = vmatprep.subr.bf16.mxu0 %v8671_v33 }
 0xd87   : > { %4696 = vmatprep.mubr.bf16.mxu1 %v7307_v18  ;;  %4739 = vmatprep.mubr.bf16.mxu0 %v7307_v18 }
 0xd89   : > { %4667 = vmatpush1.bf16.msra.mxu1 %v8677_v14  ;;  %4710 = vmatpush1.bf16.msra.mxu0 %v8688_v25 }
 0xd8a   : > { %4668 = vmatprep.subr.bf16.mxu1 %v8682_v28  ;;  %4711 = vmatprep.subr.bf16.mxu0 %v8699_v13 }
 0xd8d   : > { %4669 = vmatpush1.bf16.msra.mxu1 %v8694_v10  ;;  %4712 = vmatpush1.bf16.msra.mxu0 %v8711_v35 }
 0xd8e   : > { %4670 = vmatprep.subr.bf16.mxu1 %v8705_v16  ;;  %4713 = vmatprep.subr.bf16.mxu0 %v8717_v39 }
 0xd91   : > { %4671 = vmatpush1.bf16.msra.mxu1 %v8723_v7  ;;  %4714 = vmatpush1.bf16.msra.mxu0 %v8735_v57 }
 0xd92   : > { %4672 = vmatprep.subr.bf16.mxu1 %v8729_v43  ;;  %4715 = vmatprep.subr.bf16.mxu0 %v8741_v40 }
 0xd95   : > { %4673 = vmatpush1.bf16.msra.mxu1 %v8747_v52  ;;  %4716 = vmatpush1.bf16.msra.mxu0 %v8759_v32 }
 0xd96   : > { %4674 = vmatprep.subr.bf16.mxu1 %v8753_v56  ;;  %4717 = vmatprep.subr.bf16.mxu0 %v8765_v53 }
 0xd99   : > { %4675 = vmatpush1.bf16.msra.mxu1 %v8771_v54  ;;  %4718 = vmatpush1.bf16.msra.mxu0 %v8783_v38 }
 0xd9a   : > { %4676 = vmatprep.subr.bf16.mxu1 %v8777_v55  ;;  %4719 = vmatprep.subr.bf16.mxu0 %v8802_v21 }
 0xd9d   : > { %4677 = vmatpush1.bf16.msra.mxu1 %v8790_v58  ;;  %4720 = vmatpush1.bf16.msra.mxu0 %v8807_v62 }
 0xd9e   : > { %4678 = vmatprep.subr.bf16.mxu1 %v8797_v59  ;;  %4721 = vmatprep.subr.bf16.mxu0 %v8812_v23 }
 0xda1   : > { %4679 = vmatpush1.bf16.msra.mxu1 %v8819_v12  ;;  %4722 = vmatpush1.bf16.msra.mxu0 %v8826_v15 }
 0xda2   : > { %4816 = vmatprep.subr.bf16.mxu1 %v9061_v50  ;;  %4859 = vmatprep.subr.bf16.mxu0 %v8654_v46 }
 0xe57   : > { %v4546_v27 = vpop.f32.mrb[76].mxu1  ;;  %v4589_v48 = vpop.f32.mrb[92].mxu0 }
 0xe58   : > { %v6259_v33 = vadd.f32 %v4546_v27, %v8886_v36  ;;  %v4548_v14 = vpop.f32.mrb[77].mxu1  ;;  %v4591_v28 = vpop.f32.mrb[93].mxu0  ;;  %v6291_v56 = vadd.f32 %v4589_v48, %v8902_v60  ;;  %v9100_v27 = vld [vmem:[%s9494_s8 + $0x124] ss:$16 sps:$4 sm:$0xff]   ;;  %v9106_v48 = vld [vmem:[%s9494_s8 + $0x12c] ss:$16 sps:$4 sm:$0xff]  }
 0xe59   : > { %v6260_v25 = vadd.f32 %v4548_v14, %v8890_v20  ;;  %v4550_v10 = vpop.f32.mrb[78].mxu1  ;;  %v4593_v13 = vpop.f32.mrb[94].mxu0  ;;  %v6292_v52 = vadd.f32 %v4591_v28, %v8897_v51  ;;  %v9120_v14 = vld [vmem:[%s9494_s8 + $0x128] ss:$16 sps:$4 sm:$0xff]   ;;  %v9126_v28 = vld [vmem:[%s9494_s8 + $0x144] ss:$16 sps:$4 sm:$0xff]  }
 0xe5a   : > { %v5875_v16 = vmul.f32 -1.442695, %v6259_v33  ;;  %v6261_v35 = vadd.f32 %v4550_v10, %v8886_v36  ;;  %v4552_v39 = vpop.f32.mrb[79].mxu1  ;;  %v4595_v7 = vpop.f32.mrb[95].mxu0  ;;  %v6293_v54 = vadd.f32 %v4593_v13, %v8902_v60  ;;  %v9114_v33 = vld [vmem:[%s9494_s8 + $0x120] ss:$16 sps:$4 sm:$0xff]  }
 0xe5b   : > { %v5877_v43 = vmul.f32 -1.442695, %v6260_v25  ;;  %v6262_v57 = vadd.f32 %v4552_v39, %v8890_v20  ;;  %v5879_v32 = vmul.f32 -1.442695, %v6292_v52  ;;  %v6294_v53 = vadd.f32 %v4595_v7, %v8897_v51  ;;  %v9132_v25 = vld [vmem:[%s9494_s8 + $0x14c] ss:$16 sps:$4 sm:$0xff]  }
 0xe5c   : > { %7074 = vpow2.f32 %v5875_v16  ;;  %v5876_v46 = vmul.f32 -1.442695, %v6261_v35  ;;  %v9138_v10 = vld [vmem:[%s9494_s8 + $0x140] ss:$16 sps:$4 sm:$0xff]   ;;  %v9144_v13 = vld [vmem:[%s9494_s8 + $0x148] ss:$16 sps:$4 sm:$0xff]  }
 0xe5d   : > { %7076 = vpow2.f32 %v5877_v43  ;;  %v5878_v40 = vmul.f32 -1.442695, %v6262_v57  ;;  %v5880_v59 = vmul.f32 -1.442695, %v6294_v53  ;;  %v9150_v16 = vld [vmem:[%s9494_s8 + $0x164] ss:$16 sps:$4 sm:$0xff]  }
 0xe5e   : > { %7078 = vpow2.f32 %v5876_v46  ;;  %v9156_v35 = vld [vmem:[%s9494_s8 + $0x16c] ss:$16 sps:$4 sm:$0xff]   ;;  %v9162_v39 = vld [vmem:[%s9494_s8 + $0x160] ss:$16 sps:$4 sm:$0xff]   ;;  %v9168_v7 = vld [vmem:[%s9494_s8 + $0x168] ss:$16 sps:$4 sm:$0xff]  }
 0xe5f   : > { %7080 = vpow2.f32 %v5878_v40  ;;  %v9174_v43 = vld [vmem:[%s9494_s8 + $0x184] ss:$16 sps:$4 sm:$0xff]   ;;  %v9180_v57 = vld [vmem:[%s9494_s8 + $0x18c] ss:$16 sps:$4 sm:$0xff]   ;;  %v9186_v46 = vld [vmem:[%s9494_s8 + $0x180] ss:$16 sps:$4 sm:$0xff]  }
 0xe60   : > { %7082 = vtanh.f32 %v6291_v56  ;;  %v9192_v40 = vld [vmem:[%s9494_s8 + $0x188] ss:$16 sps:$4 sm:$0xff]   ;;  %v9198_v52 = vld [vmem:[%s9494_s8 + $0x1a4] ss:$16 sps:$4 sm:$0xff]   ;;  %v9204_v56 = vld [vmem:[%s9494_s8 + $0x1ac] ss:$16 sps:$4 sm:$0xff]  }
 0xe61   : > { %7084 = vpow2.f32 %v5879_v32  ;;  %v9210_v32 = vld [vmem:[%s9494_s8 + $0x1a0] ss:$16 sps:$4 sm:$0xff]   ;;  %v9216_v53 = vld [vmem:[%s9494_s8 + $0x1a8] ss:$16 sps:$4 sm:$0xff]  }
 0xe62   : > { %7086 = vtanh.f32 %v6293_v54  ;;  %v9222_v54 = vld [vmem:[%s9494_s8 + $0x1c4] ss:$16 sps:$4 sm:$0xff]  }
 0xe66   : > { %v7075_v55 = vpop.eup %7074 }
 0xe67   : > { %v7077_v38 = vpop.eup %7076  ;;  %v4612_v58 = vadd.f32 1.0, %v7075_v55  ;;  %v9228_v55 = vld [vmem:[%s9494_s8 + $0x1cc] ss:$16 sps:$4 sm:$0xff]  }
 0xe68   : > { %v4624_v21 = vadd.f32 1.0, %v7077_v38  ;;  %v7079_v62 = vpop.eup %7078  ;;  %v9234_v38 = vld [vmem:[%s9494_s8 + $0x1c0] ss:$16 sps:$4 sm:$0xff]  }
 0xe69   : > { %7088 = vrcp.f32 %v4612_v58  ;;  %v4613_v23 = vadd.f32 1.0, %v7079_v62  ;;  %v7081_v12 = vpop.eup %7080  ;;  %v9240_v58 = vld [vmem:[%s9494_s8 + $0x1c8] ss:$16 sps:$4 sm:$0xff]   ;;  %v9258_v62 = vld [vmem:[%s9494_s8 + $0x1e0] ss:$16 sps:$4 sm:$0xff]  }
 0xe6a   : > { %7090 = vrcp.f32 %v4624_v21  ;;  %v4625_v15 = vadd.f32 1.0, %v7081_v12  ;;  %v7083_v8 = vpop.eup %7082  ;;  %v9252_v21 = vld [vmem:[%s9494_s8 + $0x1ec] ss:$16 sps:$4 sm:$0xff]  }
 0xe6b   : > { %7092 = vpow2.f32 %v5880_v59  ;;  %v7085_v1 = vpop.eup %7084  ;;  %v9246_v59 = vld [vmem:[%s9494_s8 + $0x1e4] ss:$16 sps:$4 sm:$0xff]   ;;  %v9271_v12 = vld [vmem:[%s9494_s8 + $0x10c] ss:$16 sps:$4 sm:$0xff]  }
 0xe6c   : > { %7094 = vrcp.f32 %v4613_v23  ;;  %v7087_v0 = vpop.eup %7086  ;;  %v4638_v61 = vadd.f32 1.0, %v7085_v1  ;;  %v9264_v23 = vld [vmem:[%s9494_s8 + $0x1e8] ss:$16 sps:$4 sm:$0xff]  }
 0xe6d   : > { %7096 = vrcp.f32 %v4625_v15 }
 0xe6e   : > { %7098 = vrcp.f32 %v4638_v61 }
 0xe73   : > { %v7089_v26 = vpop.eup %7088 }
 0xe74   : > { %v7091_v17 = vpop.eup %7090  ;;  %v4646_v45 = vmul.f32 %v7089_v26, %v7083_v8 }
 0xe75   : > { %v7093_v29 = vpop.eup %7092  ;;  %v4644_v19 = vmul.f32 %v7091_v17, %v9015_v5 }
 0xe76   : > { %v7095_v11 = vpop.eup %7094  ;;  %v4639_v37 = vadd.f32 1.0, %v7093_v29 }
 0xe77   : > { %v9074_v44 = vadd.f32 %v4646_v45, %v4644_v19  ;;  %v4647_v34 = vmul.f32 %v7095_v11, %v7087_v0  ;;  %v7097_v9 = vpop.eup %7096 }
 0xe78   : > { %v4645_v49 = vmul.f32 %v7097_v9, %v9019_v47  ;;  %v7099_v24 = vpop.eup %7098  ;;  %v9088_v47 = vld [vmem:[%s9494_s8 + $0x100] ss:$16 sps:$4 sm:$0xff]  }
 0xe79   : > { %7100 = vtanh.f32 %v9074_v44 }
 0xe7a   : > { %v9078_v30 = vadd.f32 %v4647_v34, %v4645_v49  ;;  %7102 = vrcp.f32 %v4639_v37 }
 0xe7c   : > { %7104 = vtanh.f32 %v9078_v30 }
 0xe83   : > { %v7101_v41 = vpop.eup %7100 }
 0xe84   : > { %v7103_v5 = vpop.eup %7102  ;;  %v4652_v2 = vmul.f32 %v7101_v41, %v7099_v24 }
 0xe86   : > { %v7105_v4 = vpop.eup %7104 }
 0xe87   : > { %v4653_v3 = vmul.f32 %v7105_v4, %v7103_v5 }
 0xe89   : > { %v9081_v22 = vpack.c.bf16 %v4653_v3, %v4652_v2 }
 0xe8b   : > { %4697 = vmatmul.mubr.bf16.vlgmr.msra.gmra.mrb[80].mxu1 %v9081_v22  ;;  %4740 = vmatmul.mubr.bf16.vlgmr.msra.gmra.mrb[96].mxu0 %v9081_v22 }
 0xe8c   : > { %4817 = vmatpush1.bf16.msra.mxu1 %v9088_v47  ;;  %4860 = vmatpush1.bf16.msra.mxu0 %v9094_v42 }
 0xe8d   : > { %4818 = vmatprep.subr.bf16.mxu1 %v9100_v27  ;;  %4861 = vmatprep.subr.bf16.mxu0 %v9106_v48 }
 0xe8e   : > { %4848 = vmatprep.mubr.bf16.mxu1 %v7307_v18  ;;  %4891 = vmatprep.mubr.bf16.mxu0 %v7307_v18 }
 0xe90   : > { %4819 = vmatpush1.bf16.msra.mxu1 %v9114_v33  ;;  %4862 = vmatpush1.bf16.msra.mxu0 %v9120_v14 }
 0xe91   : > { %4820 = vmatprep.subr.bf16.mxu1 %v9126_v28  ;;  %4863 = vmatprep.subr.bf16.mxu0 %v9132_v25 }
 0xe94   : > { %4821 = vmatpush1.bf16.msra.mxu1 %v9138_v10  ;;  %4864 = vmatpush1.bf16.msra.mxu0 %v9144_v13 }
 0xe95   : > { %4822 = vmatprep.subr.bf16.mxu1 %v9150_v16  ;;  %4865 = vmatprep.subr.bf16.mxu0 %v9156_v35 }
 0xe98   : > { %4823 = vmatpush1.bf16.msra.mxu1 %v9162_v39  ;;  %4866 = vmatpush1.bf16.msra.mxu0 %v9168_v7 }
 0xe99   : > { %4824 = vmatprep.subr.bf16.mxu1 %v9174_v43  ;;  %4867 = vmatprep.subr.bf16.mxu0 %v9180_v57 }
 0xe9c   : > { %4825 = vmatpush1.bf16.msra.mxu1 %v9186_v46  ;;  %4868 = vmatpush1.bf16.msra.mxu0 %v9192_v40 }
 0xe9d   : > { %4826 = vmatprep.subr.bf16.mxu1 %v9198_v52  ;;  %4869 = vmatprep.subr.bf16.mxu0 %v9204_v56 }
 0xea0   : > { %4827 = vmatpush1.bf16.msra.mxu1 %v9210_v32  ;;  %4870 = vmatpush1.bf16.msra.mxu0 %v9216_v53 }
 0xea1   : > { %4828 = vmatprep.subr.bf16.mxu1 %v9222_v54  ;;  %4871 = vmatprep.subr.bf16.mxu0 %v9228_v55 }
 0xea4   : > { %4829 = vmatpush1.bf16.msra.mxu1 %v9234_v38  ;;  %4872 = vmatpush1.bf16.msra.mxu0 %v9240_v58 }
 0xea5   : > { %4830 = vmatprep.subr.bf16.mxu1 %v9246_v59  ;;  %4873 = vmatprep.subr.bf16.mxu0 %v9252_v21 }
 0xea8   : > { %4831 = vmatpush1.bf16.msra.mxu1 %v9258_v62  ;;  %4874 = vmatpush1.bf16.msra.mxu0 %v9264_v23 }
 0xea9   : > { %4968 = vmatprep.subr.bf16.mxu1 %v9061_v50  ;;  %5011 = vmatprep.subr.bf16.mxu0 %v9271_v12 }
 0xf5e   : > { %v4698_v15 = vpop.f32.mrb[80].mxu1  ;;  %v4741_v8 = vpop.f32.mrb[96].mxu0 }
 0xf5f   : > { %v6263_v1 = vadd.f32 %v4698_v15, %v8886_v36  ;;  %v4700_v0 = vpop.f32.mrb[81].mxu1  ;;  %v4743_v26 = vpop.f32.mrb[97].mxu0  ;;  %v6295_v5 = vadd.f32 %v4741_v8, %v8902_v60 }
 0xf60   : > { %v6264_v17 = vadd.f32 %v4700_v0, %v8890_v20  ;;  %v4702_v45 = vpop.f32.mrb[82].mxu1  ;;  %v4745_v29 = vpop.f32.mrb[98].mxu0  ;;  %v6296_v41 = vadd.f32 %v4743_v26, %v8897_v51 }
 0xf61   : > { %v5881_v19 = vmul.f32 -1.442695, %v6263_v1  ;;  %v6265_v11 = vadd.f32 %v4702_v45, %v8886_v36  ;;  %v4704_v61 = vpop.f32.mrb[83].mxu1  ;;  %v4747_v34 = vpop.f32.mrb[99].mxu0  ;;  %v6297_v3 = vadd.f32 %v4745_v29, %v8902_v60 }
 0xf62   : > { %v5883_v9 = vmul.f32 -1.442695, %v6264_v17  ;;  %v6266_v37 = vadd.f32 %v4704_v61, %v8890_v20  ;;  %v5885_v4 = vmul.f32 -1.442695, %v6296_v41  ;;  %v6298_v2 = vadd.f32 %v4747_v34, %v8897_v51 }
 0xf63   : > { %7106 = vpow2.f32 %v5881_v19  ;;  %v5882_v49 = vmul.f32 -1.442695, %v6265_v11 }
 0xf64   : > { %7108 = vpow2.f32 %v5883_v9  ;;  %v5884_v24 = vmul.f32 -1.442695, %v6266_v37  ;;  %v5886_v17 = vmul.f32 -1.442695, %v6298_v2 }
 0xf65   : > { %7110 = vpow2.f32 %v5882_v49 }
 0xf66   : > { %7112 = vpow2.f32 %v5884_v24 }
 0xf67   : > { %7114 = vtanh.f32 %v6295_v5 }
 0xf68   : > { %7116 = vpow2.f32 %v5885_v4 }
 0xf69   : > { %7118 = vtanh.f32 %v6297_v3 }
 0xf6d   : > { %v7107_v15 = vpop.eup %7106 }
 0xf6e   : > { %v7109_v1 = vpop.eup %7108  ;;  %v4764_v0 = vadd.f32 1.0, %v7107_v15 }
 0xf6f   : > { %v4776_v45 = vadd.f32 1.0, %v7109_v1  ;;  %v7111_v19 = vpop.eup %7110 }
 0xf70   : > { %7120 = vrcp.f32 %v4764_v0  ;;  %v4765_v26 = vadd.f32 1.0, %v7111_v19  ;;  %v7113_v11 = vpop.eup %7112 }
 0xf71   : > { %7122 = vrcp.f32 %v4776_v45  ;;  %v4777_v8 = vadd.f32 1.0, %v7113_v11  ;;  %v7115_v61 = vpop.eup %7114 }
 0xf72   : > { %7124 = vpow2.f32 %v5886_v17  ;;  %v7117_v34 = vpop.eup %7116 }
 0xf73   : > { %7126 = vrcp.f32 %v4765_v26  ;;  %v7119_v29 = vpop.eup %7118  ;;  %v4790_v4 = vadd.f32 1.0, %v7117_v34 }
 0xf74   : > { %7128 = vrcp.f32 %v4777_v8 }
 0xf75   : > { %7130 = vrcp.f32 %v4790_v4 }
 0xf7a   : > { %v7121_v9 = vpop.eup %7120 }
 0xf7b   : > { %v7123_v37 = vpop.eup %7122  ;;  %v4798_v49 = vmul.f32 %v7121_v9, %v7115_v61 }
 0xf7c   : > { %v7125_v24 = vpop.eup %7124  ;;  %v4796_v41 = vmul.f32 %v7123_v37, %v9074_v44 }
 0xf7d   : > { %v7127_v5 = vpop.eup %7126  ;;  %v4791_v1 = vadd.f32 1.0, %v7125_v24 }
 0xf7e   : > { %v9283_v2 = vadd.f32 %v4798_v49, %v4796_v41  ;;  %v4799_v3 = vmul.f32 %v7127_v5, %v7119_v29  ;;  %v7129_v15 = vpop.eup %7128 }
 0xf7f   : > { %v4797_v0 = vmul.f32 %v7129_v15, %v9078_v30  ;;  %v7131_v45 = vpop.eup %7130 }
 0xf80   : > { %7132 = vtanh.f32 %v9283_v2 }
 0xf81   : > { %v9287_v17 = vadd.f32 %v4799_v3, %v4797_v0  ;;  %7134 = vrcp.f32 %v4791_v1 }
 0xf83   : > { %7136 = vtanh.f32 %v9287_v17 }
 0xf8a   : > { %v7133_v19 = vpop.eup %7132 }
 0xf8b   : > { %v7135_v44 = vpop.eup %7134  ;;  %v4804_v11 = vmul.f32 %v7133_v19, %v7131_v45 }
 0xf8d   : > { %v7137_v26 = vpop.eup %7136 }
 0xf8e   : > { %v4805_v8 = vmul.f32 %v7137_v26, %v7135_v44 }
 0xf90   : > { %v9290_v61 = vpack.c.bf16 %v4805_v8, %v4804_v11 }
 0xf92   : > { %4849 = vmatmul.mubr.bf16.vlgmr.msra.gmra.mrb[84].mxu1 %v9290_v61  ;;  %4892 = vmatmul.mubr.bf16.vlgmr.msra.gmra.mrb[100].mxu0 %v9290_v61 }
 0xf93   : > { %4969 = vmatpush1.bf16.msra.mxu1 %v9088_v47  ;;  %5012 = vmatpush1.bf16.msra.mxu0 %v9094_v42 }
 0xf94   : > { %4970 = vmatprep.subr.bf16.mxu1 %v9100_v27  ;;  %5013 = vmatprep.subr.bf16.mxu0 %v9106_v48 }
 0xf95   : > { %5000 = vmatprep.mubr.bf16.mxu1 %v7307_v18  ;;  %5043 = vmatprep.mubr.bf16.mxu0 %v7307_v18 }
 0xf97   : > { %4971 = vmatpush1.bf16.msra.mxu1 %v9114_v33  ;;  %5014 = vmatpush1.bf16.msra.mxu0 %v9120_v14 }
 0xf98   : > { %4972 = vmatprep.subr.bf16.mxu1 %v9126_v28  ;;  %5015 = vmatprep.subr.bf16.mxu0 %v9132_v25 }
 0xf9b   : > { %4973 = vmatpush1.bf16.msra.mxu1 %v9138_v10  ;;  %5016 = vmatpush1.bf16.msra.mxu0 %v9144_v13 }
 0xf9c   : > { %4974 = vmatprep.subr.bf16.mxu1 %v9150_v16  ;;  %5017 = vmatprep.subr.bf16.mxu0 %v9156_v35 }
 0xf9f   : > { %4975 = vmatpush1.bf16.msra.mxu1 %v9162_v39  ;;  %5018 = vmatpush1.bf16.msra.mxu0 %v9168_v7 }
 0xfa0   : > { %4976 = vmatprep.subr.bf16.mxu1 %v9174_v43  ;;  %5019 = vmatprep.subr.bf16.mxu0 %v9180_v57 }
 0xfa3   : > { %4977 = vmatpush1.bf16.msra.mxu1 %v9186_v46  ;;  %5020 = vmatpush1.bf16.msra.mxu0 %v9192_v40 }
 0xfa4   : > { %4978 = vmatprep.subr.bf16.mxu1 %v9198_v52  ;;  %5021 = vmatprep.subr.bf16.mxu0 %v9204_v56 }
 0xfa7   : > { %4979 = vmatpush1.bf16.msra.mxu1 %v9210_v32  ;;  %5022 = vmatpush1.bf16.msra.mxu0 %v9216_v53 }
 0xfa8   : > { %4980 = vmatprep.subr.bf16.mxu1 %v9222_v54  ;;  %5023 = vmatprep.subr.bf16.mxu0 %v9228_v55 }
 0xfab   : > { %4981 = vmatpush1.bf16.msra.mxu1 %v9234_v38  ;;  %5024 = vmatpush1.bf16.msra.mxu0 %v9240_v58 }
 0xfac   : > { %4982 = vmatprep.subr.bf16.mxu1 %v9246_v59  ;;  %5025 = vmatprep.subr.bf16.mxu0 %v9252_v21 }
 0xfaf   : > { %4983 = vmatpush1.bf16.msra.mxu1 %v9258_v62  ;;  %5026 = vmatpush1.bf16.msra.mxu0 %v9264_v23 }
 0xfb0   : > { %5120 = vmatprep.subr.bf16.mxu1 %v9061_v50  ;;  %5163 = vmatprep.subr.bf16.mxu0 %v9271_v12 }
0x1065   : > { %v4850_v30 = vpop.f32.mrb[84].mxu1  ;;  %v4893_v34 = vpop.f32.mrb[100].mxu0 }
0x1066   : > { %v6267_v29 = vadd.f32 %v4850_v30, %v8886_v36  ;;  %v4852_v9 = vpop.f32.mrb[85].mxu1  ;;  %v4895_v37 = vpop.f32.mrb[101].mxu0  ;;  %v6299_v19 = vadd.f32 %v4893_v34, %v8902_v60 }
0x1067   : > { %v6268_v49 = vadd.f32 %v4852_v9, %v8890_v20  ;;  %v4854_v24 = vpop.f32.mrb[86].mxu1  ;;  %v4897_v41 = vpop.f32.mrb[102].mxu0  ;;  %v6300_v45 = vadd.f32 %v4895_v37, %v8897_v51 }
0x1068   : > { %v5887_v5 = vmul.f32 -1.442695, %v6267_v29  ;;  %v6269_v4 = vadd.f32 %v4854_v24, %v8886_v36  ;;  %v4856_v3 = vpop.f32.mrb[87].mxu1  ;;  %v4899_v15 = vpop.f32.mrb[103].mxu0  ;;  %v6301_v11 = vadd.f32 %v4897_v41, %v8902_v60 }
0x1069   : > { %v5889_v1 = vmul.f32 -1.442695, %v6268_v49  ;;  %v6270_v50 = vadd.f32 %v4856_v3, %v8890_v20  ;;  %v5891_v44 = vmul.f32 -1.442695, %v6300_v45  ;;  %v6302_v26 = vadd.f32 %v4899_v15, %v8897_v51 }
0x106a   : > { %7138 = vpow2.f32 %v5887_v5  ;;  %v5888_v12 = vmul.f32 -1.442695, %v6269_v4 }
0x106b   : > { %7140 = vpow2.f32 %v5889_v1  ;;  %v5890_v0 = vmul.f32 -1.442695, %v6270_v50  ;;  %v5892_v9 = vmul.f32 -1.442695, %v6302_v26 }
0x106c   : > { %7142 = vpow2.f32 %v5888_v12 }
0x106d   : > { %7144 = vpow2.f32 %v5890_v0 }
0x106e   : > { %7146 = vtanh.f32 %v6299_v19 }
0x106f   : > { %7148 = vpow2.f32 %v5891_v44 }
0x1070   : > { %7150 = vtanh.f32 %v6301_v11 }
0x1074   : > { %v7139_v8 = vpop.eup %7138 }
0x1075   : > { %v7141_v30 = vpop.eup %7140  ;;  %v4916_v29 = vadd.f32 1.0, %v7139_v8 }
0x1076   : > { %v4928_v49 = vadd.f32 1.0, %v7141_v30  ;;  %v7143_v24 = vpop.eup %7142 }
0x1077   : > { %7152 = vrcp.f32 %v4916_v29  ;;  %v4917_v37 = vadd.f32 1.0, %v7143_v24  ;;  %v7145_v5 = vpop.eup %7144 }
0x1078   : > { %7154 = vrcp.f32 %v4928_v49  ;;  %v4929_v34 = vadd.f32 1.0, %v7145_v5  ;;  %v7147_v4 = vpop.eup %7146 }
0x1079   : > { %7156 = vpow2.f32 %v5892_v9  ;;  %v7149_v3 = vpop.eup %7148 }
0x107a   : > { %7158 = vrcp.f32 %v4917_v37  ;;  %v7151_v41 = vpop.eup %7150  ;;  %v4942_v19 = vadd.f32 1.0, %v7149_v3 }
0x107b   : > { %7160 = vrcp.f32 %v4929_v34 }
0x107c   : > { %7162 = vrcp.f32 %v4942_v19 }
0x1081   : > { %v7153_v15 = vpop.eup %7152 }
0x1082   : > { %v7155_v1 = vpop.eup %7154  ;;  %v4950_v50 = vmul.f32 %v7153_v15, %v7147_v4 }
0x1083   : > { %v7157_v12 = vpop.eup %7156  ;;  %v4948_v0 = vmul.f32 %v7155_v1, %v9283_v2 }
0x1084   : > { %v7159_v45 = vpop.eup %7158  ;;  %v4943_v8 = vadd.f32 1.0, %v7157_v12 }
0x1085   : > { %v9337_v44 = vadd.f32 %v4950_v50, %v4948_v0  ;;  %v4951_v26 = vmul.f32 %v7159_v45, %v7151_v41  ;;  %v7161_v11 = vpop.eup %7160 }
0x1086   : > { %v4949_v30 = vmul.f32 %v7161_v11, %v9287_v17  ;;  %v7163_v9 = vpop.eup %7162 }
0x1087   : > { %7164 = vtanh.f32 %v9337_v44 }
0x1088   : > { %v9341_v29 = vadd.f32 %v4951_v26, %v4949_v30  ;;  %7166 = vrcp.f32 %v4943_v8 }
0x108a   : > { %7168 = vtanh.f32 %v9341_v29 }
0x1091   : > { %v7165_v49 = vpop.eup %7164 }
0x1092   : > { %v7167_v2 = vpop.eup %7166  ;;  %v4956_v37 = vmul.f32 %v7165_v49, %v7163_v9 }
0x1094   : > { %v7169_v24 = vpop.eup %7168 }
0x1095   : > { %v4957_v5 = vmul.f32 %v7169_v24, %v7167_v2 }
0x1097   : > { %v9344_v34 = vpack.c.bf16 %v4957_v5, %v4956_v37 }
0x1099   : > { %5001 = vmatmul.mubr.bf16.vlgmr.msra.gmra.mrb[88].mxu1 %v9344_v34  ;;  %5044 = vmatmul.mubr.bf16.vlgmr.msra.gmra.mrb[104].mxu0 %v9344_v34 }
0x109a   : > { %5121 = vmatpush1.bf16.msra.mxu1 %v9088_v47  ;;  %5164 = vmatpush1.bf16.msra.mxu0 %v9094_v42 }
0x109b   : > { %5122 = vmatprep.subr.bf16.mxu1 %v9100_v27  ;;  %5165 = vmatprep.subr.bf16.mxu0 %v9106_v48 }
0x109c   : > { %5152 = vmatprep.mubr.bf16.mxu1 %v7307_v18  ;;  %5195 = vmatprep.mubr.bf16.mxu0 %v7307_v18  ;;  %v9383_v18 = vld [vmem:[%s9496_s10] sm:$0xff]  }
0x109e   : > { %5123 = vmatpush1.bf16.msra.mxu1 %v9114_v33  ;;  %5166 = vmatpush1.bf16.msra.mxu0 %v9120_v14 }
0x109f   : > { %5124 = vmatprep.subr.bf16.mxu1 %v9126_v28  ;;  %5167 = vmatprep.subr.bf16.mxu0 %v9132_v25 }
0x10a2   : > { %5125 = vmatpush1.bf16.msra.mxu1 %v9138_v10  ;;  %5168 = vmatpush1.bf16.msra.mxu0 %v9144_v13 }
0x10a3   : > { %5126 = vmatprep.subr.bf16.mxu1 %v9150_v16  ;;  %5169 = vmatprep.subr.bf16.mxu0 %v9156_v35 }
0x10a6   : > { %5127 = vmatpush1.bf16.msra.mxu1 %v9162_v39  ;;  %5170 = vmatpush1.bf16.msra.mxu0 %v9168_v7 }
0x10a7   : > { %5128 = vmatprep.subr.bf16.mxu1 %v9174_v43  ;;  %5171 = vmatprep.subr.bf16.mxu0 %v9180_v57 }
0x10aa   : > { %5129 = vmatpush1.bf16.msra.mxu1 %v9186_v46  ;;  %5172 = vmatpush1.bf16.msra.mxu0 %v9192_v40 }
0x10ab   : > { %5130 = vmatprep.subr.bf16.mxu1 %v9198_v52  ;;  %5173 = vmatprep.subr.bf16.mxu0 %v9204_v56 }
0x10ae   : > { %5131 = vmatpush1.bf16.msra.mxu1 %v9210_v32  ;;  %5174 = vmatpush1.bf16.msra.mxu0 %v9216_v53 }
0x10af   : > { %5132 = vmatprep.subr.bf16.mxu1 %v9222_v54  ;;  %5175 = vmatprep.subr.bf16.mxu0 %v9228_v55 }
0x10b2   : > { %5133 = vmatpush1.bf16.msra.mxu1 %v9234_v38  ;;  %5176 = vmatpush1.bf16.msra.mxu0 %v9240_v58 }
0x10b3   : > { %5134 = vmatprep.subr.bf16.mxu1 %v9246_v59  ;;  %5177 = vmatprep.subr.bf16.mxu0 %v9252_v21 }
0x10b6   : > { %5135 = vmatpush1.bf16.msra.mxu1 %v9258_v62  ;;  %5178 = vmatpush1.bf16.msra.mxu0 %v9264_v23 }
0x10b7   : > { %6119 = vmatprep.subr.bf16.mxu1 %v9383_v18 }
0x116c   : > { %v5002_v47 = vpop.f32.mrb[88].mxu1  ;;  %v5045_v42 = vpop.f32.mrb[104].mxu0 }
0x116d   : > { %v6271_v27 = vadd.f32 %v5002_v47, %v8886_v36  ;;  %v5004_v48 = vpop.f32.mrb[89].mxu1  ;;  %v5047_v33 = vpop.f32.mrb[105].mxu0  ;;  %v6303_v40 = vadd.f32 %v5045_v42, %v8902_v60  ;;  %v6715_v42 = vld [vmem:[%s9496_s10 + $0x8] sm:$0xff]  }
0x116e   : > { %v6272_v14 = vadd.f32 %v5004_v48, %v8890_v20  ;;  %v5006_v28 = vpop.f32.mrb[90].mxu1  ;;  %v5049_v25 = vpop.f32.mrb[106].mxu0  ;;  %v6304_v46 = vadd.f32 %v5047_v33, %v8897_v51  ;;  %v6718_v48 = vld [vmem:[%s9496_s10 + $0x20] sm:$0xff]   ;;  %v6721_v33 = vld [vmem:[%s9496_s10 + $0x38] sm:$0xff]  }
0x116f   : > { %v5893_v10 = vmul.f32 -1.442695, %v6271_v27  ;;  %v6273_v13 = vadd.f32 %v5006_v28, %v8886_v36  ;;  %v5008_v16 = vpop.f32.mrb[91].mxu1  ;;  %v5051_v35 = vpop.f32.mrb[107].mxu0  ;;  %v6305_v32 = vadd.f32 %v5049_v25, %v8902_v60  ;;  %v6717_v27 = vld [vmem:[%s9496_s10 + $0x18] sm:$0xff]  }
0x1170   : > { %v5895_v39 = vmul.f32 -1.442695, %v6272_v14  ;;  %v6274_v7 = vadd.f32 %v5008_v16, %v8890_v20  ;;  %v5897_v52 = vmul.f32 -1.442695, %v6304_v46  ;;  %v6306_v56 = vadd.f32 %v5051_v35, %v8897_v51 }
0x1171   : > { %7170 = vpow2.f32 %v5893_v10  ;;  %v5894_v43 = vmul.f32 -1.442695, %v6273_v13 }
0x1172   : > { %7172 = vpow2.f32 %v5895_v39  ;;  %v5896_v57 = vmul.f32 -1.442695, %v6274_v7  ;;  %v5898_v38 = vmul.f32 -1.442695, %v6306_v56 }
0x1173   : > { %7174 = vpow2.f32 %v5894_v43 }
0x1174   : > { %7176 = vpow2.f32 %v5896_v57 }
0x1175   : > { %7178 = vtanh.f32 %v6303_v40 }
0x1176   : > { %7180 = vpow2.f32 %v5897_v52 }
0x1177   : > { %7182 = vtanh.f32 %v6305_v32 }
0x117b   : > { %v7171_v53 = vpop.eup %7170 }
0x117c   : > { %v7173_v54 = vpop.eup %7172  ;;  %v5068_v55 = vadd.f32 1.0, %v7171_v53 }
0x117d   : > { %v5080_v58 = vadd.f32 1.0, %v7173_v54  ;;  %v7175_v59 = vpop.eup %7174 }
0x117e   : > { %7184 = vrcp.f32 %v5068_v55  ;;  %v5069_v21 = vadd.f32 1.0, %v7175_v59  ;;  %v7177_v62 = vpop.eup %7176 }
0x117f   : > { %7186 = vrcp.f32 %v5080_v58  ;;  %v5081_v23 = vadd.f32 1.0, %v7177_v62  ;;  %v7179_v17 = vpop.eup %7178 }
0x1180   : > { %7188 = vpow2.f32 %v5898_v38  ;;  %v7181_v4 = vpop.eup %7180 }
0x1181   : > { %7190 = vrcp.f32 %v5069_v21  ;;  %v7183_v3 = vpop.eup %7182  ;;  %v5094_v45 = vadd.f32 1.0, %v7181_v4 }
0x1182   : > { %7192 = vrcp.f32 %v5081_v23 }
0x1183   : > { %7194 = vrcp.f32 %v5094_v45 }
0x1188   : > { %v7185_v41 = vpop.eup %7184 }
0x1189   : > { %v7187_v15 = vpop.eup %7186  ;;  %v5102_v1 = vmul.f32 %v7185_v41, %v7179_v17 }
0x118a   : > { %v7189_v50 = vpop.eup %7188  ;;  %v5100_v12 = vmul.f32 %v7187_v15, %v9337_v44 }
0x118b   : > { %v7191_v0 = vpop.eup %7190  ;;  %v5095_v8 = vadd.f32 1.0, %v7189_v50 }
0x118c   : > { %v9395_v19 = vadd.f32 %v5102_v1, %v5100_v12  ;;  %v5103_v26 = vmul.f32 %v7191_v0, %v7183_v3  ;;  %v7193_v11 = vpop.eup %7192  ;;  %v9443_v1 = vld [vmem:[%s9497_s11] ss:$0 sm:$0xff] }
0x118d   : > { %v5101_v30 = vmul.f32 %v7193_v11, %v9341_v29  ;;  %v7195_v49 = vpop.eup %7194  ;;  %v6716_v29 = vld [vmem:[%s9496_s10 + $0x10] sm:$0xff]  }
0x118e   : > { %7196 = vtanh.f32 %v9395_v19 }
0x118f   : > { %v9399_v9 = vadd.f32 %v5103_v26, %v5101_v30  ;;  %7198 = vrcp.f32 %v5095_v8 }
0x1191   : > { %7200 = vtanh.f32 %v9399_v9 }
0x1198   : > { %v7197_v2 = vpop.eup %7196 }
0x1199   : > { %v7199_v44 = vpop.eup %7198  ;;  %v5108_v37 = vmul.f32 %v7197_v2, %v7195_v49 }
0x119b   : > { %v7201_v24 = vpop.eup %7200 }
0x119c   : > { %v5109_v5 = vmul.f32 %v7201_v24, %v7199_v44 }
0x119e   : > { %v5110_v47 = vpack.c.bf16 %v5109_v5, %v5108_v37 }
0x11a0   : > { %5153 = vmatmul.mubr.bf16.vlgmr.msra.gmra.mrb[92].mxu1 %v5110_v47  ;;  %5196 = vmatmul.mubr.bf16.vlgmr.msra.gmra.mrb[108].mxu0 %v5110_v47 }
0x11a1   : > { %6120 = vmatpush3.bf16.msra.mxu1 %v9383_v18  ;;  %6135 = vmatprep.mubr.bf16.mxu1 %v8914_v31  ;;  %v6719_v31 = vld [vmem:[%s9496_s10 + $0x28] sm:$0xff]   ;;  %v6720_v18 = vld [vmem:[%s9496_s10 + $0x30] sm:$0xff]  }
0x11a2   : > { %6121 = vmatprep.subr.bf16.mxu1 %v6715_v42 }
0x11a5   : > { %6122 = vmatpush3.bf16.msra.mxu1 %v6715_v42 }
0x11a6   : > { %6123 = vmatprep.subr.bf16.mxu1 %v6716_v29 }
0x11a9   : > { %6124 = vmatpush3.bf16.msra.mxu1 %v6716_v29 }
0x11aa   : > { %6125 = vmatprep.subr.bf16.mxu1 %v6717_v27 }
0x11ad   : > { %6126 = vmatpush3.bf16.msra.mxu1 %v6717_v27 }
0x11ae   : > { %6127 = vmatprep.subr.bf16.mxu1 %v6718_v48 }
0x11b1   : > { %6128 = vmatpush3.bf16.msra.mxu1 %v6718_v48 }
0x11b2   : > { %6129 = vmatprep.subr.bf16.mxu1 %v6719_v31 }
0x11b5   : > { %6130 = vmatpush3.bf16.msra.mxu1 %v6719_v31 }
0x11b6   : > { %6131 = vmatprep.subr.bf16.mxu1 %v6720_v18 }
0x11b9   : > { %6132 = vmatpush3.bf16.msra.mxu1 %v6720_v18 }
0x11ba   : > { %6133 = vmatprep.subr.bf16.mxu1 %v6721_v33 }
0x11bd   : > { %6134 = vmatpush3.bf16.msra.mxu1 %v6721_v33 }
0x11c0   : > { %6136 = vmatmul.mubr.bf16.vlgmr.msra.gmra.mrb[96].mxu1 %v8968_v63 }
0x11c1   : > { %6139 = vmatprep.mubr.bf16.mxu1 %v9022_v6 }
0x11c8   : > { %6140 = vmatmul.mubr.bf16.gmra.mrb[100].mxu1 %v9081_v22 }
0x11c9   : > { %6143 = vmatprep.mubr.bf16.mxu1 %v9290_v61 }
0x11d0   : > { %6144 = vmatmul.mubr.bf16.gmra.mrb[104].mxu1 %v9344_v34 }
0x11d1   : > { %6147 = vmatprep.mubr.bf16.mxu1 %v5110_v47 }
0x1273   : > { %v5154_v14 = vpop.f32.mrb[92].mxu1  ;;  %v5197_v28 = vpop.f32.mrb[108].mxu0 }
0x1274   : > { %v6275_v25 = vadd.f32 %v5154_v14, %v8886_v36  ;;  %v5156_v10 = vpop.f32.mrb[93].mxu1  ;;  %v5199_v13 = vpop.f32.mrb[109].mxu0  ;;  %v6307_v40 = vadd.f32 %v5197_v28, %v8902_v60 }
0x1275   : > { %v6276_v16 = vadd.f32 %v5156_v10, %v8890_v20  ;;  %v5158_v35 = vpop.f32.mrb[94].mxu1  ;;  %v5201_v39 = vpop.f32.mrb[110].mxu0  ;;  %v6308_v46 = vadd.f32 %v5199_v13, %v8897_v51 }
0x1276   : > { %v5899_v63 = vmul.f32 -1.442695, %v6275_v25  ;;  %v6277_v6 = vadd.f32 %v5158_v35, %v8886_v36  ;;  %v5160_v7 = vpop.f32.mrb[95].mxu1  ;;  %v5203_v22 = vpop.f32.mrb[111].mxu0  ;;  %v6309_v36 = vadd.f32 %v5201_v39, %v8902_v60 }
0x1277   : > { %v5901_v43 = vmul.f32 -1.442695, %v6276_v16  ;;  %v6278_v61 = vadd.f32 %v5160_v7, %v8890_v20  ;;  %v5903_v52 = vmul.f32 -1.442695, %v6308_v46  ;;  %v6310_v56 = vadd.f32 %v5203_v22, %v8897_v51 }
0x1278   : > { %7202 = vpow2.f32 %v5899_v63  ;;  %v5900_v34 = vmul.f32 -1.442695, %v6277_v6 }
0x1279   : > { %7204 = vpow2.f32 %v5901_v43  ;;  %v5902_v57 = vmul.f32 -1.442695, %v6278_v61  ;;  %v5904_v20 = vmul.f32 -1.442695, %v6310_v56 }
0x127a   : > { %7206 = vpow2.f32 %v5900_v34 }
0x127b   : > { %7208 = vpow2.f32 %v5902_v57 }
0x127c   : > { %7210 = vtanh.f32 %v6307_v40 }
0x127d   : > { %7212 = vpow2.f32 %v5903_v52 }
0x127e   : > { %7214 = vtanh.f32 %v6309_v36 }
0x1282   : > { %v7203_v32 = vpop.eup %7202 }
0x1283   : > { %v7205_v53 = vpop.eup %7204  ;;  %v5220_v54 = vadd.f32 1.0, %v7203_v32 }
0x1284   : > { %v5232_v55 = vadd.f32 1.0, %v7205_v53  ;;  %v7207_v38 = vpop.eup %7206 }
0x1285   : > { %7216 = vrcp.f32 %v5220_v54  ;;  %v5221_v58 = vadd.f32 1.0, %v7207_v38  ;;  %v7209_v59 = vpop.eup %7208 }
0x1286   : > { %7218 = vrcp.f32 %v5232_v55  ;;  %v5233_v21 = vadd.f32 1.0, %v7209_v59  ;;  %v7211_v51 = vpop.eup %7210 }
0x1287   : > { %7220 = vpow2.f32 %v5904_v20  ;;  %v7213_v60 = vpop.eup %7212 }
0x1288   : > { %7222 = vrcp.f32 %v5221_v58  ;;  %v7215_v62 = vpop.eup %7214  ;;  %v5246_v3 = vadd.f32 1.0, %v7213_v60 }
0x1289   : > { %7224 = vrcp.f32 %v5233_v21 }
0x128a   : > { %7226 = vrcp.f32 %v5246_v3 }
0x128f   : > { %v7217_v23 = vpop.eup %7216 }
0x1290   : > { %v7219_v17 = vpop.eup %7218  ;;  %v5254_v4 = vmul.f32 %v7217_v23, %v7211_v51 }
0x1291   : > { %v7221_v41 = vpop.eup %7220  ;;  %v5252_v15 = vmul.f32 %v7219_v17, %v9395_v19 }
0x1292   : > { %v7223_v50 = vpop.eup %7222  ;;  %v5247_v19 = vadd.f32 1.0, %v7221_v41 }
0x1293   : > { %v5255_v12 = vmul.f32 %v7223_v50, %v7215_v62  ;;  %v6137_v0 = vpop.f32.mrb[96].mxu1  ;;  %v5256_v45 = vadd.f32 %v5254_v4, %v5252_v15  ;;  %v7225_v26 = vpop.eup %7224 }
0x1294   : > { %v5386_v11 = vadd.f32 %v6137_v0, %v9443_v1  ;;  %v5377_v8 = vpop.f32.mrb[97].mxu1  ;;  %v5253_v30 = vmul.f32 %v7225_v26, %v9399_v9  ;;  %v7227_v48 = vpop.eup %7226 }
0x1295   : > { %v5378_v49 = vadd.f32 %v9443_v1, %v5377_v8  ;;  %v6138_v2 = vpop.f32.mrb[98].mxu1  ;;  %7228 = vtanh.f32 %v5256_v45 }
0x1296   : > { %5442 = vst [vmem:[%s9448_s17 + $0x10] sm:$0xff] %v5386_v11  ;;  %v5389_v44 = vadd.f32 %v6138_v2, %v9443_v1  ;;  %v5380_v24 = vpop.f32.mrb[99].mxu1  ;;  %v5257_v5 = vadd.f32 %v5255_v12, %v5253_v30  ;;  %7230 = vrcp.f32 %v5247_v19 }
0x1297   : > { %5440 = vst [vmem:[%s9448_s17] sm:$0xff] %v5378_v49  ;;  %v5381_v37 = vadd.f32 %v9443_v1, %v5380_v24 }
0x1298   : > { %5443 = vst [vmem:[%s9448_s17 + $0x18] sm:$0xff] %v5389_v44  ;;  %7232 = vtanh.f32 %v5257_v5 }
0x1299   : > { %5441 = vst [vmem:[%s9448_s17 + $0x8] sm:$0xff] %v5381_v37 }
0x129b   : > { %v6141_v9 = vpop.f32.mrb[100].mxu1 }
0x129c   : > { %v5402_v47 = vadd.f32 %v6141_v9, %v9443_v1  ;;  %v5393_v42 = vpop.f32.mrb[101].mxu1 }
0x129d   : > { %v5394_v29 = vadd.f32 %v9443_v1, %v5393_v42  ;;  %v6142_v27 = vpop.f32.mrb[102].mxu1 }
0x129e   : > { %5446 = vst [vmem:[%s9448_s17 + $0x30] sm:$0xff] %v5402_v47  ;;  %v5405_v31 = vadd.f32 %v6142_v27, %v9443_v1  ;;  %v5396_v18 = vpop.f32.mrb[103].mxu1 }
0x129f   : > { %v7229_v33 = vpop.eup %7228  ;;  %5444 = vst [vmem:[%s9448_s17 + $0x20] sm:$0xff] %v5394_v29  ;;  %v5397_v14 = vadd.f32 %v9443_v1, %v5396_v18 }
0x12a0   : > { %5447 = vst [vmem:[%s9448_s17 + $0x38] sm:$0xff] %v5405_v31  ;;  %v5260_v28 = vmul.f32 %v7229_v33, %v7227_v48  ;;  %v7231_v25 = vpop.eup %7230 }
0x12a1   : > { %5445 = vst [vmem:[%s9448_s17 + $0x28] sm:$0xff] %v5397_v14 }
0x12a2   : > { %v7233_v10 = vpop.eup %7232 }
0x12a3   : > { %v6145_v13 = vpop.f32.mrb[104].mxu1  ;;  %v5261_v39 = vmul.f32 %v7233_v10, %v7231_v25 }
0x12a4   : > { %v5418_v16 = vadd.f32 %v6145_v13, %v9443_v1  ;;  %v5409_v35 = vpop.f32.mrb[105].mxu1 }
0x12a5   : > { %v5410_v63 = vadd.f32 %v9443_v1, %v5409_v35  ;;  %v6146_v6 = vpop.f32.mrb[106].mxu1  ;;  %v5262_v43 = vpack.c.bf16 %v5261_v39, %v5260_v28 }
0x12a6   : > { %5450 = vst [vmem:[%s9448_s17 + $0x50] sm:$0xff] %v5418_v16  ;;  %v5421_v7 = vadd.f32 %v6146_v6, %v9443_v1  ;;  %v5412_v22 = vpop.f32.mrb[107].mxu1 }
0x12a7   : > { %5448 = vst [vmem:[%s9448_s17 + $0x40] sm:$0xff] %v5410_v63  ;;  %v5413_v61 = vadd.f32 %v9443_v1, %v5412_v22  ;;  %6148 = vmatmul.mubr.bf16.gmra.mrb[108].mxu1 %v5262_v43 }
0x12a8   : > { %5451 = vst [vmem:[%s9448_s17 + $0x58] sm:$0xff] %v5421_v7 }
0x12a9   : > { %5449 = vst [vmem:[%s9448_s17 + $0x48] sm:$0xff] %v5413_v61 }
0x137a   : > { %v6149_v34 = vpop.f32.mrb[108].mxu1 }
0x137b   : > { %v5434_v57 = vadd.f32 %v6149_v34, %v9443_v1  ;;  %v5425_v46 = vpop.f32.mrb[109].mxu1 }
0x137c   : > { %v5426_v40 = vadd.f32 %v9443_v1, %v5425_v46  ;;  %v6150_v52 = vpop.f32.mrb[110].mxu1 }
0x137d   : > { %5454 = vst [vmem:[%s9448_s17 + $0x70] sm:$0xff] %v5434_v57  ;;  %v5437_v56 = vadd.f32 %v6150_v52, %v9443_v1  ;;  %v5428_v36 = vpop.f32.mrb[111].mxu1 }
0x137e   : > { %5452 = vst [vmem:[%s9448_s17 + $0x60] sm:$0xff] %v5426_v40  ;;  %v5429_v32 = vadd.f32 %v9443_v1, %v5428_v36 }
0x137f   : > { %5455 = vst [vmem:[%s9448_s17 + $0x78] sm:$0xff] %v5437_v56 }
0x1380   : > { %5453 = vst [vmem:[%s9448_s17 + $0x68] sm:$0xff] %v5429_v32 }
0x1381 PF: > { %s22_s21 = sadd.s32 1, %s7304_s21  }
0x1382   : > { %p19_p4 = scmp.ge.s32.totalorder %s22_s21, 4  }
0x1384   :  { %21 = sbr.rel (!%p19_p4) target bundleno = 1 (0x1), region = 119 }

</bundles_post_ra>
